<compile_context>
chip_gen: v7x
topology: tpu7x:2x2x1
jax: 0.10.0
libtpu: 0.0.40
codegen_flags: <defaults>
</compile_context>

<pallas_src>
import numpy as np
import jax
import jax.numpy as jnp
from jax.experimental import pallas as pl
from jax.experimental.pallas import tpu as pltpu


# ---------------------------------------------------------------------------
# Pallas kernel: DeepPoly bound propagation (mid/rad formulation, K-tiled)
# ---------------------------------------------------------------------------
def _deeppoly_bounds_kernel(w_ref, l_ref, u_ref, bias_ref,
                            lbound_ref, ubound_ref):
    # w_ref    : (tile_k, tile_out)  transposed weight tile (f32 or bf16)
    # l_ref    : (B_pad, tile_k)     lower input bounds of the parent polygon
    # u_ref    : (B_pad, tile_k)     upper input bounds of the parent polygon
    # bias_ref : (1, tile_out)
    # lbound_ref / ubound_ref : (B_pad, tile_out) outputs; resident across k
    #   (index_map ignores k) and used directly as center / spread f32
    #   accumulators until the k == last epilogue combines them.
    k = pl.program_id(1)

    @pl.when(k == 0)
    def _():
        lbound_ref[...] = jnp.zeros_like(lbound_ref)
        ubound_ref[...] = jnp.zeros_like(ubound_ref)

    w = w_ref[...]
    l = l_ref[...]
    u = u_ref[...]
    mid = 0.5 * (l + u)
    rad = 0.5 * (u - l)
    if w.dtype != jnp.float32:            # bf16 weight storage path
        mid = mid.astype(w.dtype)
        rad = rad.astype(w.dtype)

    # center -> lbound_ref, spread -> ubound_ref (f32 accumulation on MXU)
    lbound_ref[...] += jnp.dot(mid, w, preferred_element_type=jnp.float32)
    ubound_ref[...] += jnp.dot(rad, jnp.abs(w),
                               preferred_element_type=jnp.float32)

    @pl.when(k == pl.num_programs(1) - 1)
    def _():
        b = bias_ref[...]                 # (1, tile_out) broadcasts
        c = lbound_ref[...]
        s = ubound_ref[...]
        lbound_ref[...] = c - s + b
        ubound_ref[...] = c + s + b


# ---------------------------------------------------------------------------
# Tiling / layout helpers
# ---------------------------------------------------------------------------
def _round_up(x, m):
    return ((x + m - 1) // m) * m


def _valid_tiles(dim_pad, unit):
    """Divisors of dim_pad that are multiples of unit (dim_pad % unit == 0)."""
    return [t for t in range(unit, dim_pad + 1, unit) if dim_pad % t == 0]


def _largest_tile(tiles, target):
    cand = [t for t in tiles if t <= target]
    return cand[-1] if cand else tiles[0]


def _vmem_capacity_bytes():
    try:
        return int(pltpu.get_tpu_info().vmem_capacity_bytes)
    except Exception:
        return 64 << 20          # conservative (v7x per-TensorCore)


def _est_vmem_bytes(b_pad, tile_k, tile_out, wbytes):
    w_tiles = 2 * tile_k * tile_out * wbytes          # W^T, double-buffered
    abs_w = tile_k * tile_out * wbytes                # |W| temporary
    ins = 2 * 2 * b_pad * tile_k * 4                  # l,u, double-buffered
    midrad = 2 * b_pad * tile_k * 4                   # in-kernel mid/rad temps
    outs = 2 * 2 * b_pad * tile_out * 4               # lbound,ubound (2 bufs)
    bias = 2 * 2 * tile_out * 4
    return w_tiles + abs_w + ins + midrad + outs + bias


def prepare_dense_layer(W_lin, bias, *, target_tile_out=None, target_tile_k=None,
                        weight_dtype=jnp.float32):
    """One-time layout prep: pad + transpose W, pad bias, pick tiles & VMEM
    budget (generation-aware). Not on the per-call path."""
    out_features, in_features = W_lin.shape

    # --- generation-aware budget / tile targets ------------------------------
    vmem_cap = _vmem_capacity_bytes()
    small_vmem = vmem_cap < (100 << 20)               # v7x-like (64 MiB/TC)
    budget = (96 << 20) if not small_vmem else max(16 << 20,
                                                   int(vmem_cap * 0.70))
    if target_tile_out is None:
        target_tile_out = 1024
    if target_tile_k is None:
        target_tile_k = 2048 if small_vmem else 4096

    # --- divisor-based tiling (no tile-alignment zero traffic of W) ----------
    out_pad = _round_up(max(out_features, 128), 128)
    k_pad = _round_up(max(in_features, 256), 256)
    out_tiles = _valid_tiles(out_pad, 128)
    k_tiles = _valid_tiles(k_pad, 256)
    tile_out = _largest_tile(out_tiles, target_tile_out)
    tile_k = _largest_tile(k_tiles, target_tile_k)

    wbytes = jnp.dtype(weight_dtype).itemsize
    # shrink to fit the budget (|W| temp and double-buffers included)
    oi, ki = out_tiles.index(tile_out), k_tiles.index(tile_k)
    while _est_vmem_bytes(8, k_tiles[ki], out_tiles[oi], wbytes) > budget:
        if ki > 0:
            ki -= 1
        elif oi > 0:
            oi -= 1
        else:
            break
    tile_k, tile_out = k_tiles[ki], out_tiles[oi]

    # keep >= 2 blocks on the "parallel" out axis for 2-TensorCore chips
    if small_vmem and out_pad // tile_out < 2:
        smaller = [t for t in out_tiles if t <= out_pad // 2]
        if smaller:
            tile_out = smaller[-1]

    # --- one-time weight / bias layout ---------------------------------------
    W_T = jnp.pad(jnp.asarray(W_lin, jnp.float32).T,
                  ((0, k_pad - in_features), (0, out_pad - out_features)))
    W_T = W_T.astype(weight_dtype)
    bias_pad = jnp.pad(jnp.asarray(bias, jnp.float32)[None, :],
                       ((0, 0), (0, out_pad - out_features)))
    return {
        "W_T": W_T, "bias": bias_pad,
        "in_features": in_features, "out_features": out_features,
        "tile_out": tile_out, "tile_k": tile_k,
        "out_pad": out_pad, "k_pad": k_pad,
        "wbytes": wbytes, "vmem_budget": budget,
    }


def deeppoly_conv2d_bounds(params, lbias_in, ubias_in):
    """Compute (l_bound, u_bound), each (batch, out_features), via Pallas."""
    B, in_features = lbias_in.shape
    assert in_features == params["in_features"]
    out_features = params["out_features"]
    tile_out, tile_k = params["tile_out"], params["tile_k"]
    out_pad, k_pad = params["out_pad"], params["k_pad"]

    # pad batch to the native 8-row sublane, pad K with zeros (no-op in dots)
    b_pad = max(8, _round_up(B, 8))
    l_in = jnp.pad(jnp.asarray(lbias_in, jnp.float32),
                   ((0, b_pad - B), (0, k_pad - in_features)))
    u_in = jnp.pad(jnp.asarray(ubias_in, jnp.float32),
                   ((0, b_pad - B), (0, k_pad - in_features)))

    grid = (out_pad // tile_out, k_pad // tile_k)

    est = _est_vmem_bytes(b_pad, tile_k, tile_out, params["wbytes"])
    vmem_limit = int(min(max(int(1.5 * est), 16 << 20), params["vmem_budget"]))

    lbound, ubound = pl.pallas_call(
        _deeppoly_bounds_kernel,
        out_shape=(jax.ShapeDtypeStruct((b_pad, out_pad), jnp.float32),
                   jax.ShapeDtypeStruct((b_pad, out_pad), jnp.float32)),
        grid_spec=pltpu.PrefetchScalarGridSpec(
            num_scalar_prefetch=0,
            grid=grid,
            in_specs=[
                pl.BlockSpec((tile_k, tile_out), lambda j, k: (k, j)),   # W^T
                pl.BlockSpec((b_pad, tile_k),    lambda j, k: (0, k)),   # l
                pl.BlockSpec((b_pad, tile_k),    lambda j, k: (0, k)),   # u
                pl.BlockSpec((1, tile_out),      lambda j, k: (0, j)),   # bias
            ],
            out_specs=[
                pl.BlockSpec((b_pad, tile_out), lambda j, k: (0, j)),
                pl.BlockSpec((b_pad, tile_out), lambda j, k: (0, j)),
            ],
        ),
        compiler_params=pltpu.CompilerParams(
            dimension_semantics=("parallel", "arbitrary"),
            vmem_limit_bytes=vmem_limit),
    )(params["W_T"], l_in, u_in, params["bias"])

    return lbound[:B, :out_features], ubound[:B, :out_features]


# ---------------------------------------------------------------------------
# Glue: conv -> linear weight construction (mirrors Conv2dTransformer._conv_linear)
# ---------------------------------------------------------------------------
def _encode_loc(tup, shape):
    residual, coefficient = 0, 1
    for i in reversed(range(len(shape))):
        residual += coefficient * tup[i]
        coefficient *= shape[i]
    return residual


def conv_to_linear(weight, bias, input_shape, output_shape, stride, padding,
                   kernel_size):
    c_in, w, h = input_shape
    c_out, w_out, h_out = output_shape
    in_features = int(np.prod(input_shape))
    out_features = int(np.prod(output_shape))
    W_lin = np.zeros((out_features, in_features), dtype=np.float32)
    b_lin = np.zeros((out_features,), dtype=np.float32)

    # bias written once per output location (removes O(k^2) redundant writes)
    for c1 in range(c_out):
        for x0 in range(w_out):
            for y0 in range(h_out):
                b_lin[_encode_loc((c1, x0, y0), output_shape)] = bias[c1]

    for x0 in range(w_out):
        for y0 in range(h_out):
            x00 = stride[0] * x0 - padding[0]
            y00 = stride[1] * y0 - padding[1]
            for xd in range(kernel_size[0]):
                xi = x00 + xd
                if not (0 <= xi < w):
                    continue
                for yd in range(kernel_size[1]):
                    yi = y00 + yd
                    if not (0 <= yi < h):
                        continue
                    for c1 in range(c_out):
                        row = _encode_loc((c1, x0, y0), output_shape)
                        for c2 in range(c_in):
                            W_lin[row, _encode_loc((c2, xi, yi), input_shape)] = \
                                weight[c1, c2, xd, yd]
    return W_lin, b_lin


# ---------------------------------------------------------------------------
# Conv2dTransformer.forward equivalent
# ---------------------------------------------------------------------------
def conv2d_transformer_forward(params, W_lin, bias, lbias_in, ubias_in):
    """Matches Polygon(l_coefs=W[None], u_coefs=W[None], l_bias=b[None],
    u_bias=b[None], parent=input_polygon); the input polygon has empty
    coefficients, so only the bounds are back-substituted (in the kernel)."""
    l_bound, u_bound = deeppoly_conv2d_bounds(params, lbias_in, ubias_in)
    return {
        "l_coefs": W_lin[None, :, :],
        "u_coefs": W_lin[None, :, :],
        "l_bias": bias[None, :],
        "u_bias": bias[None, :],
        "l_bound": l_bound,
        "u_bound": u_bound,
    }


if __name__ == "__main__":
    # ---- problem sizes (small, consistent with the module) ----
    batch = 2
    in_channels, out_channels = 4, 4
    H = W = 16                      # input_size = (w, h) = (16, 16)
    kernel_size = (3, 3)
    stride = (1, 1)
    padding = (1, 1)
    eps = 0.05

    input_shape = (in_channels, H, W)
    out_h = (H + 2 * padding[0] - kernel_size[0]) // stride[0] + 1
    out_w = (W + 2 * padding[1] - kernel_size[1]) // stride[1] + 1
    output_shape = (out_channels, out_h, out_w)

    # ---- deterministic parameter / input init ----
    key = jax.random.PRNGKey(0)
    k_w, k_b, k_x = jax.random.split(key, 3)
    conv_weight = jax.random.normal(
        k_w, (out_channels, in_channels, *kernel_size), dtype=jnp.float32) * 0.1
    conv_bias = jax.random.normal(k_b, (out_channels,), dtype=jnp.float32) * 0.1
    x = jax.random.uniform(k_x, (batch, *input_shape), dtype=jnp.float32)

    # conv -> dense linear weight (module __init__ glue, host side, once)
    W_lin_np, b_lin_np = conv_to_linear(
        np.asarray(conv_weight), np.asarray(conv_bias),
        input_shape, output_shape, stride, padding, kernel_size)
    W_lin = jnp.asarray(W_lin_np)
    b_lin = jnp.asarray(b_lin_np)

    # one-time layout prep (generation-aware tiles; f32 weights kept for
    # soundness of the verified bounds — see TODO about bf16 + rad widening)
    params = prepare_dense_layer(W_lin, b_lin, weight_dtype=jnp.float32)

    # Polygon.create_from_input: input box [clip(x-eps,0,1), clip(x+eps,0,1)]
    x_flat = x.reshape(batch, -1)
    lbias_in = jnp.clip(x_flat - eps, 0.0, 1.0)
    ubias_in = jnp.clip(x_flat + eps, 0.0, 1.0)

    # ---- run the Pallas-backed forward ----
    out = conv2d_transformer_forward(params, W_lin, b_lin, lbias_in, ubias_in)
    jax.block_until_ready(out["l_bound"])
    jax.block_until_ready(out["u_bound"])

    # ---- pure-JAX reference check (original sign-split DeepPoly form) ----
    w_pos = jnp.maximum(W_lin, 0.0)
    w_neg = jnp.minimum(W_lin, 0.0)
    l_ref = lbias_in @ w_pos.T + ubias_in @ w_neg.T + b_lin[None, :]
    u_ref = ubias_in @ w_pos.T + lbias_in @ w_neg.T + b_lin[None, :]
    assert jnp.allclose(out["l_bound"], l_ref, atol=1e-3, rtol=1e-3)
    assert jnp.allclose(out["u_bound"], u_ref, atol=1e-3, rtol=1e-3)
    assert bool(jnp.all(out["l_bound"] <= out["u_bound"] + 1e-5))

    print("KERNEL_OK")
</pallas_src>

<mosaic_0001>
module attributes {stable_mosaic.version = 11 : i64} {
  func.func @_deeppoly_bounds_kernel(%arg0: i32, %arg1: i32, %arg2: memref<1024x512xf32, #tpu.memory_space<vmem>>, %arg3: memref<8x1024xf32, #tpu.memory_space<vmem>>, %arg4: memref<8x1024xf32, #tpu.memory_space<vmem>>, %arg5: memref<1x512xf32, #tpu.memory_space<vmem>>, %arg6: memref<8x512xf32, #tpu.memory_space<vmem>>, %arg7: memref<8x512xf32, #tpu.memory_space<vmem>>) attributes {dimension_semantics = [#tpu.dimension_semantics<parallel>, #tpu.dimension_semantics<arbitrary>], iteration_bounds = array<i64: 2, 1>, scalar_prefetch = 0 : i64, scratch_operands = 0 : i64, tpu.core_type = #tpu.core_type<tc>, window_params = [{transform_indices = @transform_0, window_bounds = array<i64: 1024, 512>}, {transform_indices = @transform_1, window_bounds = array<i64: 8, 1024>}, {transform_indices = @transform_2, window_bounds = array<i64: 8, 1024>}, {transform_indices = @transform_3, window_bounds = array<i64: 1, 512>}, {transform_indices = @transform_4, window_bounds = array<i64: 8, 512>}, {transform_indices = @transform_5, window_bounds = array<i64: 8, 512>}]} {
    %c0_i32 = arith.constant 0 : i32
    %0 = arith.cmpi eq, %arg1, %c0_i32 : i32
    %1 = arith.extui %0 : i1 to i32
    %c0_i32_0 = arith.constant 0 : i32
    %2 = arith.cmpi ne, %1, %c0_i32_0 : i32
    scf.if %2 {
      %cst_19 = arith.constant 0.000000e+00 : f32
      %24 = vector.broadcast %cst_19 : f32 to vector<8x512xf32>
      %c0_20 = arith.constant 0 : index
      %c0_21 = arith.constant 0 : index
      %25 = vector.load %arg6[%c0_20, %c0_21] : memref<8x512xf32, #tpu.memory_space<vmem>>, vector<8x512xf32>
      tpu.vector_store %arg6[%c0_20, %c0_21], %24 {strides = array<i32>} : memref<8x512xf32, #tpu.memory_space<vmem>>, vector<8x512xf32>,
      %cst_22 = arith.constant 0.000000e+00 : f32
      %26 = vector.broadcast %cst_22 : f32 to vector<8x512xf32>
      %c0_23 = arith.constant 0 : index
      %c0_24 = arith.constant 0 : index
      %27 = vector.load %arg7[%c0_23, %c0_24] : memref<8x512xf32, #tpu.memory_space<vmem>>, vector<8x512xf32>
      tpu.vector_store %arg7[%c0_23, %c0_24], %26 {strides = array<i32>} : memref<8x512xf32, #tpu.memory_space<vmem>>, vector<8x512xf32>,
    } else {
    }
    %c0 = arith.constant 0 : index
    %c0_1 = arith.constant 0 : index
    %3 = vector.load %arg2[%c0, %c0_1] : memref<1024x512xf32, #tpu.memory_space<vmem>>, vector<1024x512xf32>
    %c0_2 = arith.constant 0 : index
    %c0_3 = arith.constant 0 : index
    %4 = vector.load %arg3[%c0_2, %c0_3] : memref<8x1024xf32, #tpu.memory_space<vmem>>, vector<8x1024xf32>
    %c0_4 = arith.constant 0 : index
    %c0_5 = arith.constant 0 : index
    %5 = vector.load %arg4[%c0_4, %c0_5] : memref<8x1024xf32, #tpu.memory_space<vmem>>, vector<8x1024xf32>
    %6 = arith.addf %4, %5 : vector<8x1024xf32>
    %cst = arith.constant 5.000000e-01 : f32
    %7 = vector.broadcast %cst : f32 to vector<8x1024xf32>
    %8 = arith.mulf %7, %6 : vector<8x1024xf32>
    %9 = arith.subf %5, %4 : vector<8x1024xf32>
    %cst_6 = arith.constant 5.000000e-01 : f32
    %10 = vector.broadcast %cst_6 : f32 to vector<8x1024xf32>
    %11 = arith.mulf %10, %9 : vector<8x1024xf32>
    %c0_7 = arith.constant 0 : index
    %c0_8 = arith.constant 0 : index
    %12 = vector.load %arg6[%c0_7, %c0_8] : memref<8x512xf32, #tpu.memory_space<vmem>>, vector<8x512xf32>
    %cst_9 = arith.constant dense<0.000000e+00> : vector<8x512xf32>
    %13 = tpu.matmul %8, %3, %cst_9 {dimension_numbers = #tpu.dot_dimension_numbers<[1], [0], [0], [1], [0, 0, 1, 1], [], []>} : vector<8x1024xf32>, vector<1024x512xf32>, vector<8x512xf32> -> vector<8x512xf32>
    %14 = arith.addf %12, %13 : vector<8x512xf32>
    %c0_10 = arith.constant 0 : index
    %c0_11 = arith.constant 0 : index
    %15 = vector.load %arg6[%c0_10, %c0_11] : memref<8x512xf32, #tpu.memory_space<vmem>>, vector<8x512xf32>
    tpu.vector_store %arg6[%c0_10, %c0_11], %14 {strides = array<i32>} : memref<8x512xf32, #tpu.memory_space<vmem>>, vector<8x512xf32>,
    %c0_12 = arith.constant 0 : index
    %c0_13 = arith.constant 0 : index
    %16 = vector.load %arg7[%c0_12, %c0_13] : memref<8x512xf32, #tpu.memory_space<vmem>>, vector<8x512xf32>
    %17 = math.absf %3 : vector<1024x512xf32>
    %cst_14 = arith.constant dense<0.000000e+00> : vector<8x512xf32>
    %18 = tpu.matmul %11, %17, %cst_14 {dimension_numbers = #tpu.dot_dimension_numbers<[1], [0], [0], [1], [0, 0, 1, 1], [], []>} : vector<8x1024xf32>, vector<1024x512xf32>, vector<8x512xf32> -> vector<8x512xf32>
    %19 = arith.addf %16, %18 : vector<8x512xf32>
    %c0_15 = arith.constant 0 : index
    %c0_16 = arith.constant 0 : index
    %20 = vector.load %arg7[%c0_15, %c0_16] : memref<8x512xf32, #tpu.memory_space<vmem>>, vector<8x512xf32>
    tpu.vector_store %arg7[%c0_15, %c0_16], %19 {strides = array<i32>} : memref<8x512xf32, #tpu.memory_space<vmem>>, vector<8x512xf32>,
    %c0_i32_17 = arith.constant 0 : i32
    %21 = arith.cmpi eq, %arg1, %c0_i32_17 : i32
    %22 = arith.extui %21 : i1 to i32
    %c0_i32_18 = arith.constant 0 : i32
    %23 = arith.cmpi ne, %22, %c0_i32_18 : i32
    scf.if %23 {
      %c0_19 = arith.constant 0 : index
      %c0_20 = arith.constant 0 : index
      %24 = vector.load %arg5[%c0_19, %c0_20] : memref<1x512xf32, #tpu.memory_space<vmem>>, vector<1x512xf32>
      %c0_21 = arith.constant 0 : index
      %c0_22 = arith.constant 0 : index
      %25 = vector.load %arg6[%c0_21, %c0_22] : memref<8x512xf32, #tpu.memory_space<vmem>>, vector<8x512xf32>
      %c0_23 = arith.constant 0 : index
      %c0_24 = arith.constant 0 : index
      %26 = vector.load %arg7[%c0_23, %c0_24] : memref<8x512xf32, #tpu.memory_space<vmem>>, vector<8x512xf32>
      %27 = arith.subf %25, %26 : vector<8x512xf32>
      %28 = vector.broadcast %24 : vector<1x512xf32> to vector<8x512xf32>
      %29 = arith.addf %27, %28 : vector<8x512xf32>
      %c0_25 = arith.constant 0 : index
      %c0_26 = arith.constant 0 : index
      %30 = vector.load %arg6[%c0_25, %c0_26] : memref<8x512xf32, #tpu.memory_space<vmem>>, vector<8x512xf32>
      tpu.vector_store %arg6[%c0_25, %c0_26], %29 {strides = array<i32>} : memref<8x512xf32, #tpu.memory_space<vmem>>, vector<8x512xf32>,
      %31 = arith.addf %25, %26 : vector<8x512xf32>
      %32 = vector.broadcast %24 : vector<1x512xf32> to vector<8x512xf32>
      %33 = arith.addf %31, %32 : vector<8x512xf32>
      %c0_27 = arith.constant 0 : index
      %c0_28 = arith.constant 0 : index
      %34 = vector.load %arg7[%c0_27, %c0_28] : memref<8x512xf32, #tpu.memory_space<vmem>>, vector<8x512xf32>
      tpu.vector_store %arg7[%c0_27, %c0_28], %33 {strides = array<i32>} : memref<8x512xf32, #tpu.memory_space<vmem>>, vector<8x512xf32>,
    } else {
    }
    return
  }
  func.func @transform_0(%arg0: i32, %arg1: i32) -> (i32, i32) {
    %c0_i32 = arith.constant 0 : i32
    return %arg1, %arg0 : i32, i32
  }
  func.func @transform_1(%arg0: i32, %arg1: i32) -> (i32, i32) {
    %c0_i32 = arith.constant 0 : i32
    %c0_i32_0 = arith.constant 0 : i32
    return %c0_i32, %arg1 : i32, i32
  }
  func.func @transform_2(%arg0: i32, %arg1: i32) -> (i32, i32) {
    %c0_i32 = arith.constant 0 : i32
    %c0_i32_0 = arith.constant 0 : i32
    return %c0_i32, %arg1 : i32, i32
  }
  func.func @transform_3(%arg0: i32, %arg1: i32) -> (i32, i32) {
    %c0_i32 = arith.constant 0 : i32
    %c0_i32_0 = arith.constant 0 : i32
    return %c0_i32, %arg0 : i32, i32
  }
  func.func @transform_4(%arg0: i32, %arg1: i32) -> (i32, i32) {
    %c0_i32 = arith.constant 0 : i32
    %c0_i32_0 = arith.constant 0 : i32
    return %c0_i32, %arg0 : i32, i32
  }
  func.func @transform_5(%arg0: i32, %arg1: i32) -> (i32, i32) {
    %c0_i32 = arith.constant 0 : i32
    %c0_i32_0 = arith.constant 0 : i32
    return %c0_i32, %arg0 : i32, i32
  }
}

</mosaic_0001>

<bundles_post_ra>
// kernel: tpu_custom_call.1
= control target key start
LH: loop header
LB: loop body
LE: loop exit
PB: predicated region body
PF: predicated region fallthrough
CT: control target
= control target key end

     0   :  { %s6303_s0 = inlined_call_operand.hbm [shape: f32[1024,1024], index: 0, kind: input, shape index: {}]   ;;  %s6304_s1 = inlined_call_operand.hbm [shape: f32[8,1024], index: 1, kind: input, shape index: {}]   ;;  %s6305_s2 = inlined_call_operand.hbm [shape: f32[8,1024], index: 2, kind: input, shape index: {}]   ;;  %s6306_s3 = inlined_call_operand.hbm [shape: f32[1,1024], index: 3, kind: input, shape index: {}]   ;;  %s6307_s4 = inlined_call_operand.hbm [shape: f32[8,1024], index: 4, kind: output, shape index: {0}]   ;;  %s6308_s5 = inlined_call_operand.hbm [shape: f32[8,1024], index: 5, kind: output, shape index: {1}]  }
   0x1   :  { %6318 = sst [smem:[#allocation22_spill]] %s6303_s0 }
   0x2   :  { %6319 = sst [smem:[#allocation23_spill]] %s6304_s1 }
   0x3   :  { %6320 = sst [smem:[#allocation24_spill]] %s6305_s2 }
   0x4   :  { %11 = vsyncpa [#allocation3], 0 }
   0x5   :  { %13 = vsyncpa [#allocation3 + $0x1], 0 }
   0x6   :  { %14 = vsyncpa [#allocation6], 0 }
   0x7   :  { %15 = vsyncpa [#allocation9], 0 }
   0x8   :  { %17 = vsyncpa [#allocation9 + $0x1], 0 }
   0x9   :  { %18 = vsyncpa [#allocation4], 0 }
   0xa   :  { %20 = vsyncpa [#allocation4 + $0x1], 0 }
   0xb   :  { %21 = vsyncpa [#allocation12], 0 }
   0xc   :  { %23 = vsyncpa [#allocation12 + $0x1], 0  ;;  %s4826_s18 = smov 0   ;;  %s4828_s19 = smov 0  }
   0xd   :  { %s4830_s20 = smov 0   ;;  %s4832_s21 = smov 0  }
   0xe   :  { %s4834_s22 = smov 0   ;;  %s4836_s23 = smov 0  }
   0xf LB: > { %s2851_s24 = sadd.s32 4294967295, %s4785_s23   ;;  %s2852_s25 = sadd.s32 4294967294, %s4785_s23   ;;  %s4785_s23 = sphi %s4836_s23, %s29_s23   ;;  %s4781_s22 = sphi %s4834_s22, %s6353_s22   ;;  %s4777_s21 = sphi %s4832_s21, %s6352_s21   ;;  %s4773_s20 = sphi %s4830_s20, %s6351_s20   ;;  %s4769_s19 = sphi %s4828_s19, %s6350_s19   ;;  %s4765_s18 = sphi %s4826_s18, %s6349_s18  }
  0x10   : > { %s50_s26 = sadd.s32 1, %s4773_s20  ;;  %p57_p0 = scmp.ne.s32.totalorder %s4773_s20, %s4769_s19 }
  0x11   : > { %p58_p1 = scmp.eq.s32.totalorder %s4785_s23, 0  ;;  %p63_p2 = scmp.ne.s32.totalorder %s4769_s19, %s4765_s18 }
  0x12   : > { %p4864_p3 = scmp.eq.s32.totalorder %s2851_s24, 0  ;;  %p165_p4 = scmp.eq.s32.totalorder %s2851_s24, 1 }
  0x13   : > { %p4868_p5 = por %p58_p1, %p57_p0  ;;  %p171_p6 = scmp.eq.s32.totalorder %s2852_s25, 1 }
  0x14   : > { %s6321_s27 = scalar_select %p4864_p3, 1, 0 }
  0x15   : > { %p4874_p7 = por %p4864_p3, %p63_p2  ;;  %p4878_p8 = por %p165_p4, %p57_p0 }
  0x16   : > { %p4882_p9 = por %p171_p6, %p63_p2  ;;  %p2853_p10 = scmp.ge.s32.totalorder %s4785_s23, 1 }
  0x17   : > { %s6323_s29 = scalar_select %p4874_p7, 1, 0 }
  0x18   : > { %s6324_s30 = scalar_select %p4878_p8, 1, 0 }
  0x19   : > { %s6325_s6 = scalar_select %p4882_p9, 1, 0 }
  0x1a   : > { %p204_p11 = scmp.lt.s32.totalorder %s4785_s23, 3  ;;  %s4787_s8 = smov [#allocation5]  }
  0x1b   : > { %s220_s9 = sshll.u32 %s4787_s8, 4  ;;  %p3969_p1 = scmp.lt.s32.totalorder %s4785_s23, 2  ;;  %s221_s9 = int_to_ptr.vmem [resolvable:$true] %s220_s9 }
  0x1c   : > { %p4889_p13 = pnand %p2853_p10, %p204_p11  ;;  %s4788_s11 = smov [#allocation7]  }
  0x1d   : > { %p4898_p4 = pnand %p3969_p1, %p4868_p5  ;;  %s234_s12 = sshll.u32 %s4788_s11, 4  ;;  %s4908_s12 = int_to_ptr.vmem [resolvable:$true] %s234_s12 }
  0x1e   : > { %s6326_s7 = scalar_select %p4889_p13, 1, 0 }
  0x1f   : > { %p3946_p0 = pneg %p4889_p13  ;;  %s6329_s1 = sld [smem:[#allocation23_spill]] }
  0x20   : > { %s6327_s10 = scalar_select %p4898_p4, 1, 0 }
  0x21   : > { %p4904_p2 = pnand %p3946_p0, %p4864_p3 }
  0x23   : > { %p4549_p6 = pneg %p4904_p2 }
  0x25   : > { %s4547_s16 = scalar_lea.hbm %s6329_s1, 1024 }
  0x26   : > { %p4548_p5 = scmp.ne.s32.totalorder %s6329_s1, %s4547_s16  ;;  %p4554_p1 = scmp.lt.u32.totalorder %s4547_s16, %s6329_s1 }
  0x28   : > { %p4550_p10 = pnand %p4549_p6, %p4548_p5 }
  0x2a   : > { %p4551_p11 = pneg %p4550_p10 }
  0x2c   : > { %p4556_p0 = pnand %p4554_p1, %p4551_p11 }
  0x2e   : > { %4559 = shalt.err (!%p4556_p0)
}
  0x2f   : > { %s4560_s8 = scalar_lea.vmem %s221_s9, 1024  ;;  %p4568_p3 = scmp.lt.s32.totalorder %s221_s9, %s221_s9 }
  0x30   : > { %p4561_p12 = scmp.ne.s32.totalorder %s221_s9, %s4560_s8  ;;  %p4569_p7 = scmp.lt.s32.totalorder %s4560_s8, %s4560_s8 }
  0x32   : > { %p4563_p9 = pnand %p4561_p12, %p4549_p6  ;;  %p4570_p13 = por %p4569_p7, %p4568_p3 }
  0x34   : > { %p4564_p8 = pneg %p4563_p9 }
  0x36   : > { %p4571_p4 = pnand %p4570_p13, %p4564_p8 }
  0x38   : > { %4574 = shalt.err (!%p4571_p4)
}
  0x39   : > { %3949 = dma.hbm_to_vmem [thread:$0]  (!%p4904_p2), %s6329_s1, 1024, %s221_s9, [#allocation6]  }
  0x3a   : > { %s6330_s2 = sld [smem:[#allocation24_spill]] }
  0x40   : > { %s4575_s17 = scalar_lea.hbm %s6330_s2, 1024 }
  0x41   : > { %p4576_p9 = scmp.ne.s32.totalorder %s6330_s2, %s4575_s17  ;;  %p4582_p8 = scmp.lt.u32.totalorder %s4575_s17, %s6330_s2 }
  0x43   : > { %p4578_p3 = pnand %p4576_p9, %p4549_p6 }
  0x45   : > { %p4579_p7 = pneg %p4578_p3 }
  0x47   : > { %p4584_p12 = pnand %p4582_p8, %p4579_p7 }
  0x49   : > { %4587 = shalt.err (!%p4584_p12)
}
  0x4a   : > { %s4588_s9 = scalar_lea.vmem %s4908_s12, 1024  ;;  %p4596_p10 = scmp.lt.s32.totalorder %s4908_s12, %s4908_s12 }
  0x4b   : > { %p4589_p13 = scmp.ne.s32.totalorder %s4908_s12, %s4588_s9  ;;  %p4597_p11 = scmp.lt.s32.totalorder %s4588_s9, %s4588_s9 }
  0x4d   : > { %p4591_p4 = pnand %p4589_p13, %p4549_p6  ;;  %p4598_p1 = por %p4597_p11, %p4596_p10 }
  0x4f   : > { %p4592_p5 = pneg %p4591_p4 }
  0x51   : > { %p4599_p0 = pnand %p4598_p1, %p4592_p5 }
  0x53   : > { %4602 = shalt.err (!%p4599_p0)
}
  0x54   : > { %3952 = dma.hbm_to_vmem [thread:$0]  (!%p4904_p2), %s6330_s2, 1024, %s4908_s12, [#allocation6]  }
  0x55   : > { %s41_s15 = sadd.s32 1, %s4781_s22  ;;  %s4959_s16 = sand.u32 1, %s4773_s20  }
  0x56   : > { %p43_p6 = scmp.ge.s32.totalorder %s41_s15, 2  ;;  %s2857_s13 = sshll.u32 %s4959_s16, 12 }
  0x57   : > { %s2878_s17 = sshll.u32 %s4781_s22, 9  ;;  %s6332_s0 = sld [smem:[#allocation22_spill]] }
  0x58   : > { %s6355_s15 = smov (%p43_p6, %s41_s15), 0  ;;  %s249_s8 = scalar_lea.vmem [#allocation2], %s2857_s13 }
  0x59   : > { %6331 = sst [smem:[#allocation18_spill]] %s6355_s15  ;;  %s46_s12 = ssub.s32 %s4781_s22, %s6355_s15 }
  0x5a   : > { %s259_s9 = sshll.u32 %s249_s8, 4  ;;  %p48_p2 = scmp.eq.s32.totalorder %s46_s12, 0  ;;  %s4972_s9 = int_to_ptr.vmem [resolvable:$true] %s259_s9 }
  0x5b   : > { %s246_s14 = scalar_lea.sflag [#allocation3], %s4959_s16  ;;  %p6334_p3 = scmp.ne.s32.totalorder %s6327_s10, 0 }
  0x5c   : > { %s4977_s11 = scalar_select %p48_p2, %s4773_s20, %s50_s26  }
  0x5d   : > { %s4968_s28 = scalar_lea.hbm %s6332_s0, %s2878_s17  ;;  %p4605_p7 = pneg %p6334_p3 }
  0x5e   : > { %6333 = sst [smem:[#allocation19_spill]] %s4977_s11  ;;  %s4603_s1 = scalar_lea.hbm %s4968_s28, 65536 }
  0x5f   : > { %p4604_p9 = scmp.ne.s32.totalorder %s4968_s28, %s4603_s1  ;;  %s4608_s13 = scalar_lea.hbm %s6332_s0, 131072 }
  0x60   : > { %p4609_p13 = scmp.lt.u32.totalorder %s4968_s28, %s6332_s0  ;;  %p4610_p4 = scmp.lt.u32.totalorder %s4608_s13, %s4603_s1 }
  0x61   : > { %p4606_p8 = pnand %p4605_p7, %p4604_p9  ;;  %p4612_p10 = scmp.lt.u32.totalorder %s4603_s1, %s4968_s28 }
  0x62   : > { %p4611_p5 = por %p4610_p4, %p4609_p13 }
  0x63   : > { %p4607_p12 = pneg %p4606_p8 }
  0x64   : > { %p4613_p11 = por %p4612_p10, %p4611_p5 }
  0x66   : > { %p4614_p1 = pnand %p4613_p11, %p4607_p12 }
  0x68   : > { %4617 = shalt.err (!%p4614_p1)
}
  0x69   : > { %s4618_s26 = scalar_lea.vmem %s4972_s9, 65536  ;;  %s4789_s8 = smov [#allocation2]  }
  0x6a   : > { %p4619_p0 = scmp.ne.s32.totalorder %s4972_s9, %s4618_s26  ;;  %s4623_s17 = sshll.u32 %s4789_s8, 4  ;;  %s4624_s17 = int_to_ptr.vmem [resolvable:$false] %s4623_s17 }
  0x6b   : > { %s4625_s24 = scalar_lea.vmem %s4624_s17, 131072  ;;  %p4626_p9 = scmp.lt.s32.totalorder %s4972_s9, %s4624_s17 }
  0x6c   : > { %p4621_p6 = pnand %p4619_p0, %p4605_p7  ;;  %p4627_p8 = scmp.lt.s32.totalorder %s4625_s24, %s4618_s26 }
  0x6e   : > { %p4622_p2 = pneg %p4621_p6  ;;  %p4628_p13 = por %p4627_p8, %p4626_p9 }
  0x70   : > { %p4629_p4 = pnand %p4628_p13, %p4622_p2 }
  0x72   : > { %4632 = shalt.err (!%p4629_p4)
}
  0x73   : > { %s4790_s1 = smov 1024   ;;  %s4791_s13 = smov 512  }
  0x74   : > { %s4792_s25 = smov 32   ;;  %s2860_s12 = sshll.u32 %s4959_s16, 2 }
  0x75   : > { %3956 = dma.hbm_to_vmem [thread:$0]  (!%p6334_p3), %s4968_s28, 65536, %s4972_s9, %s246_s14, %s4790_s1, %s4791_s13, %s4792_s25  }
  0x76   : > { %s2879_s8 = sshll.u32 %s4781_s22, 6  ;;  %s273_s0 = scalar_lea.vmem [#allocation8], %s2860_s12 }
  0x77   : > { %s5012_s24 = scalar_lea.hbm %s6306_s3, %s2879_s8  ;;  %s281_s2 = sshll.u32 %s273_s0, 4  ;;  %s282_s2 = int_to_ptr.vmem [resolvable:$true] %s281_s2 }
  0x78   : > { %s270_s15 = scalar_lea.sflag [#allocation9], %s4959_s16  ;;  %s4633_s11 = scalar_lea.hbm %s5012_s24, 64 }
  0x79   : > { %p4634_p12 = scmp.ne.s32.totalorder %s5012_s24, %s4633_s11  ;;  %s4638_s14 = scalar_lea.hbm %s6306_s3, 128 }
  0x7a   : > { %p4639_p11 = scmp.lt.u32.totalorder %s5012_s24, %s6306_s3  ;;  %p4640_p1 = scmp.lt.u32.totalorder %s4638_s14, %s4633_s11 }
  0x7b   : > { %p4636_p5 = pnand %p4634_p12, %p4605_p7  ;;  %p4642_p6 = scmp.lt.u32.totalorder %s4633_s11, %s5012_s24 }
  0x7c   : > { %p4641_p0 = por %p4640_p1, %p4639_p11 }
  0x7d   : > { %p4637_p10 = pneg %p4636_p5 }
  0x7e   : > { %p4643_p2 = por %p4642_p6, %p4641_p0 }
  0x80   : > { %p4644_p9 = pnand %p4643_p2, %p4637_p10 }
  0x82   : > { %4647 = shalt.err (!%p4644_p9)
}
  0x83   : > { %s4648_s0 = scalar_lea.vmem %s282_s2, 64  ;;  %s4793_s16 = smov [#allocation8]  }
  0x84   : > { %p4649_p8 = scmp.ne.s32.totalorder %s282_s2, %s4648_s0  ;;  %s4653_s25 = sshll.u32 %s4793_s16, 4  ;;  %s4654_s25 = int_to_ptr.vmem [resolvable:$false] %s4653_s25 }
  0x85   : > { %s4655_s12 = scalar_lea.vmem %s4654_s25, 128  ;;  %p4656_p12 = scmp.lt.s32.totalorder %s282_s2, %s4654_s25 }
  0x86   : > { %p4651_p13 = pnand %p4649_p8, %p4605_p7  ;;  %p4657_p5 = scmp.lt.s32.totalorder %s4655_s12, %s4648_s0 }
  0x88   : > { %p4652_p4 = pneg %p4651_p13  ;;  %p4658_p1 = por %p4657_p5, %p4656_p12 }
  0x8a   : > { %p4659_p11 = pnand %p4658_p1, %p4652_p4 }
  0x8c   : > { %4662 = shalt.err (!%p4659_p11)
}
  0x8d   : > { %3959 = dma.hbm_to_vmem [thread:$0]  (!%p6334_p3), %s5012_s24, 64, %s282_s2, %s270_s15  }
  0x8e   : > { %p6335_p10 = scmp.ne.s32.totalorder %s6326_s7, 0 }
  0x90   : > { %290 = sbr.rel (%p6335_p10) target bundleno = 941 (0x3ad), region = 36 }
  0x97   : > { %s5037_s11 = sand.u32 1, %s4769_s19   ;;  %p6336_p7 = scmp.ne.s32.totalorder %s6323_s29, 0 }
  0x98   : > { %s2864_s8 = sshll.u32 %s5037_s11, 12  ;;  %s293_s26 = scalar_lea.sflag [#allocation3], %s5037_s11 }
  0x99   : > { %s5041_s17 = scalar_lea.vmem [#allocation2], %s2864_s8 }
  0x9a   : > { %4744 = dma.done.wait (%p6336_p7), %s293_s26, 65536  }
  0x9b   : > { %4746 = vsyncadd (%p6336_p7), %s293_s26, 4294901760  ;;  %p6337_p3 = scmp.ne.s32.totalorder %s6321_s27, 0 }
  0x9d   : > { %4748 = dma.done.wait (%p6337_p3), [#allocation6], 2048  }
  0x9e   : > { %4750 = vsyncadd (%p6337_p3), [#allocation6], 4294965248  ;;  %s2867_s2 = sshll.u32 %s5037_s11, 2  ;;  %s310_s7 = scalar_lea.sflag [#allocation9], %s5037_s11 }
  0x9f   : > { %s5053_s10 = scalar_lea.vmem [#allocation8], %s2867_s2 }
  0xa0   : > { %4752 = dma.done.wait (%p6336_p7), %s310_s7, 64  }
  0xa1   : > { %4754 = vsyncadd (%p6336_p7), %s310_s7, 4294967232  ;;  %v370_v0 = vld [vmem:[%s5041_s17 + $0x8] sm:$0xff]  ;;  %v372_v2 = vld [vmem:[%s5041_s17 + $0x18] sm:$0xff]  ;;  %s2868_s27 = sshll.u32 %s5037_s11, 5  ;;  %s2880_s29 = sshll.u32 %s4777_s21, 9 }
  0xa2   : > { %v374_v1 = vld [vmem:[%s5041_s17 + $0x28] sm:$0xff]  ;;  %v376_v4 = vld [vmem:[%s5041_s17 + $0x38] sm:$0xff]  ;;  %v369_v5 = vld [vmem:[%s5041_s17] sm:$0xff]  ;;  %s342_s15 = scalar_lea.vmem [#allocation10], %s2868_s27  ;;  %s349_s28 = scalar_lea.vmem [#allocation11], %s2868_s27 }
  0xa3   : > { %v2882_v3 = vpack.c.bf16 %v374_v1, %v370_v0  ;;  %v3138_v6 = vpack.c.bf16 %v376_v4, %v372_v2  ;;  %v373_v7 = vld [vmem:[%s5041_s17 + $0x20] sm:$0xff]  ;;  %v371_v8 = vld [vmem:[%s5041_s17 + $0x10] sm:$0xff]  ;;  %v1513_v10 = vand.u32 2147483647, %v369_v5  ;;  %v378_v13 = vld [vmem:[%s5041_s17 + $0x48] sm:$0xff]  ;;  %s2678_s24 = sshll.u32 %s342_s15, 4  ;;  %s6225_s1 = scalar_lea.hbm %s6307_s4, %s2880_s29  ;;  %s6227_s24 = int_to_ptr.vmem [resolvable:$true] %s2678_s24 }
  0xa4   : > { %v2884_v9 = vpack.c.bf16 %v373_v7, %v369_v5  ;;  %v1517_v11 = vand.u32 2147483647, %v373_v7  ;;  %v375_v12 = vld [vmem:[%s5041_s17 + $0x30] sm:$0xff]  ;;  %v1515_v15 = vand.u32 2147483647, %v371_v8  ;;  %v382_v17 = vld [vmem:[%s5041_s17 + $0x68] sm:$0xff]  ;;  %s6232_s16 = scalar_lea.hbm %s6308_s5, %s2880_s29 }
  0xa5   : > { %2883 = vmatprep.subr.bf16.mxu0 %v2882_v3  ;;  %3139 = vmatprep.subr.bf16.mxu1 %v3138_v6  ;;  %v3140_v14 = vpack.c.bf16 %v375_v12, %v371_v8  ;;  %v1519_v16 = vand.u32 2147483647, %v375_v12  ;;  %v380_v18 = vld [vmem:[%s5041_s17 + $0x58] sm:$0xff]  ;;  %v2886_v20 = vpack.c.bf16 %v382_v17, %v378_v13  ;;  %v377_v22 = vld [vmem:[%s5041_s17 + $0x40] sm:$0xff]  ;;  %v379_v27 = vld [vmem:[%s5041_s17 + $0x50] sm:$0xff]  ;;  %s2692_s9 = sshll.u32 %s349_s28, 4  ;;  %s6234_s9 = int_to_ptr.vmem [resolvable:$true] %s2692_s9 }
  0xa6   : > { %2885 = vmatpush1.bf16.msra.mxu0 %v2884_v9  ;;  %v5070_v19 = vpack.c.bf16 %v1517_v11, %v1513_v10  ;;  %v384_v21 = vld [vmem:[%s5041_s17 + $0x78] sm:$0xff]  ;;  %v381_v23 = vld [vmem:[%s5041_s17 + $0x60] sm:$0xff]  ;;  %v383_v28 = vld [vmem:[%s5041_s17 + $0x70] sm:$0xff]  ;;  %s2659_s25 = scalar_lea.sflag [#allocation4], %s5037_s11  ;;  %s4663_s12 = scalar_lea.vmem %s6227_s24, 512 }
  0xa7   : > { %3141 = vmatpush1.bf16.msra.mxu1 %v3140_v14  ;;  %v5075_v24 = vpack.c.bf16 %v1519_v16, %v1515_v15  ;;  %v3142_v25 = vpack.c.bf16 %v384_v21, %v380_v18  ;;  %v2888_v26 = vpack.c.bf16 %v381_v23, %v377_v22  ;;  %v386_v29 = vld [vmem:[%s5041_s17 + $0x88] sm:$0xff]  ;;  %2887 = vmatprep.subr.bf16.mxu0 %v2886_v20  ;;  %v388_v32 = vld [vmem:[%s5041_s17 + $0x98] sm:$0xff]  ;;  %v385_v36 = vld [vmem:[%s5041_s17 + $0x80] sm:$0xff]  ;;  %p4664_p0 = scmp.ne.s32.totalorder %s6227_s24, %s4663_s12  ;;  %p6344_p6 = scmp.ne.s32.totalorder %s6324_s30, 0 }
  0xa8   : > { %v3144_v30 = vpack.c.bf16 %v383_v28, %v379_v27  ;;  %v390_v31 = vld [vmem:[%s5041_s17 + $0xa8] sm:$0xff]  ;;  %v392_v33 = vld [vmem:[%s5041_s17 + $0xb8] sm:$0xff]  ;;  %v389_v37 = vld [vmem:[%s5041_s17 + $0xa0] sm:$0xff]  ;;  %s4794_s8 = smov [#allocation10]  }
  0xa9   : > { %3143 = vmatprep.subr.bf16.mxu1 %v3142_v25  ;;  %v2890_v34 = vpack.c.bf16 %v390_v31, %v386_v29  ;;  %v3146_v35 = vpack.c.bf16 %v392_v33, %v388_v32  ;;  %v387_v38 = vld [vmem:[%s5041_s17 + $0x90] sm:$0xff]  ;;  %v2892_v39 = vpack.c.bf16 %v389_v37, %v385_v36  ;;  %v394_v41 = vld [vmem:[%s5041_s17 + $0xc8] sm:$0xff]  ;;  %v396_v44 = vld [vmem:[%s5041_s17 + $0xd8] sm:$0xff]  ;;  %p4665_p2 = pnand %p4664_p0, %p6344_p6  ;;  %s4667_s26 = sshll.u32 %s4794_s8, 4  ;;  %s4668_s26 = int_to_ptr.vmem [resolvable:$false] %s4667_s26 }
  0xaa   : > { %2889 = vmatpush1.bf16.msra.mxu0 %v2888_v26  ;;  %v391_v40 = vld [vmem:[%s5041_s17 + $0xb0] sm:$0xff]  ;;  %v398_v43 = vld [vmem:[%s5041_s17 + $0xe8] sm:$0xff]  ;;  %v400_v46 = vld [vmem:[%s5041_s17 + $0xf8] sm:$0xff]  ;;  %p4670_p8 = scmp.lt.s32.totalorder %s6227_s24, %s4668_s26 }
  0xab   : > { %3145 = vmatpush1.bf16.msra.mxu1 %v3144_v30  ;;  %2891 = vmatprep.subr.bf16.mxu0 %v2890_v34  ;;  %v3148_v42 = vpack.c.bf16 %v391_v40, %v387_v38  ;;  %v2894_v45 = vpack.c.bf16 %v398_v43, %v394_v41  ;;  %v393_v47 = vld [vmem:[%s5041_s17 + $0xc0] sm:$0xff]  ;;  %v3150_v49 = vpack.c.bf16 %v400_v46, %v396_v44  ;;  %v395_v51 = vld [vmem:[%s5041_s17 + $0xd0] sm:$0xff]  ;;  %v402_v54 = vld [vmem:[%s5041_s17 + $0x108] sm:$0xff]  ;;  %p4666_p9 = pneg %p4665_p2 }
  0xac   : > { %3147 = vmatprep.subr.bf16.mxu1 %v3146_v35  ;;  %v397_v48 = vld [vmem:[%s5041_s17 + $0xe0] sm:$0xff]  ;;  %v399_v52 = vld [vmem:[%s5041_s17 + $0xf0] sm:$0xff]  ;;  %v406_v55 = vld [vmem:[%s5041_s17 + $0x128] sm:$0xff] }
  0xad   : > { %v2896_v50 = vpack.c.bf16 %v397_v48, %v393_v47  ;;  %v3152_v53 = vpack.c.bf16 %v399_v52, %v395_v51  ;;  %v2898_v56 = vpack.c.bf16 %v406_v55, %v402_v54  ;;  %v404_v57 = vld [vmem:[%s5041_s17 + $0x118] sm:$0xff]  ;;  %v401_v59 = vld [vmem:[%s5041_s17 + $0x100] sm:$0xff]  ;;  %v403_v62 = vld [vmem:[%s5041_s17 + $0x110] sm:$0xff] }
  0xae   : > { %2893 = vmatpush1.bf16.msra.mxu0 %v2892_v39  ;;  %v408_v58 = vld [vmem:[%s5041_s17 + $0x138] sm:$0xff]  ;;  %v405_v61 = vld [vmem:[%s5041_s17 + $0x120] sm:$0xff]  ;;  %v407_v63 = vld [vmem:[%s5041_s17 + $0x130] sm:$0xff] }
  0xaf   : > { %3149 = vmatpush1.bf16.msra.mxu1 %v3148_v42  ;;  %2895 = vmatprep.subr.bf16.mxu0 %v2894_v45  ;;  %v3154_v60 = vpack.c.bf16 %v408_v58, %v404_v57  ;;  %v2900_v0 = vpack.c.bf16 %v405_v61, %v401_v59  ;;  %v410_v1 = vld [vmem:[%s5041_s17 + $0x148] sm:$0xff]  ;;  %v3156_v3 = vpack.c.bf16 %v407_v63, %v403_v62  ;;  %v412_v5 = vld [vmem:[%s5041_s17 + $0x158] sm:$0xff]  ;;  %v409_v7 = vld [vmem:[%s5041_s17 + $0x140] sm:$0xff] }
  0xb0   : > { %3151 = vmatprep.subr.bf16.mxu1 %v3150_v49  ;;  %v414_v2 = vld [vmem:[%s5041_s17 + $0x168] sm:$0xff]  ;;  %v416_v6 = vld [vmem:[%s5041_s17 + $0x178] sm:$0xff]  ;;  %v413_v9 = vld [vmem:[%s5041_s17 + $0x160] sm:$0xff] }
  0xb1   : > { %v2902_v4 = vpack.c.bf16 %v414_v2, %v410_v1  ;;  %v3158_v8 = vpack.c.bf16 %v416_v6, %v412_v5  ;;  %v411_v10 = vld [vmem:[%s5041_s17 + $0x150] sm:$0xff]  ;;  %v418_v12 = vld [vmem:[%s5041_s17 + $0x188] sm:$0xff]  ;;  %v2904_v14 = vpack.c.bf16 %v413_v9, %v409_v7  ;;  %v420_v15 = vld [vmem:[%s5041_s17 + $0x198] sm:$0xff] }
  0xb2   : > { %2897 = vmatpush1.bf16.msra.mxu0 %v2896_v50  ;;  %v415_v11 = vld [vmem:[%s5041_s17 + $0x170] sm:$0xff]  ;;  %v422_v13 = vld [vmem:[%s5041_s17 + $0x1a8] sm:$0xff]  ;;  %v424_v16 = vld [vmem:[%s5041_s17 + $0x1b8] sm:$0xff] }
  0xb3   : > { %3153 = vmatpush1.bf16.msra.mxu1 %v3152_v53  ;;  %2899 = vmatprep.subr.bf16.mxu0 %v2898_v56  ;;  %v3160_v17 = vpack.c.bf16 %v415_v11, %v411_v10  ;;  %v2906_v18 = vpack.c.bf16 %v422_v13, %v418_v12  ;;  %v417_v20 = vld [vmem:[%s5041_s17 + $0x180] sm:$0xff]  ;;  %v419_v22 = vld [vmem:[%s5041_s17 + $0x190] sm:$0xff]  ;;  %v3162_v23 = vpack.c.bf16 %v424_v16, %v420_v15  ;;  %v426_v26 = vld [vmem:[%s5041_s17 + $0x1c8] sm:$0xff] }
  0xb4   : > { %3155 = vmatprep.subr.bf16.mxu1 %v3154_v60  ;;  %v421_v21 = vld [vmem:[%s5041_s17 + $0x1a0] sm:$0xff]  ;;  %v423_v25 = vld [vmem:[%s5041_s17 + $0x1b0] sm:$0xff]  ;;  %v430_v27 = vld [vmem:[%s5041_s17 + $0x1e8] sm:$0xff] }
  0xb5   : > { %v428_v28 = vld [vmem:[%s5041_s17 + $0x1d8] sm:$0xff]  ;;  %v2908_v30 = vpack.c.bf16 %v421_v21, %v417_v20  ;;  %v3164_v31 = vpack.c.bf16 %v423_v25, %v419_v22  ;;  %v2910_v32 = vpack.c.bf16 %v430_v27, %v426_v26  ;;  %v425_v33 = vld [vmem:[%s5041_s17 + $0x1c0] sm:$0xff]  ;;  %v427_v35 = vld [vmem:[%s5041_s17 + $0x1d0] sm:$0xff] }
  0xb6   : > { %2901 = vmatpush1.bf16.msra.mxu0 %v2900_v0  ;;  %v432_v29 = vld [vmem:[%s5041_s17 + $0x1f8] sm:$0xff]  ;;  %v429_v34 = vld [vmem:[%s5041_s17 + $0x1e0] sm:$0xff]  ;;  %v431_v37 = vld [vmem:[%s5041_s17 + $0x1f0] sm:$0xff] }
  0xb7   : > { %3157 = vmatpush1.bf16.msra.mxu1 %v3156_v3  ;;  %2903 = vmatprep.subr.bf16.mxu0 %v2902_v4  ;;  %v3166_v36 = vpack.c.bf16 %v432_v29, %v428_v28  ;;  %v434_v38 = vld [vmem:[%s5041_s17 + $0x208] sm:$0xff]  ;;  %v436_v40 = vld [vmem:[%s5041_s17 + $0x218] sm:$0xff]  ;;  %v2912_v42 = vpack.c.bf16 %v429_v34, %v425_v33  ;;  %v3168_v43 = vpack.c.bf16 %v431_v37, %v427_v35  ;;  %v433_v45 = vld [vmem:[%s5041_s17 + $0x200] sm:$0xff] }
  0xb8   : > { %3159 = vmatprep.subr.bf16.mxu1 %v3158_v8  ;;  %v438_v39 = vld [vmem:[%s5041_s17 + $0x228] sm:$0xff]  ;;  %v440_v41 = vld [vmem:[%s5041_s17 + $0x238] sm:$0xff]  ;;  %v437_v46 = vld [vmem:[%s5041_s17 + $0x220] sm:$0xff] }
  0xb9   : > { %v2914_v44 = vpack.c.bf16 %v438_v39, %v434_v38  ;;  %v435_v47 = vld [vmem:[%s5041_s17 + $0x210] sm:$0xff]  ;;  %v3170_v48 = vpack.c.bf16 %v440_v41, %v436_v40  ;;  %v442_v50 = vld [vmem:[%s5041_s17 + $0x248] sm:$0xff]  ;;  %v444_v52 = vld [vmem:[%s5041_s17 + $0x258] sm:$0xff]  ;;  %v2916_v54 = vpack.c.bf16 %v437_v46, %v433_v45 }
  0xba   : > { %2905 = vmatpush1.bf16.msra.mxu0 %v2904_v14  ;;  %v439_v49 = vld [vmem:[%s5041_s17 + $0x230] sm:$0xff]  ;;  %v446_v51 = vld [vmem:[%s5041_s17 + $0x268] sm:$0xff]  ;;  %v448_v53 = vld [vmem:[%s5041_s17 + $0x278] sm:$0xff] }
  0xbb   : > { %3161 = vmatpush1.bf16.msra.mxu1 %v3160_v17  ;;  %2907 = vmatprep.subr.bf16.mxu0 %v2906_v18  ;;  %v3172_v55 = vpack.c.bf16 %v439_v49, %v435_v47  ;;  %v2918_v56 = vpack.c.bf16 %v446_v51, %v442_v50  ;;  %v441_v57 = vld [vmem:[%s5041_s17 + $0x240] sm:$0xff]  ;;  %v443_v59 = vld [vmem:[%s5041_s17 + $0x250] sm:$0xff]  ;;  %v3174_v60 = vpack.c.bf16 %v448_v53, %v444_v52  ;;  %v450_v62 = vld [vmem:[%s5041_s17 + $0x288] sm:$0xff] }
  0xbc   : > { %3163 = vmatprep.subr.bf16.mxu1 %v3162_v23  ;;  %v445_v58 = vld [vmem:[%s5041_s17 + $0x260] sm:$0xff]  ;;  %v447_v61 = vld [vmem:[%s5041_s17 + $0x270] sm:$0xff]  ;;  %v454_v63 = vld [vmem:[%s5041_s17 + $0x2a8] sm:$0xff] }
  0xbd   : > { %v452_v0 = vld [vmem:[%s5041_s17 + $0x298] sm:$0xff]  ;;  %v2920_v2 = vpack.c.bf16 %v445_v58, %v441_v57  ;;  %v3176_v3 = vpack.c.bf16 %v447_v61, %v443_v59  ;;  %v2922_v4 = vpack.c.bf16 %v454_v63, %v450_v62  ;;  %v449_v5 = vld [vmem:[%s5041_s17 + $0x280] sm:$0xff]  ;;  %v451_v7 = vld [vmem:[%s5041_s17 + $0x290] sm:$0xff] }
  0xbe   : > { %2909 = vmatpush1.bf16.msra.mxu0 %v2908_v30  ;;  %v456_v1 = vld [vmem:[%s5041_s17 + $0x2b8] sm:$0xff]  ;;  %v453_v6 = vld [vmem:[%s5041_s17 + $0x2a0] sm:$0xff]  ;;  %v455_v9 = vld [vmem:[%s5041_s17 + $0x2b0] sm:$0xff] }
  0xbf   : > { %3165 = vmatpush1.bf16.msra.mxu1 %v3164_v31  ;;  %2911 = vmatprep.subr.bf16.mxu0 %v2910_v32  ;;  %v3178_v8 = vpack.c.bf16 %v456_v1, %v452_v0  ;;  %v458_v10 = vld [vmem:[%s5041_s17 + $0x2c8] sm:$0xff]  ;;  %v460_v12 = vld [vmem:[%s5041_s17 + $0x2d8] sm:$0xff]  ;;  %v2924_v14 = vpack.c.bf16 %v453_v6, %v449_v5  ;;  %v3180_v15 = vpack.c.bf16 %v455_v9, %v451_v7  ;;  %v457_v17 = vld [vmem:[%s5041_s17 + $0x2c0] sm:$0xff] }
  0xc0   : > { %3167 = vmatprep.subr.bf16.mxu1 %v3166_v36  ;;  %v462_v11 = vld [vmem:[%s5041_s17 + $0x2e8] sm:$0xff]  ;;  %v464_v13 = vld [vmem:[%s5041_s17 + $0x2f8] sm:$0xff]  ;;  %v461_v18 = vld [vmem:[%s5041_s17 + $0x2e0] sm:$0xff] }
  0xc1   : > { %v2926_v16 = vpack.c.bf16 %v462_v11, %v458_v10  ;;  %v459_v20 = vld [vmem:[%s5041_s17 + $0x2d0] sm:$0xff]  ;;  %v3182_v21 = vpack.c.bf16 %v464_v13, %v460_v12  ;;  %v466_v23 = vld [vmem:[%s5041_s17 + $0x308] sm:$0xff]  ;;  %v468_v26 = vld [vmem:[%s5041_s17 + $0x318] sm:$0xff]  ;;  %v2928_v28 = vpack.c.bf16 %v461_v18, %v457_v17 }
  0xc2   : > { %2913 = vmatpush1.bf16.msra.mxu0 %v2912_v42  ;;  %v463_v22 = vld [vmem:[%s5041_s17 + $0x2f0] sm:$0xff]  ;;  %v470_v25 = vld [vmem:[%s5041_s17 + $0x328] sm:$0xff]  ;;  %v472_v27 = vld [vmem:[%s5041_s17 + $0x338] sm:$0xff] }
  0xc3   : > { %3169 = vmatpush1.bf16.msra.mxu1 %v3168_v43  ;;  %2915 = vmatprep.subr.bf16.mxu0 %v2914_v44  ;;  %v3184_v29 = vpack.c.bf16 %v463_v22, %v459_v20  ;;  %v2930_v30 = vpack.c.bf16 %v470_v25, %v466_v23  ;;  %v465_v31 = vld [vmem:[%s5041_s17 + $0x300] sm:$0xff]  ;;  %v467_v33 = vld [vmem:[%s5041_s17 + $0x310] sm:$0xff]  ;;  %v3186_v34 = vpack.c.bf16 %v472_v27, %v468_v26  ;;  %v474_v36 = vld [vmem:[%s5041_s17 + $0x348] sm:$0xff] }
  0xc4   : > { %3171 = vmatprep.subr.bf16.mxu1 %v3170_v48  ;;  %v469_v32 = vld [vmem:[%s5041_s17 + $0x320] sm:$0xff]  ;;  %v471_v35 = vld [vmem:[%s5041_s17 + $0x330] sm:$0xff]  ;;  %v478_v37 = vld [vmem:[%s5041_s17 + $0x368] sm:$0xff] }
  0xc5   : > { %v476_v38 = vld [vmem:[%s5041_s17 + $0x358] sm:$0xff]  ;;  %v2932_v40 = vpack.c.bf16 %v469_v32, %v465_v31  ;;  %v473_v41 = vld [vmem:[%s5041_s17 + $0x340] sm:$0xff]  ;;  %v475_v43 = vld [vmem:[%s5041_s17 + $0x350] sm:$0xff]  ;;  %v3188_v44 = vpack.c.bf16 %v471_v35, %v467_v33  ;;  %v2934_v45 = vpack.c.bf16 %v478_v37, %v474_v36 }
  0xc6   : > { %2917 = vmatpush1.bf16.msra.mxu0 %v2916_v54  ;;  %v480_v39 = vld [vmem:[%s5041_s17 + $0x378] sm:$0xff]  ;;  %v477_v42 = vld [vmem:[%s5041_s17 + $0x360] sm:$0xff]  ;;  %v479_v46 = vld [vmem:[%s5041_s17 + $0x370] sm:$0xff] }
  0xc7   : > { %3173 = vmatpush1.bf16.msra.mxu1 %v3172_v55  ;;  %2919 = vmatprep.subr.bf16.mxu0 %v2918_v56  ;;  %v5175_v47 = vld [vmem:[#allocation5 + $0x8] sm:$0xff]  ;;  %v3190_v49 = vpack.c.bf16 %v480_v39, %v476_v38  ;;  %v484_v52 = vld [vmem:[%s5041_s17 + $0x398] sm:$0xff]  ;;  %v5187_v56 = vld [vmem:[#allocation5] sm:$0xff]  ;;  %v2936_v58 = vpack.c.bf16 %v477_v42, %v473_v41  ;;  %v3192_v61 = vpack.c.bf16 %v479_v46, %v475_v43 }
  0xc8   : > { %3175 = vmatprep.subr.bf16.mxu1 %v3174_v60  ;;  %v5177_v48 = vld [vmem:[#allocation7 + $0x8] sm:$0xff]  ;;  %v488_v55 = vld [vmem:[%s5041_s17 + $0x3b8] sm:$0xff]  ;;  %6338 = vst [vmem:[#allocation20_spill] sm:$0xff] %v5187_v56  ;;  %v5189_v57 = vld [vmem:[#allocation7] sm:$0xff] }
  0xc9   : > { %v482_v50 = vld [vmem:[%s5041_s17 + $0x388] sm:$0xff]  ;;  %v898_v53 = vadd.f32 %v5177_v48, %v5175_v47  ;;  %6339 = vst [vmem:[#allocation21_spill] sm:$0xff] %v5189_v57  ;;  %v481_v63 = vld [vmem:[%s5041_s17 + $0x380] sm:$0xff]  ;;  %v483_v1 = vld [vmem:[%s5041_s17 + $0x390] sm:$0xff] }
  0xca   : > { %2921 = vmatpush1.bf16.msra.mxu0 %v2920_v2  ;;  %v486_v51 = vld [vmem:[%s5041_s17 + $0x3a8] sm:$0xff]  ;;  %v485_v0 = vld [vmem:[%s5041_s17 + $0x3a0] sm:$0xff]  ;;  %v3194_v2 = vpack.c.bf16 %v488_v55, %v484_v52  ;;  %v492_v6 = vld [vmem:[%s5041_s17 + $0x3d8] sm:$0xff] }
  0xcb   : > { %3177 = vmatpush1.bf16.msra.mxu1 %v3176_v3  ;;  %2923 = vmatprep.subr.bf16.mxu0 %v2922_v4  ;;  %v906_v59 = vmul.f32 0.5, %v898_v53  ;;  %v2938_v62 = vpack.c.bf16 %v486_v51, %v482_v50  ;;  %v487_v3 = vld [vmem:[%s5041_s17 + $0x3b0] sm:$0xff]  ;;  %v490_v4 = vld [vmem:[%s5041_s17 + $0x3c8] sm:$0xff]  ;;  %v496_v7 = vld [vmem:[%s5041_s17 + $0x3f8] sm:$0xff] }
  0xcc   : > { %3179 = vmatprep.subr.bf16.mxu1 %v3178_v8  ;;  %v494_v5 = vld [vmem:[%s5041_s17 + $0x3e8] sm:$0xff]  ;;  %v2940_v8 = vpack.c.bf16 %v485_v0, %v481_v63  ;;  %v3196_v9 = vpack.c.bf16 %v487_v3, %v483_v1  ;;  %v489_v11 = vld [vmem:[%s5041_s17 + $0x3c0] sm:$0xff]  ;;  %v491_v13 = vld [vmem:[%s5041_s17 + $0x3d0] sm:$0xff] }
  0xcd   : > { %997 = vmatprep.mubr.f32.mxu0 %v906_v59  ;;  %1281 = vmatprep.mubr.f32.mxu1 %v906_v59  ;;  %v2942_v10 = vpack.c.bf16 %v494_v5, %v490_v4  ;;  %v493_v12 = vld [vmem:[%s5041_s17 + $0x3e0] sm:$0xff]  ;;  %v502_v17 = vld [vmem:[%s5041_s17 + $0x428] sm:$0xff]  ;;  %v500_v18 = vld [vmem:[%s5041_s17 + $0x418] sm:$0xff] }
  0xce   : > { %2925 = vmatpush1.bf16.msra.mxu0 %v2924_v14  ;;  %v3198_v14 = vpack.c.bf16 %v496_v7, %v492_v6  ;;  %v504_v20 = vld [vmem:[%s5041_s17 + $0x438] sm:$0xff]  ;;  %v2944_v22 = vpack.c.bf16 %v493_v12, %v489_v11  ;;  %v497_v26 = vld [vmem:[%s5041_s17 + $0x400] sm:$0xff]  ;;  %v506_v31 = vld [vmem:[%s5041_s17 + $0x448] sm:$0xff] }
  0xcf   : > { %3181 = vmatpush1.bf16.msra.mxu1 %v3180_v15  ;;  %2927 = vmatprep.subr.bf16.mxu0 %v2926_v16  ;;  %v495_v15 = vld [vmem:[%s5041_s17 + $0x3f0] sm:$0xff]  ;;  %v498_v16 = vld [vmem:[%s5041_s17 + $0x408] sm:$0xff]  ;;  %v501_v27 = vld [vmem:[%s5041_s17 + $0x420] sm:$0xff] }
  0xd0   : > { %3183 = vmatprep.subr.bf16.mxu1 %v3182_v21  ;;  %v897_v21 = vadd.f32 %v5189_v57, %v5187_v56  ;;  %v3200_v23 = vpack.c.bf16 %v495_v15, %v491_v13  ;;  %v2946_v25 = vpack.c.bf16 %v502_v17, %v498_v16  ;;  %v510_v32 = vld [vmem:[%s5041_s17 + $0x468] sm:$0xff]  ;;  %v512_v35 = vld [vmem:[%s5041_s17 + $0x478] sm:$0xff]  ;;  %v2948_v36 = vpack.c.bf16 %v501_v27, %v497_v26  ;;  %v505_v39 = vld [vmem:[%s5041_s17 + $0x440] sm:$0xff] }
  0xd1   : > { %v2950_v38 = vpack.c.bf16 %v510_v32, %v506_v31  ;;  %v507_v41 = vld [vmem:[%s5041_s17 + $0x450] sm:$0xff]  ;;  %v516_v46 = vld [vmem:[%s5041_s17 + $0x498] sm:$0xff]  ;;  %v513_v53 = vld [vmem:[%s5041_s17 + $0x480] sm:$0xff] }
  0xd2   : > { %2929 = vmatpush1.bf16.msra.mxu0 %v2928_v28  ;;  %v499_v28 = vld [vmem:[%s5041_s17 + $0x410] sm:$0xff]  ;;  %v905_v33 = vmul.f32 0.5, %v897_v21  ;;  %v517_v55 = vld [vmem:[%s5041_s17 + $0x4a0] sm:$0xff]  ;;  %v526_v63 = vld [vmem:[%s5041_s17 + $0x4e8] sm:$0xff] }
  0xd3   : > { %3185 = vmatpush1.bf16.msra.mxu1 %v3184_v29  ;;  %2931 = vmatprep.subr.bf16.mxu0 %v2930_v30  ;;  %v3202_v29 = vpack.c.bf16 %v504_v20, %v500_v18  ;;  %v503_v30 = vld [vmem:[%s5041_s17 + $0x430] sm:$0xff]  ;;  %v524_v0 = vld [vmem:[%s5041_s17 + $0x4d8] sm:$0xff]  ;;  %v521_v5 = vld [vmem:[%s5041_s17 + $0x4c0] sm:$0xff] }
  0xd4   : > { %3187 = vmatprep.subr.bf16.mxu1 %v3186_v34  ;;  %v508_v34 = vld [vmem:[%s5041_s17 + $0x458] sm:$0xff]  ;;  %v3204_v37 = vpack.c.bf16 %v503_v30, %v499_v28  ;;  %v511_v43 = vld [vmem:[%s5041_s17 + $0x470] sm:$0xff]  ;;  %v525_v6 = vld [vmem:[%s5041_s17 + $0x4e0] sm:$0xff] }
  0xd5   : > { %v3206_v42 = vpack.c.bf16 %v512_v35, %v508_v34  ;;  %v3208_v51 = vpack.c.bf16 %v511_v43, %v507_v41  ;;  %v528_v1 = vld [vmem:[%s5041_s17 + $0x4f8] sm:$0xff]  ;;  %v523_v7 = vld [vmem:[%s5041_s17 + $0x4d0] sm:$0xff]  ;;  %v534_v11 = vld [vmem:[%s5041_s17 + $0x528] sm:$0xff] }
  0xd6   : > { %2933 = vmatpush1.bf16.msra.mxu0 %v2932_v40  ;;  %v509_v40 = vld [vmem:[%s5041_s17 + $0x460] sm:$0xff]  ;;  %v532_v12 = vld [vmem:[%s5041_s17 + $0x518] sm:$0xff]  ;;  %v531_v20 = vld [vmem:[%s5041_s17 + $0x510] sm:$0xff] }
  0xd7   : > { %3189 = vmatpush1.bf16.msra.mxu1 %v3188_v44  ;;  %2935 = vmatprep.subr.bf16.mxu0 %v2934_v45  ;;  %v514_v44 = vld [vmem:[%s5041_s17 + $0x488] sm:$0xff]  ;;  %v2952_v50 = vpack.c.bf16 %v509_v40, %v505_v39  ;;  %v536_v13 = vld [vmem:[%s5041_s17 + $0x538] sm:$0xff]  ;;  %v529_v17 = vld [vmem:[%s5041_s17 + $0x500] sm:$0xff] }
  0xd8   : > { %3191 = vmatprep.subr.bf16.mxu1 %v3190_v49  ;;  %v518_v45 = vld [vmem:[%s5041_s17 + $0x4a8] sm:$0xff]  ;;  %v520_v49 = vld [vmem:[%s5041_s17 + $0x4b8] sm:$0xff]  ;;  %v533_v18 = vld [vmem:[%s5041_s17 + $0x520] sm:$0xff]  ;;  %v3218_v21 = vpack.c.bf16 %v536_v13, %v532_v12 }
  0xd9   : > { %v2954_v52 = vpack.c.bf16 %v518_v45, %v514_v44  ;;  %v3210_v59 = vpack.c.bf16 %v520_v49, %v516_v46  ;;  %v540_v26 = vld [vmem:[%s5041_s17 + $0x558] sm:$0xff]  ;;  %v2964_v28 = vpack.c.bf16 %v533_v18, %v529_v17  ;;  %v537_v31 = vld [vmem:[%s5041_s17 + $0x540] sm:$0xff]  ;;  %v543_v35 = vld [vmem:[%s5041_s17 + $0x570] sm:$0xff] }
  0xda   : > { %2937 = vmatpush1.bf16.msra.mxu0 %v2936_v58  ;;  %v515_v58 = vld [vmem:[%s5041_s17 + $0x490] sm:$0xff]  ;;  %v544_v27 = vld [vmem:[%s5041_s17 + $0x578] sm:$0xff]  ;;  %v541_v32 = vld [vmem:[%s5041_s17 + $0x560] sm:$0xff] }
  0xdb   : > { %3193 = vmatpush1.bf16.msra.mxu1 %v3192_v61  ;;  %2939 = vmatprep.subr.bf16.mxu0 %v2938_v62  ;;  %v519_v61 = vld [vmem:[%s5041_s17 + $0x4b0] sm:$0xff]  ;;  %v522_v62 = vld [vmem:[%s5041_s17 + $0x4c8] sm:$0xff]  ;;  %v3222_v34 = vpack.c.bf16 %v544_v27, %v540_v26  ;;  %v552_v39 = vld [vmem:[%s5041_s17 + $0x5b8] sm:$0xff]  ;;  %v2968_v40 = vpack.c.bf16 %v541_v32, %v537_v31 }
  0xdc   : > { %3195 = vmatprep.subr.bf16.mxu1 %v3194_v2  ;;  %v2956_v2 = vpack.c.bf16 %v517_v55, %v513_v53  ;;  %v3212_v3 = vpack.c.bf16 %v519_v61, %v515_v58  ;;  %v2958_v4 = vpack.c.bf16 %v526_v63, %v522_v62  ;;  %v545_v43 = vld [vmem:[%s5041_s17 + $0x580] sm:$0xff]  ;;  %v547_v45 = vld [vmem:[%s5041_s17 + $0x590] sm:$0xff]  ;;  %v560_v53 = vld [vmem:[%s5041_s17 + $0x5f8] sm:$0xff] }
  0xdd   : > { %v549_v44 = vld [vmem:[%s5041_s17 + $0x5a0] sm:$0xff]  ;;  %v551_v49 = vld [vmem:[%s5041_s17 + $0x5b0] sm:$0xff]  ;;  %v884_v12 = vld [vmem:[#allocation5 + $0x18] sm:$0xff] }
  0xde   : > { %2941 = vmatpush1.bf16.msra.mxu0 %v2940_v8  ;;  %v3214_v8 = vpack.c.bf16 %v528_v1, %v524_v0  ;;  %v2972_v55 = vpack.c.bf16 %v549_v44, %v545_v43  ;;  %v3228_v58 = vpack.c.bf16 %v551_v49, %v547_v45  ;;  %v553_v61 = vld [vmem:[%s5041_s17 + $0x5c0] sm:$0xff]  ;;  %v555_v63 = vld [vmem:[%s5041_s17 + $0x5d0] sm:$0xff]  ;;  %v892_v13 = vld [vmem:[#allocation7 + $0x18] sm:$0xff] }
  0xdf   : > { %3197 = vmatpush1.bf16.msra.mxu1 %v3196_v9  ;;  %2943 = vmatprep.subr.bf16.mxu0 %v2942_v10  ;;  %v527_v9 = vld [vmem:[%s5041_s17 + $0x4f0] sm:$0xff]  ;;  %v530_v10 = vld [vmem:[%s5041_s17 + $0x508] sm:$0xff]  ;;  %v557_v62 = vld [vmem:[%s5041_s17 + $0x5e0] sm:$0xff]  ;;  %v900_v18 = vadd.f32 %v892_v13, %v884_v12 }
  0xe0   : > { %3199 = vmatprep.subr.bf16.mxu1 %v3198_v14  ;;  %v2960_v14 = vpack.c.bf16 %v525_v6, %v521_v5  ;;  %v3216_v15 = vpack.c.bf16 %v527_v9, %v523_v7  ;;  %v2962_v16 = vpack.c.bf16 %v534_v11, %v530_v10  ;;  %v559_v1 = vld [vmem:[%s5041_s17 + $0x5f0] sm:$0xff]  ;;  %v568_v5 = vld [vmem:[%s5041_s17 + $0x638] sm:$0xff]  ;;  %v2976_v6 = vpack.c.bf16 %v557_v62, %v553_v61  ;;  %v561_v7 = vld [vmem:[%s5041_s17 + $0x600] sm:$0xff] }
  0xe1   : > { %v3232_v9 = vpack.c.bf16 %v559_v1, %v555_v63  ;;  %v563_v11 = vld [vmem:[%s5041_s17 + $0x610] sm:$0xff]  ;;  %v574_v17 = vld [vmem:[%s5041_s17 + $0x668] sm:$0xff]  ;;  %v569_v27 = vld [vmem:[%s5041_s17 + $0x640] sm:$0xff] }
  0xe2   : > { %2945 = vmatpush1.bf16.msra.mxu0 %v2944_v22  ;;  %v535_v22 = vld [vmem:[%s5041_s17 + $0x530] sm:$0xff]  ;;  %v578_v32 = vld [vmem:[%s5041_s17 + $0x688] sm:$0xff]  ;;  %v592_v49 = vld [vmem:[%s5041_s17 + $0x6f8] sm:$0xff] }
  0xe3   : > { %3201 = vmatpush1.bf16.msra.mxu1 %v3200_v23  ;;  %2947 = vmatprep.subr.bf16.mxu0 %v2946_v25  ;;  %v538_v23 = vld [vmem:[%s5041_s17 + $0x548] sm:$0xff]  ;;  %v575_v31 = vld [vmem:[%s5041_s17 + $0x670] sm:$0xff]  ;;  %v600_v1 = vld [vmem:[%s5041_s17 + $0x738] sm:$0xff] }
  0xe4   : > { %3203 = vmatprep.subr.bf16.mxu1 %v3202_v29  ;;  %v542_v25 = vld [vmem:[%s5041_s17 + $0x568] sm:$0xff]  ;;  %v3220_v29 = vpack.c.bf16 %v535_v22, %v531_v20  ;;  %v572_v20 = vld [vmem:[%s5041_s17 + $0x658] sm:$0xff]  ;;  %v583_v43 = vld [vmem:[%s5041_s17 + $0x6b0] sm:$0xff] }
  0xe5   : > { %998 = vmatmul.mubr.f32.vlgmr.msra.gmra.mrb[0].mxu0 %v905_v33  ;;  %v2966_v30 = vpack.c.bf16 %v542_v25, %v538_v23  ;;  %v908_v23 = vmul.f32 0.5, %v900_v18  ;;  %v586_v44 = vld [vmem:[%s5041_s17 + $0x6c8] sm:$0xff]  ;;  %v591_v61 = vld [vmem:[%s5041_s17 + $0x6f0] sm:$0xff]  ;;  %v604_v12 = vld [vmem:[%s5041_s17 + $0x758] sm:$0xff] }
  0xe6   : > { %2949 = vmatpush1.bf16.msra.mxu0 %v2948_v36  ;;  %1282 = vmatmul.mubr.f32.vlgmr.msra.gmra.mrb[0].mxu1 %v905_v33  ;;  %v539_v33 = vld [vmem:[%s5041_s17 + $0x550] sm:$0xff]  ;;  %v546_v36 = vld [vmem:[%s5041_s17 + $0x588] sm:$0xff]  ;;  %v608_v13 = vld [vmem:[%s5041_s17 + $0x778] sm:$0xff] }
  0xe7   : > { %3205 = vmatpush1.bf16.msra.mxu1 %v3204_v37  ;;  %2951 = vmatprep.subr.bf16.mxu0 %v2950_v38  ;;  %v550_v37 = vld [vmem:[%s5041_s17 + $0x5a8] sm:$0xff]  ;;  %v548_v38 = vld [vmem:[%s5041_s17 + $0x598] sm:$0xff]  ;;  %v3224_v41 = vpack.c.bf16 %v543_v35, %v539_v33  ;;  %v605_v18 = vld [vmem:[%s5041_s17 + $0x760] sm:$0xff] }
  0xe8   : > { %3207 = vmatprep.subr.bf16.mxu1 %v3206_v42  ;;  %v2970_v42 = vpack.c.bf16 %v550_v37, %v546_v36  ;;  %v3226_v46 = vpack.c.bf16 %v552_v39, %v548_v38  ;;  %v582_v33 = vld [vmem:[%s5041_s17 + $0x6a8] sm:$0xff]  ;;  %1068 = vmatprep.mubr.f32.mxu0 %v908_v23  ;;  %v584_v35 = vld [vmem:[%s5041_s17 + $0x6b8] sm:$0xff]  ;;  %v577_v39 = vld [vmem:[%s5041_s17 + $0x680] sm:$0xff] }
  0xe9   : > { %1352 = vmatprep.mubr.f32.mxu1 %v908_v23  ;;  %v2986_v38 = vpack.c.bf16 %v582_v33, %v578_v32  ;;  %v590_v45 = vld [vmem:[%s5041_s17 + $0x6e8] sm:$0xff]  ;;  %v613_v32 = vld [vmem:[%s5041_s17 + $0x7a0] sm:$0xff]  ;;  %v611_v33 = vld [vmem:[%s5041_s17 + $0x790] sm:$0xff] }
  0xea   : > { %2953 = vmatpush1.bf16.msra.mxu0 %v2952_v50  ;;  %v554_v50 = vld [vmem:[%s5041_s17 + $0x5c8] sm:$0xff]  ;;  %v751_v60 = vld [vmem:[%s5041_s17 + $0xbf0] sm:$0xff]  ;;  %v756_v56 = vld [vmem:[%s5041_s17 + $0xc18] sm:$0xff] }
  0xeb   : > { %3209 = vmatpush1.bf16.msra.mxu1 %v3208_v51  ;;  %2955 = vmatprep.subr.bf16.mxu0 %v2954_v52  ;;  %v558_v51 = vld [vmem:[%s5041_s17 + $0x5e8] sm:$0xff]  ;;  %v556_v52 = vld [vmem:[%s5041_s17 + $0x5d8] sm:$0xff] }
  0xec   : > { %3211 = vmatprep.subr.bf16.mxu1 %v3210_v59  ;;  %v2974_v59 = vpack.c.bf16 %v558_v51, %v554_v50  ;;  %v3230_v0 = vpack.c.bf16 %v560_v53, %v556_v52  ;;  %v2990_v52 = vpack.c.bf16 %v590_v45, %v586_v44  ;;  %v585_v53 = vld [vmem:[%s5041_s17 + $0x6c0] sm:$0xff]  ;;  %v594_v62 = vld [vmem:[%s5041_s17 + $0x708] sm:$0xff] }
  0xed   : > { %v598_v63 = vld [vmem:[%s5041_s17 + $0x728] sm:$0xff]  ;;  %v617_v45 = vld [vmem:[%s5041_s17 + $0x7c0] sm:$0xff] }
  0xee   : > { %2957 = vmatpush1.bf16.msra.mxu0 %v2956_v2  ;;  %v562_v2 = vld [vmem:[%s5041_s17 + $0x608] sm:$0xff] }
  0xef   : > { %3213 = vmatpush1.bf16.msra.mxu1 %v3212_v3  ;;  %2959 = vmatprep.subr.bf16.mxu0 %v2958_v4  ;;  %v566_v3 = vld [vmem:[%s5041_s17 + $0x628] sm:$0xff]  ;;  %v564_v4 = vld [vmem:[%s5041_s17 + $0x618] sm:$0xff] }
  0xf0   : > { %3215 = vmatprep.subr.bf16.mxu1 %v3214_v8  ;;  %v565_v8 = vld [vmem:[%s5041_s17 + $0x620] sm:$0xff]  ;;  %v2978_v10 = vpack.c.bf16 %v566_v3, %v562_v2  ;;  %v610_v23 = vld [vmem:[%s5041_s17 + $0x788] sm:$0xff] }
  0xf1   : > { %v2980_v22 = vpack.c.bf16 %v565_v8, %v561_v7  ;;  %v595_v7 = vld [vmem:[%s5041_s17 + $0x710] sm:$0xff]  ;;  %v758_v54 = vld [vmem:[%s5041_s17 + $0xc28] sm:$0xff] }
  0xf2   : > { %2961 = vmatpush1.bf16.msra.mxu0 %v2960_v14  ;;  %v3234_v14 = vpack.c.bf16 %v568_v5, %v564_v4  ;;  %v2994_v4 = vpack.c.bf16 %v598_v63, %v594_v62  ;;  %v593_v5 = vld [vmem:[%s5041_s17 + $0x700] sm:$0xff]  ;;  %v4028_v63 = vld [vmem:[%s5041_s17 + $0x28] sm:$0xff] }
  0xf3   : > { %3217 = vmatpush1.bf16.msra.mxu1 %v3216_v15  ;;  %2963 = vmatprep.subr.bf16.mxu0 %v2962_v16  ;;  %v567_v15 = vld [vmem:[%s5041_s17 + $0x630] sm:$0xff]  ;;  %v570_v16 = vld [vmem:[%s5041_s17 + $0x648] sm:$0xff] }
  0xf4   : > { %3219 = vmatprep.subr.bf16.mxu1 %v3218_v21  ;;  %v576_v21 = vld [vmem:[%s5041_s17 + $0x678] sm:$0xff]  ;;  %v3236_v25 = vpack.c.bf16 %v567_v15, %v563_v11  ;;  %v2982_v26 = vpack.c.bf16 %v574_v17, %v570_v16  ;;  %v606_v11 = vld [vmem:[%s5041_s17 + $0x768] sm:$0xff]  ;;  %v601_v17 = vld [vmem:[%s5041_s17 + $0x740] sm:$0xff] }
  0xf6   : > { %2965 = vmatpush1.bf16.msra.mxu0 %v2964_v28  ;;  %v573_v28 = vld [vmem:[%s5041_s17 + $0x660] sm:$0xff] }
  0xf7   : > { %3221 = vmatpush1.bf16.msra.mxu1 %v3220_v29  ;;  %2967 = vmatprep.subr.bf16.mxu0 %v2966_v30  ;;  %v571_v29 = vld [vmem:[%s5041_s17 + $0x650] sm:$0xff]  ;;  %v3238_v30 = vpack.c.bf16 %v576_v21, %v572_v20  ;;  %v2984_v36 = vpack.c.bf16 %v573_v28, %v569_v27  ;;  %v3254_v21 = vpack.c.bf16 %v608_v13, %v604_v12  ;;  %v616_v27 = vld [vmem:[%s5041_s17 + $0x7b8] sm:$0xff]  ;;  %v634_v13 = vld [vmem:[%s5041_s17 + $0x848] sm:$0xff] }
  0xf8   : > { %3223 = vmatprep.subr.bf16.mxu1 %v3222_v34  ;;  %v580_v34 = vld [vmem:[%s5041_s17 + $0x698] sm:$0xff]  ;;  %v3240_v37 = vpack.c.bf16 %v575_v31, %v571_v29  ;;  %v603_v20 = vld [vmem:[%s5041_s17 + $0x750] sm:$0xff]  ;;  %v3000_v28 = vpack.c.bf16 %v605_v18, %v601_v17  ;;  %v609_v31 = vld [vmem:[%s5041_s17 + $0x780] sm:$0xff] }
  0xf9   : > { %v631_v12 = vld [vmem:[%s5041_s17 + $0x830] sm:$0xff]  ;;  %v640_v17 = vld [vmem:[%s5041_s17 + $0x878] sm:$0xff] }
  0xfa   : > { %2969 = vmatpush1.bf16.msra.mxu0 %v2968_v40  ;;  %v581_v40 = vld [vmem:[%s5041_s17 + $0x6a0] sm:$0xff] }
  0xfb   : > { %3225 = vmatpush1.bf16.msra.mxu1 %v3224_v41  ;;  %2971 = vmatprep.subr.bf16.mxu0 %v2970_v42  ;;  %v579_v41 = vld [vmem:[%s5041_s17 + $0x690] sm:$0xff]  ;;  %v3242_v42 = vpack.c.bf16 %v584_v35, %v580_v34  ;;  %v2988_v50 = vpack.c.bf16 %v581_v40, %v577_v39  ;;  %v624_v39 = vld [vmem:[%s5041_s17 + $0x7f8] sm:$0xff]  ;;  %v3004_v40 = vpack.c.bf16 %v613_v32, %v609_v31  ;;  %v642_v32 = vld [vmem:[%s5041_s17 + $0x888] sm:$0xff] }
  0xfc   : > { %3227 = vmatprep.subr.bf16.mxu1 %v3226_v46  ;;  %v588_v46 = vld [vmem:[%s5041_s17 + $0x6d8] sm:$0xff]  ;;  %v3244_v51 = vpack.c.bf16 %v583_v43, %v579_v41  ;;  %v615_v35 = vld [vmem:[%s5041_s17 + $0x7b0] sm:$0xff] }
  0xfd   : > { %v883_v41 = vld [vmem:[#allocation5 + $0x10] sm:$0xff]  ;;  %v3260_v43 = vpack.c.bf16 %v615_v35, %v611_v33  ;;  %v646_v33 = vld [vmem:[%s5041_s17 + $0x8a8] sm:$0xff] }
  0xfe   : > { %2973 = vmatpush1.bf16.msra.mxu0 %v2972_v55  ;;  %v589_v55 = vld [vmem:[%s5041_s17 + $0x6e0] sm:$0xff]  ;;  %v639_v31 = vld [vmem:[%s5041_s17 + $0x870] sm:$0xff] }
  0xff   : > { %3229 = vmatpush1.bf16.msra.mxu1 %v3228_v58  ;;  %2975 = vmatprep.subr.bf16.mxu0 %v2974_v59  ;;  %v587_v58 = vld [vmem:[%s5041_s17 + $0x6d0] sm:$0xff]  ;;  %v3246_v59 = vpack.c.bf16 %v592_v49, %v588_v46  ;;  %v2992_v2 = vpack.c.bf16 %v589_v55, %v585_v53  ;;  %v621_v46 = vld [vmem:[%s5041_s17 + $0x7e0] sm:$0xff]  ;;  %v630_v53 = vld [vmem:[%s5041_s17 + $0x828] sm:$0xff] }
 0x100   : > { %3231 = vmatprep.subr.bf16.mxu1 %v3230_v0  ;;  %v596_v0 = vld [vmem:[%s5041_s17 + $0x718] sm:$0xff]  ;;  %v3248_v3 = vpack.c.bf16 %v591_v61, %v587_v58  ;;  %v619_v49 = vld [vmem:[%s5041_s17 + $0x7d0] sm:$0xff]  ;;  %v4027_v61 = vld [vmem:[%s5041_s17 + $0x8] sm:$0xff] }
 0x101   : > { %v3250_v8 = vpack.c.bf16 %v600_v1, %v596_v0  ;;  %v628_v55 = vld [vmem:[%s5041_s17 + $0x818] sm:$0xff]  ;;  %v1514_v62 = vand.u32 2147483647, %v4027_v61  ;;  %v1518_v0 = vand.u32 2147483647, %v4028_v63  ;;  %v3008_v1 = vpack.c.bf16 %v621_v46, %v617_v45  ;;  %v654_v61 = vld [vmem:[%s5041_s17 + $0x8e8] sm:$0xff] }
 0x102   : > { %2977 = vmatpush1.bf16.msra.mxu0 %v2976_v6  ;;  %v597_v6 = vld [vmem:[%s5041_s17 + $0x720] sm:$0xff]  ;;  %v632_v58 = vld [vmem:[%s5041_s17 + $0x838] sm:$0xff]  ;;  %v3018_v46 = vpack.c.bf16 %v646_v33, %v642_v32  ;;  %v4037_v63 = vld [vmem:[%s5041_s17 + $0x90] sm:$0xff] }
 0x103   : > { %3233 = vmatpush1.bf16.msra.mxu1 %v3232_v9  ;;  %2979 = vmatprep.subr.bf16.mxu0 %v2978_v10  ;;  %v599_v9 = vld [vmem:[%s5041_s17 + $0x730] sm:$0xff]  ;;  %v602_v10 = vld [vmem:[%s5041_s17 + $0x748] sm:$0xff] }
 0x104   : > { %3235 = vmatprep.subr.bf16.mxu1 %v3234_v14  ;;  %v2996_v14 = vpack.c.bf16 %v597_v6, %v593_v5  ;;  %v3252_v15 = vpack.c.bf16 %v599_v9, %v595_v7  ;;  %v2998_v16 = vpack.c.bf16 %v606_v11, %v602_v10  ;;  %v625_v6 = vld [vmem:[%s5041_s17 + $0x800] sm:$0xff]  ;;  %v4030_v9 = vld [vmem:[%s5041_s17 + $0x38] sm:$0xff]  ;;  %v3266_v11 = vpack.c.bf16 %v632_v58, %v628_v55  ;;  %v647_v58 = vld [vmem:[%s5041_s17 + $0x8b0] sm:$0xff] }
 0x105   : > { %v629_v7 = vld [vmem:[%s5041_s17 + $0x820] sm:$0xff]  ;;  %v1520_v10 = vand.u32 2147483647, %v4030_v9 }
 0x106   : > { %2981 = vmatpush1.bf16.msra.mxu0 %v2980_v22  ;;  %v607_v22 = vld [vmem:[%s5041_s17 + $0x770] sm:$0xff]  ;;  %v3012_v18 = vpack.c.bf16 %v629_v7, %v625_v6  ;;  %v649_v7 = vld [vmem:[%s5041_s17 + $0x8c0] sm:$0xff] }
 0x107   : > { %3237 = vmatpush1.bf16.msra.mxu1 %v3236_v25  ;;  %2983 = vmatprep.subr.bf16.mxu0 %v2982_v26  ;;  %v614_v25 = vld [vmem:[%s5041_s17 + $0x7a8] sm:$0xff]  ;;  %v612_v26 = vld [vmem:[%s5041_s17 + $0x798] sm:$0xff]  ;;  %v3256_v29 = vpack.c.bf16 %v607_v22, %v603_v20  ;;  %v4031_v20 = vld [vmem:[%s5041_s17 + $0x40] sm:$0xff] }
 0x108   : > { %3239 = vmatprep.subr.bf16.mxu1 %v3238_v30  ;;  %v3002_v30 = vpack.c.bf16 %v614_v25, %v610_v23  ;;  %v3258_v34 = vpack.c.bf16 %v616_v27, %v612_v26  ;;  %v633_v25 = vld [vmem:[%s5041_s17 + $0x840] sm:$0xff]  ;;  %v635_v27 = vld [vmem:[%s5041_s17 + $0x850] sm:$0xff] }
 0x109   : > { %v637_v26 = vld [vmem:[%s5041_s17 + $0x860] sm:$0xff]  ;;  %v3272_v45 = vpack.c.bf16 %v639_v31, %v635_v27  ;;  %v664_v27 = vld [vmem:[%s5041_s17 + $0x938] sm:$0xff]  ;;  %v4042_v31 = vld [vmem:[%s5041_s17 + $0xf0] sm:$0xff] }
 0x10a   : > { %2985 = vmatpush1.bf16.msra.mxu0 %v2984_v36  ;;  %v618_v36 = vld [vmem:[%s5041_s17 + $0x7c8] sm:$0xff]  ;;  %v1543_v32 = vand.u32 2147483647, %v4042_v31 }
 0x10b   : > { %3241 = vmatpush1.bf16.msra.mxu1 %v3240_v37  ;;  %2987 = vmatprep.subr.bf16.mxu0 %v2986_v38  ;;  %v622_v37 = vld [vmem:[%s5041_s17 + $0x7e8] sm:$0xff]  ;;  %v620_v38 = vld [vmem:[%s5041_s17 + $0x7d8] sm:$0xff] }
 0x10c   : > { %3243 = vmatprep.subr.bf16.mxu1 %v3242_v42  ;;  %v891_v42 = vld [vmem:[#allocation7 + $0x10] sm:$0xff]  ;;  %v3006_v44 = vpack.c.bf16 %v622_v37, %v618_v36 }
 0x10d   : > { %v4033_v36 = vld [vmem:[%s5041_s17 + $0x50] sm:$0xff] }
 0x10e   : > { %2989 = vmatpush1.bf16.msra.mxu0 %v2988_v50  ;;  %v3262_v50 = vpack.c.bf16 %v624_v39, %v620_v38  ;;  %v1523_v37 = vand.u32 2147483647, %v4033_v36  ;;  %v4034_v38 = vld [vmem:[%s5041_s17 + $0x70] sm:$0xff] }
 0x10f   : > { %3245 = vmatpush1.bf16.msra.mxu1 %v3244_v51  ;;  %2991 = vmatprep.subr.bf16.mxu0 %v2990_v52  ;;  %v623_v51 = vld [vmem:[%s5041_s17 + $0x7f0] sm:$0xff]  ;;  %v626_v52 = vld [vmem:[%s5041_s17 + $0x808] sm:$0xff]  ;;  %v1527_v39 = vand.u32 2147483647, %v4034_v38 }
 0x110   : > { %3247 = vmatprep.subr.bf16.mxu1 %v3246_v59  ;;  %v899_v59 = vadd.f32 %v891_v42, %v883_v41  ;;  %v3010_v5 = vpack.c.bf16 %v630_v53, %v626_v52  ;;  %v648_v41 = vld [vmem:[%s5041_s17 + $0x8b8] sm:$0xff]  ;;  %v3016_v42 = vpack.c.bf16 %v637_v26, %v633_v25  ;;  %v4036_v52 = vld [vmem:[%s5041_s17 + $0xa0] sm:$0xff] }
 0x111   : > { %v1533_v53 = vand.u32 2147483647, %v4036_v52  ;;  %v660_v26 = vld [vmem:[%s5041_s17 + $0x918] sm:$0xff]  ;;  %v4045_v52 = vld [vmem:[%s5041_s17 + $0x110] sm:$0xff] }
 0x112   : > { %2993 = vmatpush1.bf16.msra.mxu0 %v2992_v2  ;;  %v4029_v2 = vld [vmem:[%s5041_s17 + $0x18] sm:$0xff] }
 0x113   : > { %3249 = vmatpush1.bf16.msra.mxu1 %v3248_v3  ;;  %2995 = vmatprep.subr.bf16.mxu0 %v2994_v4  ;;  %v1516_v3 = vand.u32 2147483647, %v4029_v2  ;;  %v3264_v4 = vpack.c.bf16 %v623_v51, %v619_v49  ;;  %v641_v49 = vld [vmem:[%s5041_s17 + $0x880] sm:$0xff]  ;;  %v643_v51 = vld [vmem:[%s5041_s17 + $0x890] sm:$0xff] }
 0x114   : > { %3251 = vmatprep.subr.bf16.mxu1 %v3250_v8  ;;  %v627_v8 = vld [vmem:[%s5041_s17 + $0x810] sm:$0xff]  ;;  %v3276_v9 = vpack.c.bf16 %v647_v58, %v643_v51  ;;  %v670_v51 = vld [vmem:[%s5041_s17 + $0x968] sm:$0xff] }
 0x115   : > { %v3268_v22 = vpack.c.bf16 %v631_v12, %v627_v8  ;;  %v5361_v35 = vpack.c.bf16 %v1520_v10, %v1516_v3  ;;  %v652_v3 = vld [vmem:[%s5041_s17 + $0x8d8] sm:$0xff]  ;;  %v653_v8 = vld [vmem:[%s5041_s17 + $0x8e0] sm:$0xff]  ;;  %v886_v12 = vld [vmem:[#allocation5 + $0x28] sm:$0xff] }
 0x116   : > { %2997 = vmatpush1.bf16.msra.mxu0 %v2996_v14  ;;  %v638_v14 = vld [vmem:[%s5041_s17 + $0x868] sm:$0xff]  ;;  %v3024_v33 = vpack.c.bf16 %v653_v8, %v649_v7  ;;  %v665_v7 = vld [vmem:[%s5041_s17 + $0x940] sm:$0xff] }
 0x117   : > { %3253 = vmatpush1.bf16.msra.mxu1 %v3252_v15  ;;  %2999 = vmatprep.subr.bf16.mxu0 %v2998_v16  ;;  %v907_v15 = vmul.f32 0.5, %v899_v59  ;;  %v636_v16 = vld [vmem:[%s5041_s17 + $0x858] sm:$0xff]  ;;  %v3014_v23 = vpack.c.bf16 %v638_v14, %v634_v13  ;;  %v650_v59 = vld [vmem:[%s5041_s17 + $0x8c8] sm:$0xff]  ;;  %v669_v8 = vld [vmem:[%s5041_s17 + $0x960] sm:$0xff] }
 0x118   : > { %3255 = vmatprep.subr.bf16.mxu1 %v3254_v21  ;;  %v1521_v21 = vand.u32 2147483647, %v4031_v20  ;;  %v3022_v10 = vpack.c.bf16 %v654_v61, %v650_v59  ;;  %v894_v13 = vld [vmem:[#allocation7 + $0x28] sm:$0xff]  ;;  %v668_v59 = vld [vmem:[%s5041_s17 + $0x958] sm:$0xff] }
 0x119   : > { %v672_v61 = vld [vmem:[%s5041_s17 + $0x978] sm:$0xff] }
 0x11a   : > { %3001 = vmatpush1.bf16.msra.mxu0 %v3000_v28  ;;  %v4032_v28 = vld [vmem:[%s5041_s17 + $0x60] sm:$0xff] }
 0x11b   : > { %3257 = vmatpush1.bf16.msra.mxu1 %v3256_v29  ;;  %3003 = vmatprep.subr.bf16.mxu0 %v3002_v30  ;;  %v1525_v29 = vand.u32 2147483647, %v4032_v28  ;;  %v3270_v30 = vpack.c.bf16 %v640_v17, %v636_v16  ;;  %v658_v16 = vld [vmem:[%s5041_s17 + $0x908] sm:$0xff] }
 0x11c   : > { %3259 = vmatprep.subr.bf16.mxu1 %v3258_v34  ;;  %v5359_v34 = vpack.c.bf16 %v1518_v0, %v1514_v62  ;;  %v1531_v0 = vand.u32 2147483647, %v4037_v63  ;;  %v662_v17 = vld [vmem:[%s5041_s17 + $0x928] sm:$0xff] }
 0x11d   : > { %v5375_v62 = vpack.c.bf16 %v1525_v29, %v1521_v21  ;;  %v4039_v21 = vld [vmem:[%s5041_s17 + $0xc0] sm:$0xff]  ;;  %v4041_v29 = vld [vmem:[%s5041_s17 + $0xd0] sm:$0xff] }
 0x11e   : > { %3005 = vmatpush1.bf16.msra.mxu0 %v3004_v40  ;;  %v644_v40 = vld [vmem:[%s5041_s17 + $0x898] sm:$0xff] }
 0x11f   : > { %3261 = vmatpush1.bf16.msra.mxu1 %v3260_v43  ;;  %3007 = vmatprep.subr.bf16.mxu0 %v3006_v44  ;;  %v4035_v43 = vld [vmem:[%s5041_s17 + $0x80] sm:$0xff]  ;;  %v3274_v55 = vpack.c.bf16 %v648_v41, %v644_v40  ;;  %v3026_v40 = vpack.c.bf16 %v662_v17, %v658_v16  ;;  %v4049_v17 = vld [vmem:[%s5041_s17 + $0x150] sm:$0xff] }
 0x120   : > { %3263 = vmatprep.subr.bf16.mxu1 %v3262_v50  ;;  %v1529_v44 = vand.u32 2147483647, %v4035_v43  ;;  %v645_v50 = vld [vmem:[%s5041_s17 + $0x8a0] sm:$0xff]  ;;  %v659_v43 = vld [vmem:[%s5041_s17 + $0x910] sm:$0xff] }
 0x121   : > { %v3020_v6 = vpack.c.bf16 %v645_v50, %v641_v49  ;;  %v657_v41 = vld [vmem:[%s5041_s17 + $0x900] sm:$0xff]  ;;  %v663_v49 = vld [vmem:[%s5041_s17 + $0x930] sm:$0xff]  ;;  %v666_v50 = vld [vmem:[%s5041_s17 + $0x948] sm:$0xff] }
 0x122   : > { %3009 = vmatpush1.bf16.msra.mxu0 %v3008_v1  ;;  %v4038_v1 = vld [vmem:[%s5041_s17 + $0xb0] sm:$0xff]  ;;  %v5389_v20 = vpack.c.bf16 %v1533_v53, %v1529_v44  ;;  %v4044_v44 = vld [vmem:[%s5041_s17 + $0x120] sm:$0xff]  ;;  %v1547_v53 = vand.u32 2147483647, %v4045_v52  ;;  %v688_v52 = vld [vmem:[%s5041_s17 + $0x9f8] sm:$0xff] }
 0x123   : > { %3265 = vmatpush1.bf16.msra.mxu1 %v3264_v4  ;;  %3011 = vmatprep.subr.bf16.mxu0 %v3010_v5  ;;  %v1535_v2 = vand.u32 2147483647, %v4038_v1  ;;  %v656_v4 = vld [vmem:[%s5041_s17 + $0x8f8] sm:$0xff]  ;;  %v5381_v5 = vpack.c.bf16 %v1527_v39, %v1523_v37  ;;  %v4043_v37 = vld [vmem:[%s5041_s17 + $0x100] sm:$0xff] }
 0x124   : > { %3267 = vmatprep.subr.bf16.mxu1 %v3266_v11  ;;  %v651_v11 = vld [vmem:[%s5041_s17 + $0x8d0] sm:$0xff]  ;;  %v3278_v14 = vpack.c.bf16 %v656_v4, %v652_v3  ;;  %v1545_v38 = vand.u32 2147483647, %v4043_v37  ;;  %v3284_v4 = vpack.c.bf16 %v663_v49, %v659_v43  ;;  %v686_v43 = vld [vmem:[%s5041_s17 + $0x9e8] sm:$0xff] }
 0x125   : > { %1069 = vmatmul.mubr.f32.vlgmr.msra.gmra.mrb[0].mxu0 %v907_v15  ;;  %v5395_v28 = vpack.c.bf16 %v1535_v2, %v1531_v0  ;;  %v4047_v2 = vld [vmem:[%s5041_s17 + $0x140] sm:$0xff]  ;;  %v675_v37 = vld [vmem:[%s5041_s17 + $0x990] sm:$0xff] }
 0x126   : > { %3013 = vmatpush1.bf16.msra.mxu0 %v3012_v18  ;;  %1353 = vmatmul.mubr.f32.vlgmr.msra.gmra.mrb[0].mxu1 %v907_v15  ;;  %v655_v15 = vld [vmem:[%s5041_s17 + $0x8f0] sm:$0xff]  ;;  %v902_v18 = vadd.f32 %v894_v13, %v886_v12  ;;  %v1553_v3 = vand.u32 2147483647, %v4047_v2  ;;  %v3286_v12 = vpack.c.bf16 %v672_v61, %v668_v59  ;;  %v681_v2 = vld [vmem:[%s5041_s17 + $0x9c0] sm:$0xff] }
 0x127   : > { %3269 = vmatpush1.bf16.msra.mxu1 %v3268_v22  ;;  %3015 = vmatprep.subr.bf16.mxu0 %v3014_v23  ;;  %v1537_v22 = vand.u32 2147483647, %v4039_v21  ;;  %v4040_v23 = vld [vmem:[%s5041_s17 + $0xe0] sm:$0xff]  ;;  %v3280_v39 = vpack.c.bf16 %v655_v15, %v651_v11  ;;  %v671_v13 = vld [vmem:[%s5041_s17 + $0x970] sm:$0xff]  ;;  %v678_v15 = vld [vmem:[%s5041_s17 + $0x9a8] sm:$0xff] }
 0x128   : > { %3271 = vmatprep.subr.bf16.mxu1 %v3270_v30  ;;  %v1541_v25 = vand.u32 2147483647, %v4040_v23  ;;  %v1539_v30 = vand.u32 2147483647, %v4041_v29  ;;  %v910_v36 = vmul.f32 0.5, %v902_v18  ;;  %v4050_v21 = vld [vmem:[%s5041_s17 + $0x170] sm:$0xff] }
 0x129   : > { %v1555_v18 = vand.u32 2147483647, %v4049_v17  ;;  %v676_v23 = vld [vmem:[%s5041_s17 + $0x998] sm:$0xff]  ;;  %v4051_v29 = vld [vmem:[%s5041_s17 + $0x180] sm:$0xff]  ;;  %v4054_v49 = vld [vmem:[%s5041_s17 + $0x1b0] sm:$0xff] }
 0x12a   : > { %3017 = vmatpush1.bf16.msra.mxu0 %v3016_v42  ;;  %v661_v42 = vld [vmem:[%s5041_s17 + $0x920] sm:$0xff]  ;;  %1139 = vmatprep.mubr.f32.mxu0 %v910_v36  ;;  %v5411_v63 = vpack.c.bf16 %v1541_v25, %v1537_v22  ;;  %v5413_v1 = vpack.c.bf16 %v1543_v32, %v1539_v30  ;;  %v1559_v22 = vand.u32 2147483647, %v4050_v21  ;;  %v680_v25 = vld [vmem:[%s5041_s17 + $0x9b8] sm:$0xff]  ;;  %v1561_v30 = vand.u32 2147483647, %v4051_v29 }
 0x12b   : > { %3273 = vmatpush1.bf16.msra.mxu1 %v3272_v45  ;;  %3019 = vmatprep.subr.bf16.mxu0 %v3018_v46  ;;  %v1549_v45 = vand.u32 2147483647, %v4044_v44  ;;  %v3282_v46 = vpack.c.bf16 %v664_v27, %v660_v26  ;;  %v3028_v0 = vpack.c.bf16 %v661_v42, %v657_v41  ;;  %v3032_v27 = vpack.c.bf16 %v669_v8, %v665_v7  ;;  %v679_v41 = vld [vmem:[%s5041_s17 + $0x9b0] sm:$0xff]  ;;  %v682_v42 = vld [vmem:[%s5041_s17 + $0x9c8] sm:$0xff]  ;;  %v696_v21 = vld [vmem:[%s5041_s17 + $0xa38] sm:$0xff] }
 0x12c   : > { %3275 = vmatprep.subr.bf16.mxu1 %v3274_v55  ;;  %v4046_v55 = vld [vmem:[%s5041_s17 + $0x130] sm:$0xff]  ;;  %1423 = vmatprep.mubr.f32.mxu1 %v910_v36  ;;  %v677_v36 = vld [vmem:[%s5041_s17 + $0x9a0] sm:$0xff]  ;;  %v3292_v61 = vpack.c.bf16 %v679_v41, %v675_v37  ;;  %v702_v41 = vld [vmem:[%s5041_s17 + $0xa68] sm:$0xff] }
 0x12d   : > { %v1551_v58 = vand.u32 2147483647, %v4046_v55  ;;  %v5423_v16 = vpack.c.bf16 %v1549_v45, %v1545_v38  ;;  %v4052_v38 = vld [vmem:[%s5041_s17 + $0x1a0] sm:$0xff]  ;;  %v4053_v45 = vld [vmem:[%s5041_s17 + $0x190] sm:$0xff] }
 0x12e   : > { %3021 = vmatpush1.bf16.msra.mxu0 %v3020_v6  ;;  %v3030_v6 = vpack.c.bf16 %v670_v51, %v666_v50  ;;  %v1567_v50 = vand.u32 2147483647, %v4054_v49  ;;  %v684_v51 = vld [vmem:[%s5041_s17 + $0x9d8] sm:$0xff] }
 0x12f   : > { %3277 = vmatpush1.bf16.msra.mxu1 %v3276_v9  ;;  %3023 = vmatprep.subr.bf16.mxu0 %v3022_v10  ;;  %v667_v9 = vld [vmem:[%s5041_s17 + $0x950] sm:$0xff]  ;;  %v4048_v10 = vld [vmem:[%s5041_s17 + $0x160] sm:$0xff]  ;;  %v5429_v26 = vpack.c.bf16 %v1551_v58, %v1547_v53  ;;  %v5445_v53 = vpack.c.bf16 %v1559_v22, %v1555_v18  ;;  %v3294_v8 = vpack.c.bf16 %v688_v52, %v684_v51  ;;  %v692_v18 = vld [vmem:[%s5041_s17 + $0xa18] sm:$0xff] }
 0x130   : > { %3279 = vmatprep.subr.bf16.mxu1 %v3278_v14  ;;  %v1557_v11 = vand.u32 2147483647, %v4048_v10  ;;  %v674_v14 = vld [vmem:[%s5041_s17 + $0x988] sm:$0xff]  ;;  %v3288_v31 = vpack.c.bf16 %v671_v13, %v667_v9  ;;  %v4055_v58 = vld [vmem:[%s5041_s17 + $0x1c0] sm:$0xff]  ;;  %v687_v9 = vld [vmem:[%s5041_s17 + $0x9f0] sm:$0xff] }
 0x131   : > { %v3034_v32 = vpack.c.bf16 %v678_v15, %v674_v14  ;;  %v1569_v59 = vand.u32 2147483647, %v4055_v58  ;;  %v690_v10 = vld [vmem:[%s5041_s17 + $0xa08] sm:$0xff]  ;;  %v4057_v13 = vld [vmem:[%s5041_s17 + $0x1d0] sm:$0xff]  ;;  %v704_v51 = vld [vmem:[%s5041_s17 + $0xa78] sm:$0xff] }
 0x132   : > { %3025 = vmatpush1.bf16.msra.mxu0 %v3024_v33  ;;  %v673_v33 = vld [vmem:[%s5041_s17 + $0x980] sm:$0xff]  ;;  %v5439_v44 = vpack.c.bf16 %v1557_v11, %v1553_v3  ;;  %v694_v11 = vld [vmem:[%s5041_s17 + $0xa28] sm:$0xff]  ;;  %v1571_v14 = vand.u32 2147483647, %v4057_v13  ;;  %v4058_v15 = vld [vmem:[%s5041_s17 + $0x1f0] sm:$0xff] }
 0x133   : > { %3281 = vmatpush1.bf16.msra.mxu1 %v3280_v39  ;;  %3027 = vmatprep.subr.bf16.mxu0 %v3026_v40  ;;  %v1565_v39 = vand.u32 2147483647, %v4052_v38  ;;  %v3290_v40 = vpack.c.bf16 %v680_v25, %v676_v23  ;;  %v3036_v55 = vpack.c.bf16 %v677_v36, %v673_v33  ;;  %v685_v3 = vld [vmem:[%s5041_s17 + $0x9e0] sm:$0xff]  ;;  %v1575_v17 = vand.u32 2147483647, %v4058_v15  ;;  %v691_v33 = vld [vmem:[%s5041_s17 + $0xa10] sm:$0xff] }
 0x134   : > { %3283 = vmatprep.subr.bf16.mxu1 %v3282_v46  ;;  %v1563_v46 = vand.u32 2147483647, %v4053_v45  ;;  %v3040_v23 = vpack.c.bf16 %v685_v3, %v681_v2  ;;  %v4059_v25 = vld [vmem:[%s5041_s17 + $0x200] sm:$0xff]  ;;  %v3298_v38 = vpack.c.bf16 %v696_v21, %v692_v18  ;;  %v708_v21 = vld [vmem:[%s5041_s17 + $0xa98] sm:$0xff] }
 0x135   : > { %v4060_v36 = vld [vmem:[%s5041_s17 + $0x220] sm:$0xff]  ;;  %v5477_v52 = vpack.c.bf16 %v1575_v17, %v1571_v14  ;;  %v4065_v14 = vld [vmem:[%s5041_s17 + $0x250] sm:$0xff] }
 0x136   : > { %3029 = vmatpush1.bf16.msra.mxu0 %v3028_v0  ;;  %v3038_v0 = vpack.c.bf16 %v686_v43, %v682_v42  ;;  %v5461_v22 = vpack.c.bf16 %v1567_v50, %v1563_v46  ;;  %v1581_v37 = vand.u32 2147483647, %v4060_v36  ;;  %v4061_v43 = vld [vmem:[%s5041_s17 + $0x210] sm:$0xff]  ;;  %v700_v50 = vld [vmem:[%s5041_s17 + $0xa58] sm:$0xff]  ;;  %v4063_v58 = vld [vmem:[%s5041_s17 + $0x240] sm:$0xff] }
 0x137   : > { %3285 = vmatpush1.bf16.msra.mxu1 %v3284_v4  ;;  %3031 = vmatprep.subr.bf16.mxu0 %v3030_v6  ;;  %v683_v4 = vld [vmem:[%s5041_s17 + $0x9d0] sm:$0xff]  ;;  %v4056_v6 = vld [vmem:[%s5041_s17 + $0x1e0] sm:$0xff]  ;;  %v1579_v45 = vand.u32 2147483647, %v4061_v43  ;;  %v1587_v15 = vand.u32 2147483647, %v4065_v14 }
 0x138   : > { %3287 = vmatprep.subr.bf16.mxu1 %v3286_v12  ;;  %v1573_v7 = vand.u32 2147483647, %v4056_v6  ;;  %v5455_v12 = vpack.c.bf16 %v1565_v39, %v1561_v30  ;;  %v3296_v29 = vpack.c.bf16 %v687_v9, %v683_v4  ;;  %v3042_v30 = vpack.c.bf16 %v694_v11, %v690_v10  ;;  %v695_v39 = vld [vmem:[%s5041_s17 + $0xa30] sm:$0xff]  ;;  %v697_v2 = vld [vmem:[%s5041_s17 + $0xa40] sm:$0xff]  ;;  %v706_v10 = vld [vmem:[%s5041_s17 + $0xa88] sm:$0xff] }
 0x139   : > { %v4062_v46 = vld [vmem:[%s5041_s17 + $0x230] sm:$0xff]  ;;  %v701_v3 = vld [vmem:[%s5041_s17 + $0xa60] sm:$0xff]  ;;  %v710_v11 = vld [vmem:[%s5041_s17 + $0xaa8] sm:$0xff] }
 0x13a   : > { %3033 = vmatpush1.bf16.msra.mxu0 %v3032_v27  ;;  %v1577_v27 = vand.u32 2147483647, %v4059_v25  ;;  %v5471_v42 = vpack.c.bf16 %v1573_v7, %v1569_v59  ;;  %v1583_v49 = vand.u32 2147483647, %v4062_v46  ;;  %v1585_v59 = vand.u32 2147483647, %v4063_v58 }
 0x13b   : > { %3289 = vmatpush1.bf16.msra.mxu1 %v3288_v31  ;;  %3035 = vmatprep.subr.bf16.mxu0 %v3034_v32  ;;  %v689_v31 = vld [vmem:[%s5041_s17 + $0xa00] sm:$0xff]  ;;  %v699_v4 = vld [vmem:[%s5041_s17 + $0xa50] sm:$0xff]  ;;  %v714_v43 = vld [vmem:[%s5041_s17 + $0xac8] sm:$0xff] }
 0x13c   : > { %3291 = vmatprep.subr.bf16.mxu1 %v3290_v40  ;;  %v693_v32 = vld [vmem:[%s5041_s17 + $0xa20] sm:$0xff]  ;;  %v698_v40 = vld [vmem:[%s5041_s17 + $0xa48] sm:$0xff]  ;;  %v703_v9 = vld [vmem:[%s5041_s17 + $0xa70] sm:$0xff]  ;;  %v5487_v13 = vpack.c.bf16 %v1581_v37, %v1577_v27  ;;  %v5493_v25 = vpack.c.bf16 %v1583_v49, %v1579_v45 }
 0x13d   : > { %v4064_v6 = vld [vmem:[%s5041_s17 + $0x260] sm:$0xff]  ;;  %v4066_v17 = vld [vmem:[%s5041_s17 + $0x270] sm:$0xff]  ;;  %v718_v45 = vld [vmem:[%s5041_s17 + $0xae8] sm:$0xff] }
 0x13e   : > { %3037 = vmatpush1.bf16.msra.mxu0 %v3036_v55  ;;  %v3044_v55 = vpack.c.bf16 %v693_v32, %v689_v31  ;;  %v1589_v7 = vand.u32 2147483647, %v4064_v6  ;;  %v1591_v18 = vand.u32 2147483647, %v4066_v17  ;;  %v3304_v31 = vpack.c.bf16 %v703_v9, %v699_v4  ;;  %v709_v36 = vld [vmem:[%s5041_s17 + $0xaa0] sm:$0xff]  ;;  %v707_v37 = vld [vmem:[%s5041_s17 + $0xa90] sm:$0xff] }
 0x13f   : > { %3293 = vmatpush1.bf16.msra.mxu1 %v3292_v61  ;;  %3039 = vmatprep.subr.bf16.mxu0 %v3038_v0  ;;  %v3300_v61 = vpack.c.bf16 %v695_v39, %v691_v33  ;;  %v3046_v0 = vpack.c.bf16 %v702_v41, %v698_v40  ;;  %v3050_v32 = vpack.c.bf16 %v710_v11, %v706_v10  ;;  %v705_v33 = vld [vmem:[%s5041_s17 + $0xa80] sm:$0xff]  ;;  %v711_v41 = vld [vmem:[%s5041_s17 + $0xab0] sm:$0xff]  ;;  %v716_v58 = vld [vmem:[%s5041_s17 + $0xad8] sm:$0xff] }
 0x140   : > { %3295 = vmatprep.subr.bf16.mxu1 %v3294_v8  ;;  %v3302_v8 = vpack.c.bf16 %v704_v51, %v700_v50  ;;  %v5503_v46 = vpack.c.bf16 %v1589_v7, %v1585_v59  ;;  %v4069_v49 = vld [vmem:[%s5041_s17 + $0x290] sm:$0xff]  ;;  %v3308_v4 = vpack.c.bf16 %v711_v41, %v707_v37  ;;  %v3054_v6 = vpack.c.bf16 %v718_v45, %v714_v43  ;;  %v713_v7 = vld [vmem:[%s5041_s17 + $0xac0] sm:$0xff]  ;;  %v722_v17 = vld [vmem:[%s5041_s17 + $0xb08] sm:$0xff] }
 0x141   : > { %v1595_v50 = vand.u32 2147483647, %v4069_v49  ;;  %v4070_v51 = vld [vmem:[%s5041_s17 + $0x2b0] sm:$0xff]  ;;  %v4072_v10 = vld [vmem:[%s5041_s17 + $0x2e0] sm:$0xff] }
 0x142   : > { %3041 = vmatpush1.bf16.msra.mxu0 %v3040_v23  ;;  %v712_v23 = vld [vmem:[%s5041_s17 + $0xab8] sm:$0xff]  ;;  %v715_v9 = vld [vmem:[%s5041_s17 + $0xad0] sm:$0xff]  ;;  %v1605_v11 = vand.u32 2147483647, %v4072_v10  ;;  %v721_v41 = vld [vmem:[%s5041_s17 + $0xb00] sm:$0xff] }
 0x143   : > { %3297 = vmatpush1.bf16.msra.mxu1 %v3296_v29  ;;  %3043 = vmatprep.subr.bf16.mxu0 %v3042_v30  ;;  %v3048_v29 = vpack.c.bf16 %v701_v3, %v697_v2  ;;  %v4067_v30 = vld [vmem:[%s5041_s17 + $0x280] sm:$0xff]  ;;  %v3306_v40 = vpack.c.bf16 %v712_v23, %v708_v21  ;;  %v3052_v2 = vpack.c.bf16 %v709_v36, %v705_v33  ;;  %v4073_v23 = vld [vmem:[%s5041_s17 + $0x2d0] sm:$0xff]  ;;  %v728_v33 = vld [vmem:[%s5041_s17 + $0xb38] sm:$0xff] }
 0x144   : > { %3299 = vmatprep.subr.bf16.mxu1 %v3298_v38  ;;  %v1593_v27 = vand.u32 2147483647, %v4067_v30  ;;  %v4068_v38 = vld [vmem:[%s5041_s17 + $0x2a0] sm:$0xff]  ;;  %v4074_v30 = vld [vmem:[%s5041_s17 + $0x2f0] sm:$0xff] }
 0x145   : > { %v1597_v39 = vand.u32 2147483647, %v4068_v38  ;;  %v4071_v3 = vld [vmem:[%s5041_s17 + $0x2c0] sm:$0xff]  ;;  %v723_v45 = vld [vmem:[%s5041_s17 + $0xb10] sm:$0xff] }
 0x146   : > { %3045 = vmatpush1.bf16.msra.mxu0 %v3044_v55  ;;  %v1599_v55 = vand.u32 2147483647, %v4070_v51  ;;  %v1601_v59 = vand.u32 2147483647, %v4071_v3  ;;  %v4075_v38 = vld [vmem:[%s5041_s17 + $0x300] sm:$0xff]  ;;  %v4077_v3 = vld [vmem:[%s5041_s17 + $0x310] sm:$0xff] }
 0x147   : > { %3301 = vmatpush1.bf16.msra.mxu1 %v3300_v61  ;;  %3047 = vmatprep.subr.bf16.mxu0 %v3046_v0  ;;  %v720_v61 = vld [vmem:[%s5041_s17 + $0xaf8] sm:$0xff]  ;;  %v5509_v0 = vpack.c.bf16 %v1591_v18, %v1587_v15  ;;  %v719_v15 = vld [vmem:[%s5041_s17 + $0xaf0] sm:$0xff]  ;;  %v726_v18 = vld [vmem:[%s5041_s17 + $0xb28] sm:$0xff]  ;;  %v5519_v21 = vpack.c.bf16 %v1597_v39, %v1593_v27  ;;  %v1609_v27 = vand.u32 2147483647, %v4075_v38 }
 0x148   : > { %3303 = vmatprep.subr.bf16.mxu1 %v3302_v8  ;;  %v717_v8 = vld [vmem:[%s5041_s17 + $0xae0] sm:$0xff]  ;;  %v3310_v14 = vpack.c.bf16 %v720_v61, %v716_v58  ;;  %v5525_v36 = vpack.c.bf16 %v1599_v55, %v1595_v50  ;;  %v3312_v39 = vpack.c.bf16 %v719_v15, %v715_v9  ;;  %v727_v55 = vld [vmem:[%s5041_s17 + $0xb30] sm:$0xff]  ;;  %v730_v58 = vld [vmem:[%s5041_s17 + $0xb48] sm:$0xff] }
 0x149   : > { %v3056_v37 = vpack.c.bf16 %v717_v8, %v713_v7  ;;  %v725_v43 = vld [vmem:[%s5041_s17 + $0xb20] sm:$0xff]  ;;  %v734_v61 = vld [vmem:[%s5041_s17 + $0xb68] sm:$0xff]  ;;  %v732_v8 = vld [vmem:[%s5041_s17 + $0xb58] sm:$0xff] }
 0x14a   : > { %3049 = vmatpush1.bf16.msra.mxu0 %v3048_v29  ;;  %v1603_v29 = vand.u32 2147483647, %v4073_v23  ;;  %v4076_v49 = vld [vmem:[%s5041_s17 + $0x320] sm:$0xff]  ;;  %v736_v9 = vld [vmem:[%s5041_s17 + $0xb78] sm:$0xff]  ;;  %v742_v38 = vld [vmem:[%s5041_s17 + $0xba8] sm:$0xff] }
 0x14b   : > { %3305 = vmatpush1.bf16.msra.mxu1 %v3304_v31  ;;  %3051 = vmatprep.subr.bf16.mxu0 %v3050_v32  ;;  %v1607_v31 = vand.u32 2147483647, %v4074_v30  ;;  %v724_v32 = vld [vmem:[%s5041_s17 + $0xb18] sm:$0xff]  ;;  %v1613_v50 = vand.u32 2147483647, %v4076_v49  ;;  %v4079_v15 = vld [vmem:[%s5041_s17 + $0x340] sm:$0xff] }
 0x14c   : > { %3307 = vmatprep.subr.bf16.mxu1 %v3306_v40  ;;  %v3058_v40 = vpack.c.bf16 %v726_v18, %v722_v17  ;;  %v3314_v51 = vpack.c.bf16 %v728_v33, %v724_v32  ;;  %v3062_v17 = vpack.c.bf16 %v734_v61, %v730_v58  ;;  %v729_v18 = vld [vmem:[%s5041_s17 + $0xb40] sm:$0xff]  ;;  %v731_v30 = vld [vmem:[%s5041_s17 + $0xb50] sm:$0xff]  ;;  %v3318_v32 = vpack.c.bf16 %v736_v9, %v732_v8  ;;  %v740_v49 = vld [vmem:[%s5041_s17 + $0xb98] sm:$0xff] }
 0x14d   : > { %v5541_v10 = vpack.c.bf16 %v1607_v31, %v1603_v29  ;;  %v733_v23 = vld [vmem:[%s5041_s17 + $0xb60] sm:$0xff]  ;;  %v735_v33 = vld [vmem:[%s5041_s17 + $0xb70] sm:$0xff] }
 0x14e   : > { %3053 = vmatpush1.bf16.msra.mxu0 %v3052_v2  ;;  %v5535_v2 = vpack.c.bf16 %v1605_v11, %v1601_v59  ;;  %v1617_v59 = vand.u32 2147483647, %v4079_v15  ;;  %v3316_v11 = vpack.c.bf16 %v727_v55, %v723_v45  ;;  %v4080_v29 = vld [vmem:[%s5041_s17 + $0x360] sm:$0xff]  ;;  %v744_v55 = vld [vmem:[%s5041_s17 + $0xbb8] sm:$0xff]  ;;  %v739_v9 = vld [vmem:[%s5041_s17 + $0xb90] sm:$0xff] }
 0x14f   : > { %3309 = vmatpush1.bf16.msra.mxu1 %v3308_v4  ;;  %3055 = vmatprep.subr.bf16.mxu0 %v3054_v6  ;;  %v1611_v4 = vand.u32 2147483647, %v4077_v3  ;;  %v4078_v6 = vld [vmem:[%s5041_s17 + $0x330] sm:$0xff]  ;;  %v1621_v31 = vand.u32 2147483647, %v4080_v29  ;;  %v4083_v61 = vld [vmem:[%s5041_s17 + $0x380] sm:$0xff] }
 0x150   : > { %3311 = vmatprep.subr.bf16.mxu1 %v3310_v14  ;;  %v1615_v7 = vand.u32 2147483647, %v4078_v6  ;;  %v3060_v14 = vpack.c.bf16 %v725_v43, %v721_v41  ;;  %v5551_v41 = vpack.c.bf16 %v1613_v50, %v1609_v27  ;;  %v4082_v43 = vld [vmem:[%s5041_s17 + $0x370] sm:$0xff]  ;;  %v1625_v27 = vand.u32 2147483647, %v4083_v61  ;;  %v737_v6 = vld [vmem:[%s5041_s17 + $0xb80] sm:$0xff] }
 0x151   : > { %v1623_v45 = vand.u32 2147483647, %v4082_v43  ;;  %v3320_v50 = vpack.c.bf16 %v735_v33, %v731_v30  ;;  %v741_v8 = vld [vmem:[%s5041_s17 + $0xba0] sm:$0xff]  ;;  %v743_v15 = vld [vmem:[%s5041_s17 + $0xbb0] sm:$0xff]  ;;  %v748_v33 = vld [vmem:[%s5041_s17 + $0xbd8] sm:$0xff] }
 0x152   : > { %3057 = vmatpush1.bf16.msra.mxu0 %v3056_v37  ;;  %v738_v37 = vld [vmem:[%s5041_s17 + $0xb88] sm:$0xff]  ;;  %v5557_v58 = vpack.c.bf16 %v1615_v7, %v1611_v4  ;;  %v4084_v4 = vld [vmem:[%s5041_s17 + $0x3a0] sm:$0xff] }
 0x153   : > { %3313 = vmatpush1.bf16.msra.mxu1 %v3312_v39  ;;  %3059 = vmatprep.subr.bf16.mxu0 %v3058_v40  ;;  %v4081_v39 = vld [vmem:[%s5041_s17 + $0x350] sm:$0xff]  ;;  %v3066_v3 = vpack.c.bf16 %v742_v38, %v738_v37  ;;  %v1629_v7 = vand.u32 2147483647, %v4084_v4  ;;  %v752_v37 = vld [vmem:[%s5041_s17 + $0xbf8] sm:$0xff]  ;;  %v5571_v38 = vpack.c.bf16 %v1621_v31, %v1617_v59  ;;  %v885_v61 = vld [vmem:[#allocation5 + $0x20] sm:$0xff]  ;;  %v3324_v59 = vpack.c.bf16 %v743_v15, %v739_v9 }
 0x154   : > { %3315 = vmatprep.subr.bf16.mxu1 %v3314_v51  ;;  %v1619_v40 = vand.u32 2147483647, %v4081_v39  ;;  %v3064_v51 = vpack.c.bf16 %v733_v23, %v729_v18  ;;  %v746_v18 = vld [vmem:[%s5041_s17 + $0xbc8] sm:$0xff]  ;;  %v893_v4 = vld [vmem:[#allocation7 + $0x20] sm:$0xff]  ;;  %v888_v15 = vld [vmem:[#allocation5 + $0x38] sm:$0xff] }
 0x155   : > { %v750_v23 = vld [vmem:[%s5041_s17 + $0xbe8] sm:$0xff]  ;;  %v5585_v57 = vpack.c.bf16 %v1629_v7, %v1625_v27  ;;  %v901_v9 = vadd.f32 %v893_v4, %v885_v61  ;;  %v759_v61 = vld [vmem:[%s5041_s17 + $0xc30] sm:$0xff] }
 0x156   : > { %3061 = vmatpush1.bf16.msra.mxu0 %v3060_v14  ;;  %v3322_v14 = vpack.c.bf16 %v744_v55, %v740_v49  ;;  %v5573_v39 = vpack.c.bf16 %v1623_v45, %v1619_v40  ;;  %v3068_v49 = vpack.c.bf16 %v741_v8, %v737_v6  ;;  %v745_v55 = vld [vmem:[%s5041_s17 + $0xbc0] sm:$0xff]  ;;  %v3070_v31 = vpack.c.bf16 %v750_v23, %v746_v18  ;;  %v747_v45 = vld [vmem:[%s5041_s17 + $0xbd0] sm:$0xff]  ;;  %v754_v8 = vld [vmem:[%s5041_s17 + $0xc08] sm:$0xff] }
 0x157   : > { %3317 = vmatpush1.bf16.msra.mxu1 %v3316_v11  ;;  %3063 = vmatprep.subr.bf16.mxu0 %v3062_v17  ;;  %v4085_v11 = vld [vmem:[%s5041_s17 + $0x390] sm:$0xff]  ;;  %v749_v40 = vld [vmem:[%s5041_s17 + $0xbe0] sm:$0xff]  ;;  %v3326_v6 = vpack.c.bf16 %v752_v37, %v748_v33  ;;  %v896_v18 = vld [vmem:[#allocation7 + $0x38] sm:$0xff]  ;;  %v3328_v27 = vpack.c.bf16 %v751_v60, %v747_v45  ;;  %v3074_v7 = vpack.c.bf16 %v758_v54, %v754_v8 }
 0x158   : > { %3319 = vmatprep.subr.bf16.mxu1 %v3318_v32  ;;  %v1627_v29 = vand.u32 2147483647, %v4085_v11  ;;  %v4086_v17 = vld [vmem:[%s5041_s17 + $0x3b0] sm:$0xff]  ;;  %v4087_v32 = vld [vmem:[%s5041_s17 + $0x3c0] sm:$0xff]  ;;  %v762_v4 = vld [vmem:[%s5041_s17 + $0xc48] sm:$0xff] }
 0x159   : > { %v1631_v30 = vand.u32 2147483647, %v4086_v17  ;;  %v1633_v43 = vand.u32 2147483647, %v4087_v32  ;;  %v4088_v11 = vld [vmem:[%s5041_s17 + $0x3e0] sm:$0xff]  ;;  %v4089_v32 = vld [vmem:[%s5041_s17 + $0x3d0] sm:$0xff] }
 0x15a   : > { %3065 = vmatpush1.bf16.msra.mxu0 %v3064_v51  ;;  %v1637_v17 = vand.u32 2147483647, %v4088_v11  ;;  %v1635_v51 = vand.u32 2147483647, %v4089_v32  ;;  %v760_v11 = vld [vmem:[%s5041_s17 + $0xc38] sm:$0xff]  ;;  %v753_v33 = vld [vmem:[%s5041_s17 + $0xc00] sm:$0xff] }
 0x15b   : > { %3321 = vmatpush1.bf16.msra.mxu1 %v3320_v50  ;;  %3067 = vmatprep.subr.bf16.mxu0 %v3066_v3  ;;  %v4090_v50 = vld [vmem:[%s5041_s17 + $0x3f0] sm:$0xff]  ;;  %v5589_v23 = vpack.c.bf16 %v1631_v30, %v1627_v29  ;;  %v757_v37 = vld [vmem:[%s5041_s17 + $0xc20] sm:$0xff]  ;;  %v766_v29 = vld [vmem:[%s5041_s17 + $0xc68] sm:$0xff]  ;;  %v904_v30 = vadd.f32 %v896_v18, %v888_v15 }
 0x15c   : > { %3323 = vmatprep.subr.bf16.mxu1 %v3322_v14  ;;  %v1639_v3 = vand.u32 2147483647, %v4090_v50  ;;  %v3072_v14 = vpack.c.bf16 %v749_v40, %v745_v55  ;;  %v755_v32 = vld [vmem:[%s5041_s17 + $0xc10] sm:$0xff]  ;;  %v3330_v50 = vpack.c.bf16 %v760_v11, %v756_v56  ;;  %v909_v55 = vmul.f32 0.5, %v901_v9  ;;  %v768_v54 = vld [vmem:[%s5041_s17 + $0xc78] sm:$0xff]  ;;  %v761_v45 = vld [vmem:[%s5041_s17 + $0xc40] sm:$0xff] }
 0x15d   : > { %v3076_v56 = vpack.c.bf16 %v757_v37, %v753_v33  ;;  %v3078_v40 = vpack.c.bf16 %v766_v29, %v762_v4  ;;  %v767_v8 = vld [vmem:[%s5041_s17 + $0xc70] sm:$0xff]  ;;  %v770_v11 = vld [vmem:[%s5041_s17 + $0xc88] sm:$0xff]  ;;  %v772_v9 = vld [vmem:[%s5041_s17 + $0xc98] sm:$0xff] }
 0x15e   : > { %3069 = vmatpush1.bf16.msra.mxu0 %v3068_v49  ;;  %v5597_v49 = vpack.c.bf16 %v1637_v17, %v1633_v43  ;;  %v5601_v60 = vpack.c.bf16 %v1639_v3, %v1635_v51  ;;  %v763_v43 = vld [vmem:[%s5041_s17 + $0xc50] sm:$0xff]  ;;  %v774_v51 = vld [vmem:[%s5041_s17 + $0xca8] sm:$0xff]  ;;  %v912_v3 = vmul.f32 0.5, %v904_v30  ;;  %v776_v15 = vld [vmem:[%s5041_s17 + $0xcb8] sm:$0xff] }
 0x15f   : > { %3325 = vmatpush1.bf16.msra.mxu1 %v3324_v59  ;;  %3071 = vmatprep.subr.bf16.mxu0 %v3070_v31  ;;  %v764_v59 = vld [vmem:[%s5041_s17 + $0xc58] sm:$0xff]  ;;  %v3332_v31 = vpack.c.bf16 %v759_v61, %v755_v32  ;;  %v773_v33 = vld [vmem:[%s5041_s17 + $0xca0] sm:$0xff]  ;;  %v771_v37 = vld [vmem:[%s5041_s17 + $0xc90] sm:$0xff]  ;;  %v3338_v32 = vpack.c.bf16 %v776_v15, %v772_v9 }
 0x160   : > { %3327 = vmatprep.subr.bf16.mxu1 %v3326_v6  ;;  %v765_v6 = vld [vmem:[%s5041_s17 + $0xc60] sm:$0xff]  ;;  %v3334_v17 = vpack.c.bf16 %v768_v54, %v764_v59  ;;  %v778_v61 = vld [vmem:[%s5041_s17 + $0xcc8] sm:$0xff]  ;;  %v780_v29 = vld [vmem:[%s5041_s17 + $0xcd8] sm:$0xff] }
 0x161   : > { %v3080_v18 = vpack.c.bf16 %v765_v6, %v761_v45  ;;  %v782_v4 = vld [vmem:[%s5041_s17 + $0xce8] sm:$0xff]  ;;  %v784_v30 = vld [vmem:[%s5041_s17 + $0xcf8] sm:$0xff]  ;;  %v783_v6 = vld [vmem:[%s5041_s17 + $0xcf0] sm:$0xff] }
 0x162   : > { %3073 = vmatpush1.bf16.msra.mxu0 %v3072_v14  ;;  %v3336_v14 = vpack.c.bf16 %v767_v8, %v763_v43  ;;  %v3086_v54 = vpack.c.bf16 %v782_v4, %v778_v61  ;;  %v3342_v45 = vpack.c.bf16 %v784_v30, %v780_v29  ;;  %v786_v43 = vld [vmem:[%s5041_s17 + $0xd08] sm:$0xff]  ;;  %v788_v8 = vld [vmem:[%s5041_s17 + $0xd18] sm:$0xff]  ;;  %v785_v15 = vld [vmem:[%s5041_s17 + $0xd00] sm:$0xff] }
 0x163   : > { %3329 = vmatpush1.bf16.msra.mxu1 %v3328_v27  ;;  %3075 = vmatprep.subr.bf16.mxu0 %v3074_v7  ;;  %v3082_v27 = vpack.c.bf16 %v774_v51, %v770_v11  ;;  %v769_v7 = vld [vmem:[%s5041_s17 + $0xc80] sm:$0xff]  ;;  %v792_v11 = vld [vmem:[%s5041_s17 + $0xd38] sm:$0xff] }
 0x164   : > { %3331 = vmatprep.subr.bf16.mxu1 %v3330_v50  ;;  %v775_v50 = vld [vmem:[%s5041_s17 + $0xcb0] sm:$0xff]  ;;  %v793_v30 = vld [vmem:[%s5041_s17 + $0xd40] sm:$0xff] }
 0x165   : > { %1140 = vmatmul.mubr.f32.vlgmr.msra.gmra.mrb[0].mxu0 %v909_v55  ;;  %v3340_v59 = vpack.c.bf16 %v775_v50, %v771_v37  ;;  %v798_v37 = vld [vmem:[%s5041_s17 + $0xd68] sm:$0xff]  ;;  %v800_v50 = vld [vmem:[%s5041_s17 + $0xd78] sm:$0xff] }
 0x166   : > { %3077 = vmatpush1.bf16.msra.mxu0 %v3076_v56  ;;  %1424 = vmatmul.mubr.f32.vlgmr.msra.gmra.mrb[0].mxu1 %v909_v55  ;;  %v3084_v55 = vpack.c.bf16 %v773_v33, %v769_v7  ;;  %v777_v56 = vld [vmem:[%s5041_s17 + $0xcc0] sm:$0xff]  ;;  %v791_v7 = vld [vmem:[%s5041_s17 + $0xd30] sm:$0xff]  ;;  %v794_v33 = vld [vmem:[%s5041_s17 + $0xd48] sm:$0xff] }
 0x167   : > { %3333 = vmatpush1.bf16.msra.mxu1 %v3332_v31  ;;  %3079 = vmatprep.subr.bf16.mxu0 %v3078_v40  ;;  %v781_v31 = vld [vmem:[%s5041_s17 + $0xce0] sm:$0xff]  ;;  %v779_v40 = vld [vmem:[%s5041_s17 + $0xcd0] sm:$0xff]  ;;  %v3094_v29 = vpack.c.bf16 %v798_v37, %v794_v33 }
 0x168   : > { %3335 = vmatprep.subr.bf16.mxu1 %v3334_v17  ;;  %1210 = vmatprep.mubr.f32.mxu0 %v912_v3  ;;  %v790_v17 = vld [vmem:[%s5041_s17 + $0xd28] sm:$0xff]  ;;  %v3088_v51 = vpack.c.bf16 %v781_v31, %v777_v56  ;;  %v799_v56 = vld [vmem:[%s5041_s17 + $0xd70] sm:$0xff] }
 0x169   : > { %1494 = vmatprep.mubr.f32.mxu1 %v912_v3  ;;  %v3344_v3 = vpack.c.bf16 %v783_v6, %v779_v40  ;;  %v3090_v9 = vpack.c.bf16 %v790_v17, %v786_v43  ;;  %v802_v31 = vld [vmem:[%s5041_s17 + $0xd88] sm:$0xff]  ;;  %v808_v6 = vld [vmem:[%s5041_s17 + $0xdb8] sm:$0xff] }
 0x16a   : > { %3081 = vmatpush1.bf16.msra.mxu0 %v3080_v18  ;;  %v789_v18 = vld [vmem:[%s5041_s17 + $0xd20] sm:$0xff]  ;;  %v806_v40 = vld [vmem:[%s5041_s17 + $0xda8] sm:$0xff] }
 0x16b   : > { %3337 = vmatpush1.bf16.msra.mxu1 %v3336_v14  ;;  %3083 = vmatprep.subr.bf16.mxu0 %v3082_v27  ;;  %v787_v14 = vld [vmem:[%s5041_s17 + $0xd10] sm:$0xff]  ;;  %v3346_v27 = vpack.c.bf16 %v792_v11, %v788_v8  ;;  %v3092_v61 = vpack.c.bf16 %v789_v18, %v785_v15  ;;  %v3098_v8 = vpack.c.bf16 %v806_v40, %v802_v31  ;;  %v801_v11 = vld [vmem:[%s5041_s17 + $0xd80] sm:$0xff]  ;;  %v810_v18 = vld [vmem:[%s5041_s17 + $0xdc8] sm:$0xff] }
 0x16c   : > { %3339 = vmatprep.subr.bf16.mxu1 %v3338_v32  ;;  %v796_v32 = vld [vmem:[%s5041_s17 + $0xd58] sm:$0xff]  ;;  %v3348_v4 = vpack.c.bf16 %v791_v7, %v787_v14  ;;  %v807_v15 = vld [vmem:[%s5041_s17 + $0xdb0] sm:$0xff]  ;;  %v814_v14 = vld [vmem:[%s5041_s17 + $0xde8] sm:$0xff] }
 0x16d   : > { %v816_v7 = vld [vmem:[%s5041_s17 + $0xdf8] sm:$0xff] }
 0x16e   : > { %3085 = vmatpush1.bf16.msra.mxu0 %v3084_v55  ;;  %v797_v55 = vld [vmem:[%s5041_s17 + $0xd60] sm:$0xff] }
 0x16f   : > { %3341 = vmatpush1.bf16.msra.mxu1 %v3340_v59  ;;  %3087 = vmatprep.subr.bf16.mxu0 %v3086_v54  ;;  %v795_v59 = vld [vmem:[%s5041_s17 + $0xd50] sm:$0xff]  ;;  %v3350_v54 = vpack.c.bf16 %v800_v50, %v796_v32  ;;  %v3096_v43 = vpack.c.bf16 %v797_v55, %v793_v30  ;;  %v3102_v32 = vpack.c.bf16 %v814_v14, %v810_v18  ;;  %v809_v50 = vld [vmem:[%s5041_s17 + $0xdc0] sm:$0xff]  ;;  %v818_v55 = vld [vmem:[%s5041_s17 + $0xe08] sm:$0xff] }
 0x170   : > { %3343 = vmatprep.subr.bf16.mxu1 %v3342_v45  ;;  %v804_v45 = vld [vmem:[%s5041_s17 + $0xd98] sm:$0xff]  ;;  %v3352_v17 = vpack.c.bf16 %v799_v56, %v795_v59  ;;  %v815_v30 = vld [vmem:[%s5041_s17 + $0xdf0] sm:$0xff]  ;;  %v822_v59 = vld [vmem:[%s5041_s17 + $0xe28] sm:$0xff] }
 0x171   : > { %v824_v56 = vld [vmem:[%s5041_s17 + $0xe38] sm:$0xff] }
 0x172   : > { %3089 = vmatpush1.bf16.msra.mxu0 %v3088_v51  ;;  %v805_v51 = vld [vmem:[%s5041_s17 + $0xda0] sm:$0xff] }
 0x173   : > { %3345 = vmatpush1.bf16.msra.mxu1 %v3344_v3  ;;  %3091 = vmatprep.subr.bf16.mxu0 %v3090_v9  ;;  %v803_v3 = vld [vmem:[%s5041_s17 + $0xd90] sm:$0xff]  ;;  %v3354_v9 = vpack.c.bf16 %v808_v6, %v804_v45  ;;  %v3100_v33 = vpack.c.bf16 %v805_v51, %v801_v11  ;;  %v3106_v45 = vpack.c.bf16 %v822_v59, %v818_v55  ;;  %v817_v6 = vld [vmem:[%s5041_s17 + $0xe00] sm:$0xff]  ;;  %v826_v51 = vld [vmem:[%s5041_s17 + $0xe48] sm:$0xff] }
 0x174   : > { %3347 = vmatprep.subr.bf16.mxu1 %v3346_v27  ;;  %v812_v27 = vld [vmem:[%s5041_s17 + $0xdd8] sm:$0xff]  ;;  %v3356_v37 = vpack.c.bf16 %v807_v15, %v803_v3  ;;  %v823_v11 = vld [vmem:[%s5041_s17 + $0xe30] sm:$0xff]  ;;  %v830_v3 = vld [vmem:[%s5041_s17 + $0xe68] sm:$0xff] }
 0x175   : > { %v832_v15 = vld [vmem:[%s5041_s17 + $0xe78] sm:$0xff] }
 0x176   : > { %3093 = vmatpush1.bf16.msra.mxu0 %v3092_v61  ;;  %v813_v61 = vld [vmem:[%s5041_s17 + $0xde0] sm:$0xff] }
 0x177   : > { %3349 = vmatpush1.bf16.msra.mxu1 %v3348_v4  ;;  %3095 = vmatprep.subr.bf16.mxu0 %v3094_v29  ;;  %v811_v4 = vld [vmem:[%s5041_s17 + $0xdd0] sm:$0xff]  ;;  %v3358_v29 = vpack.c.bf16 %v816_v7, %v812_v27  ;;  %v3104_v31 = vpack.c.bf16 %v813_v61, %v809_v50  ;;  %v3110_v27 = vpack.c.bf16 %v830_v3, %v826_v51  ;;  %v825_v7 = vld [vmem:[%s5041_s17 + $0xe40] sm:$0xff]  ;;  %v834_v61 = vld [vmem:[%s5041_s17 + $0xe88] sm:$0xff] }
 0x178   : > { %3351 = vmatprep.subr.bf16.mxu1 %v3350_v54  ;;  %v820_v54 = vld [vmem:[%s5041_s17 + $0xe18] sm:$0xff]  ;;  %v3360_v40 = vpack.c.bf16 %v815_v30, %v811_v4  ;;  %v831_v50 = vld [vmem:[%s5041_s17 + $0xe70] sm:$0xff]  ;;  %v838_v4 = vld [vmem:[%s5041_s17 + $0xea8] sm:$0xff] }
 0x179   : > { %v840_v30 = vld [vmem:[%s5041_s17 + $0xeb8] sm:$0xff] }
 0x17a   : > { %3097 = vmatpush1.bf16.msra.mxu0 %v3096_v43  ;;  %v821_v43 = vld [vmem:[%s5041_s17 + $0xe20] sm:$0xff] }
 0x17b   : > { %3353 = vmatpush1.bf16.msra.mxu1 %v3352_v17  ;;  %3099 = vmatprep.subr.bf16.mxu0 %v3098_v8  ;;  %v819_v17 = vld [vmem:[%s5041_s17 + $0xe10] sm:$0xff]  ;;  %v3362_v8 = vpack.c.bf16 %v824_v56, %v820_v54  ;;  %v3108_v18 = vpack.c.bf16 %v821_v43, %v817_v6  ;;  %v3114_v54 = vpack.c.bf16 %v838_v4, %v834_v61  ;;  %v833_v56 = vld [vmem:[%s5041_s17 + $0xe80] sm:$0xff]  ;;  %v842_v43 = vld [vmem:[%s5041_s17 + $0xec8] sm:$0xff] }
 0x17c   : > { %3355 = vmatprep.subr.bf16.mxu1 %v3354_v9  ;;  %v828_v9 = vld [vmem:[%s5041_s17 + $0xe58] sm:$0xff]  ;;  %v3364_v14 = vpack.c.bf16 %v823_v11, %v819_v17  ;;  %v839_v6 = vld [vmem:[%s5041_s17 + $0xeb0] sm:$0xff]  ;;  %v846_v17 = vld [vmem:[%s5041_s17 + $0xee8] sm:$0xff] }
 0x17d   : > { %v848_v11 = vld [vmem:[%s5041_s17 + $0xef8] sm:$0xff] }
 0x17e   : > { %3101 = vmatpush1.bf16.msra.mxu0 %v3100_v33  ;;  %v829_v33 = vld [vmem:[%s5041_s17 + $0xe60] sm:$0xff] }
 0x17f   : > { %3357 = vmatpush1.bf16.msra.mxu1 %v3356_v37  ;;  %3103 = vmatprep.subr.bf16.mxu0 %v3102_v32  ;;  %v827_v37 = vld [vmem:[%s5041_s17 + $0xe50] sm:$0xff]  ;;  %v3366_v32 = vpack.c.bf16 %v832_v15, %v828_v9  ;;  %v3112_v55 = vpack.c.bf16 %v829_v33, %v825_v7  ;;  %v3118_v9 = vpack.c.bf16 %v846_v17, %v842_v43  ;;  %v841_v15 = vld [vmem:[%s5041_s17 + $0xec0] sm:$0xff]  ;;  %v850_v33 = vld [vmem:[%s5041_s17 + $0xf08] sm:$0xff] }
 0x180   : > { %3359 = vmatprep.subr.bf16.mxu1 %v3358_v29  ;;  %v836_v29 = vld [vmem:[%s5041_s17 + $0xe98] sm:$0xff]  ;;  %v3368_v59 = vpack.c.bf16 %v831_v50, %v827_v37  ;;  %v847_v7 = vld [vmem:[%s5041_s17 + $0xef0] sm:$0xff]  ;;  %v854_v37 = vld [vmem:[%s5041_s17 + $0xf28] sm:$0xff] }
 0x181   : > { %v856_v50 = vld [vmem:[%s5041_s17 + $0xf38] sm:$0xff] }
 0x182   : > { %3105 = vmatpush1.bf16.msra.mxu0 %v3104_v31  ;;  %v837_v31 = vld [vmem:[%s5041_s17 + $0xea0] sm:$0xff] }
 0x183   : > { %3361 = vmatpush1.bf16.msra.mxu1 %v3360_v40  ;;  %3107 = vmatprep.subr.bf16.mxu0 %v3106_v45  ;;  %v835_v40 = vld [vmem:[%s5041_s17 + $0xe90] sm:$0xff]  ;;  %v3370_v45 = vpack.c.bf16 %v840_v30, %v836_v29  ;;  %v3116_v51 = vpack.c.bf16 %v837_v31, %v833_v56  ;;  %v3122_v29 = vpack.c.bf16 %v854_v37, %v850_v33  ;;  %v849_v30 = vld [vmem:[%s5041_s17 + $0xf00] sm:$0xff]  ;;  %v858_v31 = vld [vmem:[%s5041_s17 + $0xf48] sm:$0xff] }
 0x184   : > { %3363 = vmatprep.subr.bf16.mxu1 %v3362_v8  ;;  %v844_v8 = vld [vmem:[%s5041_s17 + $0xed8] sm:$0xff]  ;;  %v3372_v3 = vpack.c.bf16 %v839_v6, %v835_v40  ;;  %v855_v56 = vld [vmem:[%s5041_s17 + $0xf30] sm:$0xff]  ;;  %v862_v40 = vld [vmem:[%s5041_s17 + $0xf68] sm:$0xff] }
 0x185   : > { %v864_v6 = vld [vmem:[%s5041_s17 + $0xf78] sm:$0xff] }
 0x186   : > { %3109 = vmatpush1.bf16.msra.mxu0 %v3108_v18  ;;  %v845_v18 = vld [vmem:[%s5041_s17 + $0xee0] sm:$0xff] }
 0x187   : > { %3365 = vmatpush1.bf16.msra.mxu1 %v3364_v14  ;;  %3111 = vmatprep.subr.bf16.mxu0 %v3110_v27  ;;  %v843_v14 = vld [vmem:[%s5041_s17 + $0xed0] sm:$0xff]  ;;  %v3374_v27 = vpack.c.bf16 %v848_v11, %v844_v8  ;;  %v3120_v61 = vpack.c.bf16 %v845_v18, %v841_v15  ;;  %v3126_v8 = vpack.c.bf16 %v862_v40, %v858_v31  ;;  %v857_v11 = vld [vmem:[%s5041_s17 + $0xf40] sm:$0xff]  ;;  %v866_v18 = vld [vmem:[%s5041_s17 + $0xf88] sm:$0xff] }
 0x188   : > { %3367 = vmatprep.subr.bf16.mxu1 %v3366_v32  ;;  %v852_v32 = vld [vmem:[%s5041_s17 + $0xf18] sm:$0xff]  ;;  %v3376_v4 = vpack.c.bf16 %v847_v7, %v843_v14  ;;  %v863_v15 = vld [vmem:[%s5041_s17 + $0xf70] sm:$0xff]  ;;  %v870_v14 = vld [vmem:[%s5041_s17 + $0xfa8] sm:$0xff] }
 0x189   : > { %v872_v7 = vld [vmem:[%s5041_s17 + $0xfb8] sm:$0xff]  ;;  %v887_v40 = vld [vmem:[#allocation5 + $0x30] sm:$0xff] }
 0x18a   : > { %3113 = vmatpush1.bf16.msra.mxu0 %v3112_v55  ;;  %v853_v55 = vld [vmem:[%s5041_s17 + $0xf20] sm:$0xff] }
 0x18b   : > { %3369 = vmatpush1.bf16.msra.mxu1 %v3368_v59  ;;  %3115 = vmatprep.subr.bf16.mxu0 %v3114_v54  ;;  %v851_v59 = vld [vmem:[%s5041_s17 + $0xf10] sm:$0xff]  ;;  %v3378_v54 = vpack.c.bf16 %v856_v50, %v852_v32  ;;  %v3124_v43 = vpack.c.bf16 %v853_v55, %v849_v30  ;;  %v3130_v32 = vpack.c.bf16 %v870_v14, %v866_v18  ;;  %v865_v50 = vld [vmem:[%s5041_s17 + $0xf80] sm:$0xff]  ;;  %v874_v55 = vld [vmem:[%s5041_s17 + $0xfc8] sm:$0xff] }
 0x18c   : > { %3371 = vmatprep.subr.bf16.mxu1 %v3370_v45  ;;  %v860_v45 = vld [vmem:[%s5041_s17 + $0xf58] sm:$0xff]  ;;  %v3380_v17 = vpack.c.bf16 %v855_v56, %v851_v59  ;;  %v871_v30 = vld [vmem:[%s5041_s17 + $0xfb0] sm:$0xff]  ;;  %v878_v59 = vld [vmem:[%s5041_s17 + $0xfe8] sm:$0xff] }
 0x18d   : > { %v880_v56 = vld [vmem:[%s5041_s17 + $0xff8] sm:$0xff]  ;;  %v4091_v14 = vld [vmem:[%s5041_s17 + $0x48] sm:$0xff] }
 0x18e   : > { %3117 = vmatpush1.bf16.msra.mxu0 %v3116_v51  ;;  %v861_v51 = vld [vmem:[%s5041_s17 + $0xf60] sm:$0xff] }
 0x18f   : > { %3373 = vmatpush1.bf16.msra.mxu1 %v3372_v3  ;;  %3119 = vmatprep.subr.bf16.mxu0 %v3118_v9  ;;  %v859_v3 = vld [vmem:[%s5041_s17 + $0xf50] sm:$0xff]  ;;  %v3382_v9 = vpack.c.bf16 %v864_v6, %v860_v45  ;;  %v3128_v33 = vpack.c.bf16 %v861_v51, %v857_v11 }
 0x190   : > { %3375 = vmatprep.subr.bf16.mxu1 %v3374_v27  ;;  %v868_v27 = vld [vmem:[%s5041_s17 + $0xf98] sm:$0xff]  ;;  %v3384_v37 = vpack.c.bf16 %v863_v15, %v859_v3  ;;  %v895_v45 = vld [vmem:[#allocation7 + $0x30] sm:$0xff] }
 0x191   : > { %v875_v51 = vld [vmem:[%s5041_s17 + $0xfd0] sm:$0xff] }
 0x192   : > { %3121 = vmatpush1.bf16.msra.mxu0 %v3120_v61  ;;  %v869_v61 = vld [vmem:[%s5041_s17 + $0xfa0] sm:$0xff]  ;;  %v879_v3 = vld [vmem:[%s5041_s17 + $0xff0] sm:$0xff] }
 0x193   : > { %3377 = vmatpush1.bf16.msra.mxu1 %v3376_v4  ;;  %3123 = vmatprep.subr.bf16.mxu0 %v3122_v29  ;;  %v867_v4 = vld [vmem:[%s5041_s17 + $0xf90] sm:$0xff]  ;;  %v3386_v29 = vpack.c.bf16 %v872_v7, %v868_v27  ;;  %v3132_v31 = vpack.c.bf16 %v869_v61, %v865_v50  ;;  %v3392_v18 = vpack.c.bf16 %v879_v3, %v875_v51  ;;  %v1522_v27 = vand.u32 2147483647, %v4091_v14  ;;  %v4092_v7 = vld [vmem:[%s5041_s17 + $0x68] sm:$0xff]  ;;  %v4094_v50 = vld [vmem:[%s5041_s17 + $0x78] sm:$0xff] }
 0x194   : > { %3379 = vmatprep.subr.bf16.mxu1 %v3378_v54  ;;  %v876_v54 = vld [vmem:[%s5041_s17 + $0xfd8] sm:$0xff]  ;;  %v3388_v6 = vpack.c.bf16 %v871_v30, %v867_v4  ;;  %v1528_v61 = vand.u32 2147483647, %v4094_v50  ;;  %v4095_v30 = vld [vmem:[%s5041_s17 + $0x88] sm:$0xff] }
 0x195   : > { %v3390_v11 = vpack.c.bf16 %v880_v56, %v876_v54  ;;  %v4104_v14 = vld [vmem:[%s5041_s17 + $0x128] sm:$0xff] }
 0x196   : > { %3125 = vmatpush1.bf16.msra.mxu0 %v3124_v43  ;;  %v3134_v43 = vpack.c.bf16 %v878_v59, %v874_v55  ;;  %v1530_v55 = vand.u32 2147483647, %v4095_v30  ;;  %v4096_v59 = vld [vmem:[%s5041_s17 + $0xa8] sm:$0xff] }
 0x197   : > { %3381 = vmatpush1.bf16.msra.mxu1 %v3380_v17  ;;  %3127 = vmatprep.subr.bf16.mxu0 %v3126_v8  ;;  %v873_v17 = vld [vmem:[%s5041_s17 + $0xfc0] sm:$0xff]  ;;  %v1534_v54 = vand.u32 2147483647, %v4096_v59 }
 0x198   : > { %3383 = vmatprep.subr.bf16.mxu1 %v3382_v9  ;;  %v877_v8 = vld [vmem:[%s5041_s17 + $0xfe0] sm:$0xff]  ;;  %v903_v9 = vadd.f32 %v895_v45, %v887_v40  ;;  %v4098_v45 = vld [vmem:[%s5041_s17 + $0xb8] sm:$0xff] }
 0x199   : > { %v3136_v15 = vpack.c.bf16 %v877_v8, %v873_v17  ;;  %v3402_v17 = vpack.c.bf16 %v1534_v54, %v1530_v55  ;;  %v4109_v55 = vld [vmem:[%s5041_s17 + $0x158] sm:$0xff] }
 0x19a   : > { %3129 = vmatpush1.bf16.msra.mxu0 %v3128_v33  ;;  %v1526_v33 = vand.u32 2147483647, %v4092_v7  ;;  %v911_v4 = vmul.f32 0.5, %v903_v9  ;;  %v4101_v9 = vld [vmem:[%s5041_s17 + $0xd8] sm:$0xff]  ;;  %v1556_v59 = vand.u32 2147483647, %v4109_v55 }
 0x19b   : > { %3385 = vmatpush1.bf16.msra.mxu1 %v3384_v37  ;;  %3131 = vmatprep.subr.bf16.mxu0 %v3130_v32  ;;  %v4093_v37 = vld [vmem:[%s5041_s17 + $0x58] sm:$0xff] }
 0x19c   : > { %3387 = vmatprep.subr.bf16.mxu1 %v3386_v29  ;;  %v1524_v32 = vand.u32 2147483647, %v4093_v37  ;;  %v3398_v29 = vpack.c.bf16 %v1526_v33, %v1522_v27  ;;  %v1550_v27 = vand.u32 2147483647, %v4104_v14  ;;  %v4105_v33 = vld [vmem:[%s5041_s17 + $0x118] sm:$0xff] }
 0x19d   : > { %v1548_v37 = vand.u32 2147483647, %v4105_v33  ;;  %v4110_v54 = vld [vmem:[%s5041_s17 + $0x178] sm:$0xff] }
 0x19e   : > { %3133 = vmatpush1.bf16.msra.mxu0 %v3132_v31  ;;  %v3654_v56 = vpack.c.bf16 %v1528_v61, %v1524_v32  ;;  %v4097_v31 = vld [vmem:[%s5041_s17 + $0x98] sm:$0xff] }
 0x19f   : > { %3389 = vmatpush1.bf16.msra.mxu1 %v3388_v6  ;;  %3135 = vmatprep.subr.bf16.mxu0 %v3134_v43  ;;  %v1532_v40 = vand.u32 2147483647, %v4097_v31  ;;  %v1536_v6 = vand.u32 2147483647, %v4098_v45  ;;  %v6340_v43 = vsub.f32 %v5177_v48, %v5175_v47  ;;  %v1540_v47 = vand.u32 2147483647, %v4101_v9 }
 0x1a0   : > { %3391 = vmatprep.subr.bf16.mxu1 %v3390_v11  ;;  %v4100_v11 = vld [vmem:[%s5041_s17 + $0xe8] sm:$0xff]  ;;  %v4102_v48 = vld [vmem:[%s5041_s17 + $0xf8] sm:$0xff] }
 0x1a1   : > { %v1542_v51 = vand.u32 2147483647, %v4100_v11  ;;  %v3658_v3 = vpack.c.bf16 %v1536_v6, %v1532_v40  ;;  %v4106_v32 = vld [vmem:[%s5041_s17 + $0x138] sm:$0xff]  ;;  %v4112_v40 = vld [vmem:[%s5041_s17 + $0x1a8] sm:$0xff] }
 0x1a2   : > { %3137 = vmatpush1.bf16.msra.mxu0 %v3136_v15  ;;  %v1544_v15 = vand.u32 2147483647, %v4102_v48  ;;  %v1552_v50 = vand.u32 2147483647, %v4106_v32  ;;  %v1566_v45 = vand.u32 2147483647, %v4112_v40 }
 0x1a3   : > { %3393 = vmatpush1.bf16.msra.mxu1 %v3392_v18  ;;  %3395 = vmatprep.subr.bf16.mxu0 %v5359_v34  ;;  %v922_v34 = vmul.f32 0.5, %v6340_v43  ;;  %v4113_v43 = vld [vmem:[%s5041_s17 + $0x198] sm:$0xff]  ;;  %v4116_v11 = vld [vmem:[%s5041_s17 + $0x1e8] sm:$0xff] }
 0x1a4   : > { %3651 = vmatprep.subr.bf16.mxu1 %v5361_v35  ;;  %v4099_v35 = vld [vmem:[%s5041_s17 + $0xc8] sm:$0xff]  ;;  %v3662_v7 = vpack.c.bf16 %v1544_v15, %v1540_v47  ;;  %v3666_v30 = vpack.c.bf16 %v1552_v50, %v1548_v37  ;;  %v4117_v9 = vld [vmem:[%s5041_s17 + $0x1d8] sm:$0xff] }
 0x1a5   : > { %1211 = vmatmul.mubr.f32.vlgmr.msra.gmra.mrb[0].mxu0 %v911_v4  ;;  %v1538_v8 = vand.u32 2147483647, %v4099_v35  ;;  %v1572_v47 = vand.u32 2147483647, %v4117_v9  ;;  %v4118_v48 = vld [vmem:[%s5041_s17 + $0x1f8] sm:$0xff]  ;;  %v4124_v50 = vld [vmem:[%s5041_s17 + $0x268] sm:$0xff] }
 0x1a6   : > { %1495 = vmatmul.mubr.f32.vlgmr.msra.gmra.mrb[0].mxu1 %v911_v4  ;;  %3397 = vmatpush1.bf16.msra.mxu0 %v5070_v19  ;;  %v4108_v4 = vld [vmem:[%s5041_s17 + $0x168] sm:$0xff]  ;;  %v1576_v15 = vand.u32 2147483647, %v4118_v48  ;;  %v4122_v33 = vld [vmem:[%s5041_s17 + $0x238] sm:$0xff] }
 0x1a7   : > { %3653 = vmatpush1.bf16.msra.mxu1 %v5075_v24  ;;  %3399 = vmatprep.subr.bf16.mxu0 %v3398_v29  ;;  %v3406_v19 = vpack.c.bf16 %v1542_v51, %v1538_v8  ;;  %v4103_v24 = vld [vmem:[%s5041_s17 + $0x108] sm:$0xff]  ;;  %v1558_v29 = vand.u32 2147483647, %v4108_v4  ;;  %v1574_v51 = vand.u32 2147483647, %v4116_v11  ;;  %v4137_v9 = vld [vmem:[%s5041_s17 + $0x318] sm:$0xff] }
 0x1a8   : > { %3655 = vmatprep.subr.bf16.mxu1 %v3654_v56  ;;  %2089 = vmatprep.mubr.f32.mxu0 %v922_v34  ;;  %v1546_v18 = vand.u32 2147483647, %v4103_v24  ;;  %v1560_v56 = vand.u32 2147483647, %v4110_v54  ;;  %v4120_v24 = vld [vmem:[%s5041_s17 + $0x228] sm:$0xff]  ;;  %v3678_v14 = vpack.c.bf16 %v1576_v15, %v1572_v47  ;;  %v4138_v48 = vld [vmem:[%s5041_s17 + $0x338] sm:$0xff] }
 0x1a9   : > { %2373 = vmatprep.mubr.f32.mxu1 %v922_v34  ;;  %v1564_v34 = vand.u32 2147483647, %v4113_v43  ;;  %v1584_v37 = vand.u32 2147483647, %v4122_v33  ;;  %v4136_v11 = vld [vmem:[%s5041_s17 + $0x328] sm:$0xff] }
 0x1aa   : > { %3401 = vmatpush1.bf16.msra.mxu0 %v5375_v62  ;;  %v3410_v62 = vpack.c.bf16 %v1550_v27, %v1546_v18  ;;  %v3670_v6 = vpack.c.bf16 %v1560_v56, %v1556_v59  ;;  %v1582_v18 = vand.u32 2147483647, %v4120_v24  ;;  %v4121_v27 = vld [vmem:[%s5041_s17 + $0x218] sm:$0xff]  ;;  %v4128_v59 = vld [vmem:[%s5041_s17 + $0x2a8] sm:$0xff]  ;;  %v1612_v47 = vand.u32 2147483647, %v4137_v9 }
 0x1ab   : > { %3657 = vmatpush1.bf16.msra.mxu1 %v5381_v5  ;;  %3403 = vmatprep.subr.bf16.mxu0 %v3402_v17  ;;  %v4107_v5 = vld [vmem:[%s5041_s17 + $0x148] sm:$0xff]  ;;  %v4114_v17 = vld [vmem:[%s5041_s17 + $0x1b8] sm:$0xff]  ;;  %v1598_v54 = vand.u32 2147483647, %v4128_v59  ;;  %v1616_v15 = vand.u32 2147483647, %v4138_v48 }
 0x1ac   : > { %3659 = vmatprep.subr.bf16.mxu1 %v3658_v3  ;;  %v1554_v61 = vand.u32 2147483647, %v4107_v5  ;;  %v1568_v35 = vand.u32 2147483647, %v4114_v17  ;;  %v4133_v17 = vld [vmem:[%s5041_s17 + $0x2d8] sm:$0xff] }
 0x1ad   : > { %v3698_v24 = vpack.c.bf16 %v1616_v15, %v1612_v47  ;;  %v4163_v47 = vld [vmem:[#allocation5 + $0x18] sm:$0xff]  ;;  %v6341_v15 = vld [vmem:[#allocation21_spill] sm:$0xff] }
 0x1ae   : > { %3405 = vmatpush1.bf16.msra.mxu0 %v5389_v20  ;;  %v3414_v20 = vpack.c.bf16 %v1558_v29, %v1554_v61  ;;  %v3674_v3 = vpack.c.bf16 %v1568_v35, %v1564_v34  ;;  %v4125_v61 = vld [vmem:[%s5041_s17 + $0x258] sm:$0xff]  ;;  %v1604_v35 = vand.u32 2147483647, %v4133_v17 }
 0x1af   : > { %3661 = vmatpush1.bf16.msra.mxu1 %v5395_v28  ;;  %3407 = vmatprep.subr.bf16.mxu0 %v3406_v19  ;;  %v4111_v28 = vld [vmem:[%s5041_s17 + $0x188] sm:$0xff]  ;;  %v1588_v4 = vand.u32 2147483647, %v4125_v61  ;;  %v4126_v29 = vld [vmem:[%s5041_s17 + $0x278] sm:$0xff] }
 0x1b0   : > { %3663 = vmatprep.subr.bf16.mxu1 %v3662_v7  ;;  %v1562_v31 = vand.u32 2147483647, %v4111_v28  ;;  %v1580_v7 = vand.u32 2147483647, %v4121_v27  ;;  %v4142_v27 = vld [vmem:[%s5041_s17 + $0x378] sm:$0xff] }
 0x1b2   : > { %3409 = vmatpush1.bf16.msra.mxu0 %v5411_v63  ;;  %v3418_v63 = vpack.c.bf16 %v1566_v45, %v1562_v31  ;;  %v3682_v5 = vpack.c.bf16 %v1584_v37, %v1580_v7  ;;  %v4130_v31 = vld [vmem:[%s5041_s17 + $0x2b8] sm:$0xff]  ;;  %v1624_v7 = vand.u32 2147483647, %v4142_v27  ;;  %v4144_v37 = vld [vmem:[%s5041_s17 + $0x3a8] sm:$0xff]  ;;  %v4167_v27 = vld [vmem:[%s5041_s17 + $0x450] sm:$0xff] }
 0x1b3   : > { %3665 = vmatpush1.bf16.msra.mxu1 %v5413_v1  ;;  %3411 = vmatprep.subr.bf16.mxu0 %v3410_v62  ;;  %v4115_v1 = vld [vmem:[%s5041_s17 + $0x1c8] sm:$0xff]  ;;  %v1590_v62 = vand.u32 2147483647, %v4124_v50  ;;  %v1600_v40 = vand.u32 2147483647, %v4130_v31  ;;  %v4153_v31 = vld [vmem:[%s5041_s17 + $0x418] sm:$0xff] }
 0x1b4   : > { %3667 = vmatprep.subr.bf16.mxu1 %v3666_v30  ;;  %v1570_v8 = vand.u32 2147483647, %v4115_v1  ;;  %v1592_v30 = vand.u32 2147483647, %v4126_v29 }
 0x1b6   : > { %3413 = vmatpush1.bf16.msra.mxu0 %v5423_v16  ;;  %v3422_v16 = vpack.c.bf16 %v1574_v51, %v1570_v8  ;;  %v3686_v56 = vpack.c.bf16 %v1592_v30, %v1588_v4  ;;  %v1614_v51 = vand.u32 2147483647, %v4136_v11  ;;  %v4148_v4 = vld [vmem:[%s5041_s17 + $0x3e8] sm:$0xff]  ;;  %v4161_v11 = vld [vmem:[%s5041_s17 + $0x458] sm:$0xff] }
 0x1b7   : > { %3669 = vmatpush1.bf16.msra.mxu1 %v5429_v26  ;;  %3415 = vmatprep.subr.bf16.mxu0 %v3414_v20  ;;  %v4119_v26 = vld [vmem:[%s5041_s17 + $0x208] sm:$0xff]  ;;  %v4129_v20 = vld [vmem:[%s5041_s17 + $0x298] sm:$0xff]  ;;  %v1638_v29 = vand.u32 2147483647, %v4148_v4 }
 0x1b8   : > { %3671 = vmatprep.subr.bf16.mxu1 %v3670_v6  ;;  %v1578_v19 = vand.u32 2147483647, %v4119_v26  ;;  %v1596_v28 = vand.u32 2147483647, %v4129_v20  ;;  %v4132_v6 = vld [vmem:[%s5041_s17 + $0x2e8] sm:$0xff] }
 0x1b9   : > { %v1606_v43 = vand.u32 2147483647, %v4132_v6  ;;  %v4140_v26 = vld [vmem:[%s5041_s17 + $0x368] sm:$0xff] }
 0x1ba   : > { %3417 = vmatpush1.bf16.msra.mxu0 %v5439_v44  ;;  %v3426_v44 = vpack.c.bf16 %v1582_v18, %v1578_v19  ;;  %v3690_v34 = vpack.c.bf16 %v1600_v40, %v1596_v28  ;;  %v1622_v19 = vand.u32 2147483647, %v4140_v26  ;;  %v4141_v18 = vld [vmem:[%s5041_s17 + $0x358] sm:$0xff]  ;;  %v1644_v40 = vand.u32 2147483647, %v4153_v31  ;;  %v4165_v26 = vld [vmem:[%s5041_s17 + $0x440] sm:$0xff] }
 0x1bb   : > { %3673 = vmatpush1.bf16.msra.mxu1 %v5445_v53  ;;  %3419 = vmatprep.subr.bf16.mxu0 %v3418_v63  ;;  %v4123_v53 = vld [vmem:[%s5041_s17 + $0x248] sm:$0xff]  ;;  %v4134_v63 = vld [vmem:[%s5041_s17 + $0x2f8] sm:$0xff] }
 0x1bc   : > { %3675 = vmatprep.subr.bf16.mxu1 %v3674_v3  ;;  %v1586_v32 = vand.u32 2147483647, %v4123_v53  ;;  %v1608_v1 = vand.u32 2147483647, %v4134_v63 }
 0x1be   : > { %3421 = vmatpush1.bf16.msra.mxu0 %v5455_v12  ;;  %v3430_v12 = vpack.c.bf16 %v1590_v62, %v1586_v32  ;;  %v3694_v3 = vpack.c.bf16 %v1608_v1, %v1604_v35  ;;  %v4145_v32 = vld [vmem:[%s5041_s17 + $0x398] sm:$0xff]  ;;  %v4158_v35 = vld [vmem:[%s5041_s17 + $0x430] sm:$0xff]  ;;  %v4159_v1 = vld [vmem:[%s5041_s17 + $0x448] sm:$0xff] }
 0x1bf   : > { %3677 = vmatpush1.bf16.msra.mxu1 %v5461_v22  ;;  %3423 = vmatprep.subr.bf16.mxu0 %v3422_v16  ;;  %v4127_v22 = vld [vmem:[%s5041_s17 + $0x288] sm:$0xff]  ;;  %v1628_v50 = vand.u32 2147483647, %v4145_v32  ;;  %v4146_v62 = vld [vmem:[%s5041_s17 + $0x3b8] sm:$0xff]  ;;  %v1647_v63 = vand.u32 2147483647, %v4158_v35 }
 0x1c0   : > { %3679 = vmatprep.subr.bf16.mxu1 %v3678_v14  ;;  %v1594_v55 = vand.u32 2147483647, %v4127_v22  ;;  %v1620_v14 = vand.u32 2147483647, %v4141_v18  ;;  %v4170_v32 = vld [vmem:[%s5041_s17 + $0x4a8] sm:$0xff]  ;;  %v4183_v35 = vld [vmem:[%s5041_s17 + $0x4d0] sm:$0xff] }
 0x1c2   : > { %3425 = vmatpush1.bf16.msra.mxu0 %v5471_v42  ;;  %v3434_v42 = vpack.c.bf16 %v1598_v54, %v1594_v55  ;;  %v3702_v53 = vpack.c.bf16 %v1624_v7, %v1620_v14  ;;  %v4150_v55 = vld [vmem:[%s5041_s17 + $0x3f8] sm:$0xff]  ;;  %v1651_v7 = vand.u32 2147483647, %v4167_v27 }
 0x1c3   : > { %3681 = vmatpush1.bf16.msra.mxu1 %v5477_v52  ;;  %3427 = vmatprep.subr.bf16.mxu0 %v3426_v44  ;;  %v4131_v52 = vld [vmem:[%s5041_s17 + $0x2c8] sm:$0xff]  ;;  %v1630_v44 = vand.u32 2147483647, %v4144_v37  ;;  %v1640_v59 = vand.u32 2147483647, %v4150_v55  ;;  %v4175_v55 = vld [vmem:[%s5041_s17 + $0x490] sm:$0xff] }
 0x1c4   : > { %3683 = vmatprep.subr.bf16.mxu1 %v3682_v5  ;;  %v1602_v45 = vand.u32 2147483647, %v4131_v52  ;;  %v1632_v5 = vand.u32 2147483647, %v4146_v62  ;;  %v4171_v62 = vld [vmem:[%s5041_s17 + $0x498] sm:$0xff] }
 0x1c6   : > { %3429 = vmatpush1.bf16.msra.mxu0 %v5487_v13  ;;  %v3438_v13 = vpack.c.bf16 %v1606_v43, %v1602_v45  ;;  %v3706_v30 = vpack.c.bf16 %v1632_v5, %v1628_v50  ;;  %v4156_v45 = vld [vmem:[%s5041_s17 + $0x420] sm:$0xff]  ;;  %v4157_v43 = vld [vmem:[%s5041_s17 + $0x410] sm:$0xff]  ;;  %v1662_v50 = vand.u32 2147483647, %v4170_v32  ;;  %v1660_v5 = vand.u32 2147483647, %v4171_v62 }
 0x1c7   : > { %3685 = vmatpush1.bf16.msra.mxu1 %v5493_v25  ;;  %3431 = vmatprep.subr.bf16.mxu0 %v3430_v12  ;;  %v4135_v25 = vld [vmem:[%s5041_s17 + $0x308] sm:$0xff]  ;;  %v4149_v12 = vld [vmem:[%s5041_s17 + $0x3d8] sm:$0xff]  ;;  %v1645_v6 = vand.u32 2147483647, %v4156_v45  ;;  %v4181_v45 = vld [vmem:[%s5041_s17 + $0x4c0] sm:$0xff] }
 0x1c8   : > { %3687 = vmatprep.subr.bf16.mxu1 %v3686_v56  ;;  %v1610_v8 = vand.u32 2147483647, %v4135_v25  ;;  %v1636_v22 = vand.u32 2147483647, %v4149_v12  ;;  %v4152_v56 = vld [vmem:[%s5041_s17 + $0x428] sm:$0xff]  ;;  %v4174_v12 = vld [vmem:[%s5041_s17 + $0x4a0] sm:$0xff] }
 0x1c9   : > { %v1646_v20 = vand.u32 2147483647, %v4152_v56  ;;  %v4160_v25 = vld [vmem:[%s5041_s17 + $0x468] sm:$0xff]  ;;  %v4195_v32 = vld [vmem:[%s5041_s17 + $0x558] sm:$0xff] }
 0x1ca   : > { %3433 = vmatpush1.bf16.msra.mxu0 %v5503_v46  ;;  %v3442_v46 = vpack.c.bf16 %v1614_v51, %v1610_v8  ;;  %v3710_v28 = vpack.c.bf16 %v1640_v59, %v1636_v22  ;;  %v1652_v51 = vand.u32 2147483647, %v4161_v11  ;;  %v1661_v22 = vand.u32 2147483647, %v4174_v12  ;;  %v4177_v56 = vld [vmem:[%s5041_s17 + $0x4c8] sm:$0xff] }
 0x1cb   : > { %3689 = vmatpush1.bf16.msra.mxu1 %v5509_v0  ;;  %3435 = vmatprep.subr.bf16.mxu0 %v3434_v42  ;;  %v4139_v0 = vld [vmem:[%s5041_s17 + $0x348] sm:$0xff]  ;;  %v4154_v42 = vld [vmem:[%s5041_s17 + $0x438] sm:$0xff]  ;;  %v1659_v59 = vand.u32 2147483647, %v4175_v55 }
 0x1cc   : > { %3691 = vmatprep.subr.bf16.mxu1 %v3690_v34  ;;  %v1618_v16 = vand.u32 2147483647, %v4139_v0  ;;  %v1648_v52 = vand.u32 2147483647, %v4154_v42  ;;  %v1643_v34 = vand.u32 2147483647, %v4157_v43 }
 0x1cd   : > { %v4179_v42 = vld [vmem:[%s5041_s17 + $0x4d8] sm:$0xff]  ;;  %v4182_v43 = vld [vmem:[%s5041_s17 + $0x4e0] sm:$0xff] }
 0x1ce   : > { %3437 = vmatpush1.bf16.msra.mxu0 %v5519_v21  ;;  %v3446_v21 = vpack.c.bf16 %v1622_v19, %v1618_v16  ;;  %v3714_v8 = vpack.c.bf16 %v1648_v52, %v1644_v40  ;;  %v1649_v19 = vand.u32 2147483647, %v4165_v26  ;;  %v1668_v52 = vand.u32 2147483647, %v4179_v42 }
 0x1cf   : > { %3693 = vmatpush1.bf16.msra.mxu1 %v5525_v36  ;;  %3439 = vmatprep.subr.bf16.mxu0 %v3438_v13  ;;  %v4143_v36 = vld [vmem:[%s5041_s17 + $0x388] sm:$0xff]  ;;  %v1650_v13 = vand.u32 2147483647, %v4159_v1  ;;  %v4184_v1 = vld [vmem:[%s5041_s17 + $0x4f0] sm:$0xff] }
 0x1d0   : > { %3695 = vmatprep.subr.bf16.mxu1 %v3694_v3  ;;  %v1626_v33 = vand.u32 2147483647, %v4143_v36  ;;  %v4162_v3 = vld [vmem:[%s5041_s17 + $0x478] sm:$0xff] }
 0x1d1   : > { %v1656_v9 = vand.u32 2147483647, %v4162_v3 }
 0x1d2   : > { %3441 = vmatpush1.bf16.msra.mxu0 %v5535_v2  ;;  %v3450_v2 = vpack.c.bf16 %v1630_v44, %v1626_v33  ;;  %v3716_v33 = vpack.c.bf16 %v1647_v63, %v1643_v34  ;;  %v4169_v44 = vld [vmem:[%s5041_s17 + $0x488] sm:$0xff]  ;;  %v1669_v34 = vand.u32 2147483647, %v4182_v43  ;;  %v1667_v63 = vand.u32 2147483647, %v4183_v35  ;;  %v4207_v43 = vld [vmem:[%s5041_s17 + $0x590] sm:$0xff] }
 0x1d3   : > { %3697 = vmatpush1.bf16.msra.mxu1 %v5541_v10  ;;  %3443 = vmatprep.subr.bf16.mxu0 %v3442_v46  ;;  %v4147_v10 = vld [vmem:[%s5041_s17 + $0x3c8] sm:$0xff]  ;;  %v4208_v35 = vld [vmem:[%s5041_s17 + $0x5b0] sm:$0xff] }
 0x1d4   : > { %3699 = vmatprep.subr.bf16.mxu1 %v3698_v24  ;;  %v1634_v61 = vand.u32 2147483647, %v4147_v10  ;;  %v6342_v46 = vld [vmem:[#allocation20_spill] sm:$0xff]  ;;  %v4166_v24 = vld [vmem:[%s5041_s17 + $0x460] sm:$0xff] }
 0x1d5   : > { %v6343_v0 = vsub.f32 %v6341_v15, %v6342_v46  ;;  %v1653_v18 = vand.u32 2147483647, %v4166_v24 }
 0x1d6   : > { %3445 = vmatpush1.bf16.msra.mxu0 %v5551_v41  ;;  %v3454_v41 = vpack.c.bf16 %v1638_v29, %v1634_v61  ;;  %v4173_v29 = vld [vmem:[%s5041_s17 + $0x480] sm:$0xff] }
 0x1d7   : > { %3701 = vmatpush1.bf16.msra.mxu1 %v5557_v58  ;;  %3447 = vmatprep.subr.bf16.mxu0 %v3446_v21  ;;  %v4151_v58 = vld [vmem:[%s5041_s17 + $0x408] sm:$0xff]  ;;  %v921_v16 = vmul.f32 0.5, %v6343_v0  ;;  %v4168_v21 = vld [vmem:[%s5041_s17 + $0x470] sm:$0xff] }
 0x1d8   : > { %3703 = vmatprep.subr.bf16.mxu1 %v3702_v53  ;;  %v1642_v54 = vand.u32 2147483647, %v4151_v58  ;;  %v1655_v36 = vand.u32 2147483647, %v4168_v21  ;;  %v1658_v53 = vand.u32 2147483647, %v4169_v44 }
 0x1d9   : > { %v4176_v58 = vld [vmem:[%s5041_s17 + $0x4b0] sm:$0xff] }
 0x1da   : > { %3449 = vmatpush1.bf16.msra.mxu0 %v5571_v38  ;;  %v4155_v38 = vld [vmem:[%s5041_s17 + $0x400] sm:$0xff]  ;;  %v3458_v17 = vpack.c.bf16 %v1646_v20, %v1642_v54  ;;  %v3720_v4 = vpack.c.bf16 %v1655_v36, %v1651_v7  ;;  %v1663_v54 = vand.u32 2147483647, %v4176_v58  ;;  %v1666_v20 = vand.u32 2147483647, %v4177_v56  ;;  %v4192_v7 = vld [vmem:[%s5041_s17 + $0x530] sm:$0xff] }
 0x1db   : > { %3705 = vmatpush1.bf16.msra.mxu1 %v5573_v39  ;;  %3451 = vmatprep.subr.bf16.mxu0 %v3450_v2  ;;  %v1641_v39 = vand.u32 2147483647, %v4155_v38  ;;  %v4172_v2 = vld [vmem:[%s5041_s17 + $0x4b8] sm:$0xff]  ;;  %v1679_v21 = vand.u32 2147483647, %v4192_v7  ;;  %v4193_v36 = vld [vmem:[%s5041_s17 + $0x548] sm:$0xff] }
 0x1dc   : > { %3707 = vmatprep.subr.bf16.mxu1 %v3706_v30  ;;  %v1664_v10 = vand.u32 2147483647, %v4172_v2  ;;  %v1657_v30 = vand.u32 2147483647, %v4173_v29  ;;  %v4180_v38 = vld [vmem:[%s5041_s17 + $0x4f8] sm:$0xff]  ;;  %v4202_v58 = vld [vmem:[%s5041_s17 + $0x5a8] sm:$0xff] }
 0x1dd   : > { %v3460_v14 = vpack.c.bf16 %v1645_v6, %v1641_v39  ;;  %v1672_v39 = vand.u32 2147483647, %v4180_v38  ;;  %v1665_v6 = vand.u32 2147483647, %v4181_v45  ;;  %v4205_v38 = vld [vmem:[%s5041_s17 + $0x580] sm:$0xff]  ;;  %v4218_v7 = vld [vmem:[%s5041_s17 + $0x628] sm:$0xff] }
 0x1de   : > { %3453 = vmatpush1.bf16.msra.mxu0 %v5585_v57  ;;  %v1654_v57 = vand.u32 2147483647, %v4160_v25  ;;  %v3722_v40 = vpack.c.bf16 %v1664_v10, %v1660_v5  ;;  %v3724_v25 = vpack.c.bf16 %v1663_v54, %v1659_v59  ;;  %v4197_v5 = vld [vmem:[%s5041_s17 + $0x540] sm:$0xff]  ;;  %v4201_v59 = vld [vmem:[%s5041_s17 + $0x588] sm:$0xff]  ;;  %v1694_v54 = vand.u32 2147483647, %v4202_v58 }
 0x1df   : > { %3709 = vmatpush1.bf16.msra.mxu1 %v5589_v23  ;;  %3455 = vmatprep.subr.bf16.mxu0 %v3454_v41  ;;  %v4164_v23 = vld [vmem:[#allocation7 + $0x18] sm:$0xff]  ;;  %v3466_v41 = vpack.c.bf16 %v1662_v50, %v1658_v53  ;;  %v3472_v46 = vpack.c.bf16 %v1669_v34, %v1665_v6  ;;  %v1684_v50 = vand.u32 2147483647, %v4195_v32  ;;  %v1681_v2 = vand.u32 2147483647, %v4197_v5  ;;  %v4198_v10 = vld [vmem:[%s5041_s17 + $0x560] sm:$0xff] }
 0x1e0   : > { %3711 = vmatprep.subr.bf16.mxu1 %v3710_v28  ;;  %v916_v48 = vsub.f32 %v4164_v23, %v4163_v47  ;;  %v3462_v37 = vpack.c.bf16 %v1654_v57, %v1650_v13  ;;  %v4178_v28 = vld [vmem:[%s5041_s17 + $0x4e8] sm:$0xff]  ;;  %v1671_v13 = vand.u32 2147483647, %v4184_v1  ;;  %v4187_v47 = vld [vmem:[%s5041_s17 + $0x518] sm:$0xff]  ;;  %v4206_v45 = vld [vmem:[%s5041_s17 + $0x5a0] sm:$0xff] }
 0x1e1   : > { %v1670_v31 = vand.u32 2147483647, %v4178_v28  ;;  %v1676_v23 = vand.u32 2147483647, %v4187_v47  ;;  %v1693_v6 = vand.u32 2147483647, %v4206_v45 }
 0x1e2   : > { %3457 = vmatpush1.bf16.msra.mxu0 %v5597_v49  ;;  %v3718_v49 = vpack.c.bf16 %v1656_v9, %v1652_v51  ;;  %v924_v61 = vmul.f32 0.5, %v916_v48  ;;  %v4186_v51 = vld [vmem:[%s5041_s17 + $0x528] sm:$0xff]  ;;  %v3726_v9 = vpack.c.bf16 %v1672_v39, %v1668_v52  ;;  %v4188_v48 = vld [vmem:[%s5041_s17 + $0x538] sm:$0xff]  ;;  %v3728_v0 = vpack.c.bf16 %v1671_v13, %v1667_v63  ;;  %v4213_v47 = vld [vmem:[%s5041_s17 + $0x5c0] sm:$0xff] }
 0x1e3   : > { %3713 = vmatpush1.bf16.msra.mxu1 %v5601_v60  ;;  %3459 = vmatprep.subr.bf16.mxu0 %v3458_v17  ;;  %v3464_v60 = vpack.c.bf16 %v1653_v18, %v1649_v19  ;;  %v3468_v17 = vpack.c.bf16 %v1661_v22, %v1657_v30  ;;  %v3470_v57 = vpack.c.bf16 %v1670_v31, %v1666_v20  ;;  %v1678_v3 = vand.u32 2147483647, %v4186_v51  ;;  %v4190_v19 = vld [vmem:[%s5041_s17 + $0x520] sm:$0xff]  ;;  %v4191_v18 = vld [vmem:[%s5041_s17 + $0x510] sm:$0xff]  ;;  %v4203_v20 = vld [vmem:[%s5041_s17 + $0x598] sm:$0xff] }
 0x1e4   : > { %3715 = vmatprep.subr.bf16.mxu1 %v3714_v8  ;;  %v4185_v8 = vld [vmem:[%s5041_s17 + $0x508] sm:$0xff]  ;;  %v1680_v15 = vand.u32 2147483647, %v4188_v48  ;;  %v1677_v24 = vand.u32 2147483647, %v4190_v19  ;;  %v4200_v30 = vld [vmem:[%s5041_s17 + $0x570] sm:$0xff] }
 0x1e5   : > { %2090 = vmatmul.mubr.f32.vlgmr.msra.gmra.mrb[2].mxu0 %v921_v16  ;;  %v1674_v11 = vand.u32 2147483647, %v4185_v8  ;;  %v1687_v12 = vand.u32 2147483647, %v4200_v30  ;;  %v1692_v28 = vand.u32 2147483647, %v4203_v20 }
 0x1e6   : > { %3461 = vmatpush1.bf16.msra.mxu0 %v3460_v14  ;;  %2374 = vmatmul.mubr.f32.vlgmr.msra.gmra.mrb[2].mxu1 %v921_v16  ;;  %v4189_v16 = vld [vmem:[%s5041_s17 + $0x500] sm:$0xff]  ;;  %v1675_v14 = vand.u32 2147483647, %v4191_v18  ;;  %v3730_v53 = vpack.c.bf16 %v1680_v15, %v1676_v23  ;;  %v4204_v31 = vld [vmem:[%s5041_s17 + $0x5b8] sm:$0xff]  ;;  %v1689_v39 = vand.u32 2147483647, %v4205_v38 }
 0x1e7   : > { %3717 = vmatpush1.bf16.msra.mxu1 %v3716_v33  ;;  %3463 = vmatprep.subr.bf16.mxu0 %v3462_v37  ;;  %v1673_v26 = vand.u32 2147483647, %v4189_v16  ;;  %v3474_v27 = vpack.c.bf16 %v1678_v3, %v1674_v11  ;;  %v1682_v33 = vand.u32 2147483647, %v4193_v36  ;;  %v4194_v37 = vld [vmem:[%s5041_s17 + $0x568] sm:$0xff]  ;;  %v4211_v11 = vld [vmem:[%s5041_s17 + $0x5d8] sm:$0xff] }
 0x1e8   : > { %3719 = vmatprep.subr.bf16.mxu1 %v3718_v49  ;;  %2160 = vmatprep.mubr.f32.mxu0 %v924_v61  ;;  %v1686_v44 = vand.u32 2147483647, %v4194_v37  ;;  %v4196_v49 = vld [vmem:[%s5041_s17 + $0x578] sm:$0xff]  ;;  %v3732_v22 = vpack.c.bf16 %v1679_v21, %v1675_v14  ;;  %v1691_v34 = vand.u32 2147483647, %v4207_v43  ;;  %v4209_v1 = vld [vmem:[%s5041_s17 + $0x5c8] sm:$0xff] }
 0x1e9   : > { %2444 = vmatprep.mubr.f32.mxu1 %v924_v61  ;;  %v1688_v62 = vand.u32 2147483647, %v4196_v49  ;;  %v1685_v61 = vand.u32 2147483647, %v4198_v10  ;;  %v1695_v63 = vand.u32 2147483647, %v4208_v35 }
 0x1ea   : > { %3465 = vmatpush1.bf16.msra.mxu0 %v3464_v60  ;;  %v3476_v60 = vpack.c.bf16 %v1677_v24, %v1673_v26  ;;  %v3478_v55 = vpack.c.bf16 %v1686_v44, %v1682_v33  ;;  %v1698_v13 = vand.u32 2147483647, %v4209_v1  ;;  %v1700_v51 = vand.u32 2147483647, %v4211_v11  ;;  %v4212_v3 = vld [vmem:[%s5041_s17 + $0x5f8] sm:$0xff]  ;;  %v4214_v48 = vld [vmem:[%s5041_s17 + $0x5e0] sm:$0xff] }
 0x1eb   : > { %3721 = vmatpush1.bf16.msra.mxu1 %v3720_v4  ;;  %3467 = vmatprep.subr.bf16.mxu0 %v3466_v41  ;;  %v4199_v4 = vld [vmem:[%s5041_s17 + $0x550] sm:$0xff]  ;;  %v1690_v41 = vand.u32 2147483647, %v4201_v59  ;;  %v3734_v56 = vpack.c.bf16 %v1688_v62, %v1684_v50  ;;  %v3480_v42 = vpack.c.bf16 %v1685_v61, %v1681_v2  ;;  %v1697_v23 = vand.u32 2147483647, %v4213_v47  ;;  %v4217_v14 = vld [vmem:[%s5041_s17 + $0x608] sm:$0xff] }
 0x1ec   : > { %3723 = vmatprep.subr.bf16.mxu1 %v3722_v40  ;;  %v1683_v29 = vand.u32 2147483647, %v4199_v4  ;;  %v1696_v40 = vand.u32 2147483647, %v4204_v31  ;;  %v1701_v15 = vand.u32 2147483647, %v4214_v48  ;;  %v3740_v24 = vpack.c.bf16 %v1695_v63, %v1691_v34 }
 0x1ed   : > { %v4216_v26 = vld [vmem:[%s5041_s17 + $0x5f0] sm:$0xff]  ;;  %v1710_v21 = vand.u32 2147483647, %v4218_v7  ;;  %v4219_v33 = vld [vmem:[%s5041_s17 + $0x618] sm:$0xff]  ;;  %v4221_v49 = vld [vmem:[%s5041_s17 + $0x600] sm:$0xff] }
 0x1ee   : > { %3469 = vmatpush1.bf16.msra.mxu0 %v3468_v17  ;;  %v3736_v52 = vpack.c.bf16 %v1687_v12, %v1683_v29  ;;  %v3482_v17 = vpack.c.bf16 %v1694_v54, %v1690_v41  ;;  %v3738_v8 = vpack.c.bf16 %v1696_v40, %v1692_v28  ;;  %v1703_v19 = vand.u32 2147483647, %v4216_v26  ;;  %v4220_v44 = vld [vmem:[%s5041_s17 + $0x638] sm:$0xff]  ;;  %v4222_v5 = vld [vmem:[%s5041_s17 + $0x620] sm:$0xff]  ;;  %v4223_v10 = vld [vmem:[%s5041_s17 + $0x610] sm:$0xff] }
 0x1ef   : > { %3725 = vmatpush1.bf16.msra.mxu1 %v3724_v25  ;;  %3471 = vmatprep.subr.bf16.mxu0 %v3470_v57  ;;  %v4210_v25 = vld [vmem:[%s5041_s17 + $0x5e8] sm:$0xff]  ;;  %v1708_v37 = vand.u32 2147483647, %v4219_v33  ;;  %v3488_v32 = vpack.c.bf16 %v1701_v15, %v1697_v23  ;;  %v1705_v62 = vand.u32 2147483647, %v4221_v49  ;;  %v4224_v4 = vld [vmem:[%s5041_s17 + $0x630] sm:$0xff] }
 0x1f0   : > { %3727 = vmatprep.subr.bf16.mxu1 %v3726_v9  ;;  %v1702_v57 = vand.u32 2147483647, %v4210_v25  ;;  %v1704_v9 = vand.u32 2147483647, %v4212_v3  ;;  %v1709_v2 = vand.u32 2147483647, %v4222_v5 }
 0x1f1   : > { %v1707_v61 = vand.u32 2147483647, %v4223_v10  ;;  %v1711_v29 = vand.u32 2147483647, %v4224_v4  ;;  %v4225_v30 = vld [vmem:[%s5041_s17 + $0x648] sm:$0xff]  ;;  %v4227_v41 = vld [vmem:[%s5041_s17 + $0x658] sm:$0xff] }
 0x1f2   : > { %3473 = vmatpush1.bf16.msra.mxu0 %v3472_v46  ;;  %v3484_v46 = vpack.c.bf16 %v1693_v6, %v1689_v39  ;;  %v3486_v18 = vpack.c.bf16 %v1702_v57, %v1698_v13  ;;  %v3742_v36 = vpack.c.bf16 %v1704_v9, %v1700_v51  ;;  %v1714_v12 = vand.u32 2147483647, %v4225_v30  ;;  %v4228_v54 = vld [vmem:[%s5041_s17 + $0x678] sm:$0xff]  ;;  %v4229_v20 = vld [vmem:[%s5041_s17 + $0x640] sm:$0xff]  ;;  %v4232_v39 = vld [vmem:[%s5041_s17 + $0x670] sm:$0xff] }
 0x1f3   : > { %3729 = vmatpush1.bf16.msra.mxu1 %v3728_v0  ;;  %3475 = vmatprep.subr.bf16.mxu0 %v3474_v27  ;;  %v4215_v0 = vld [vmem:[%s5041_s17 + $0x5d0] sm:$0xff]  ;;  %v1706_v27 = vand.u32 2147483647, %v4217_v14  ;;  %v1716_v58 = vand.u32 2147483647, %v4227_v41  ;;  %v4230_v31 = vld [vmem:[%s5041_s17 + $0x660] sm:$0xff]  ;;  %v3748_v6 = vpack.c.bf16 %v1711_v29, %v1707_v61 }
 0x1f4   : > { %3731 = vmatprep.subr.bf16.mxu1 %v3730_v53  ;;  %v1699_v16 = vand.u32 2147483647, %v4215_v0  ;;  %v1712_v53 = vand.u32 2147483647, %v4220_v44  ;;  %v1713_v28 = vand.u32 2147483647, %v4229_v20 }
 0x1f5   : > { %v1717_v40 = vand.u32 2147483647, %v4230_v31  ;;  %v1719_v45 = vand.u32 2147483647, %v4232_v39  ;;  %v4233_v34 = vld [vmem:[%s5041_s17 + $0x688] sm:$0xff]  ;;  %v4235_v13 = vld [vmem:[%s5041_s17 + $0x698] sm:$0xff] }
 0x1f6   : > { %3477 = vmatpush1.bf16.msra.mxu0 %v3476_v60  ;;  %v3744_v50 = vpack.c.bf16 %v1703_v19, %v1699_v16  ;;  %v3490_v60 = vpack.c.bf16 %v1710_v21, %v1706_v27  ;;  %v3746_v59 = vpack.c.bf16 %v1712_v53, %v1708_v37  ;;  %v4234_v35 = vld [vmem:[%s5041_s17 + $0x6a8] sm:$0xff]  ;;  %v1724_v25 = vand.u32 2147483647, %v4235_v13  ;;  %v4236_v57 = vld [vmem:[%s5041_s17 + $0x6b8] sm:$0xff]  ;;  %v4237_v3 = vld [vmem:[%s5041_s17 + $0x680] sm:$0xff] }
 0x1f7   : > { %3733 = vmatpush1.bf16.msra.mxu1 %v3732_v22  ;;  %3479 = vmatprep.subr.bf16.mxu0 %v3478_v55  ;;  %v4226_v22 = vld [vmem:[%s5041_s17 + $0x668] sm:$0xff]  ;;  %v1726_v63 = vand.u32 2147483647, %v4234_v35  ;;  %v3496_v11 = vpack.c.bf16 %v1717_v40, %v1713_v28  ;;  %v1721_v9 = vand.u32 2147483647, %v4237_v3  ;;  %v4238_v47 = vld [vmem:[%s5041_s17 + $0x6a0] sm:$0xff] }
 0x1f8   : > { %3735 = vmatprep.subr.bf16.mxu1 %v3734_v56  ;;  %v1718_v55 = vand.u32 2147483647, %v4226_v22  ;;  %v1720_v56 = vand.u32 2147483647, %v4228_v54  ;;  %v1725_v23 = vand.u32 2147483647, %v4238_v47 }
 0x1f9   : > { %v4239_v48 = vld [vmem:[%s5041_s17 + $0x690] sm:$0xff]  ;;  %v4241_v26 = vld [vmem:[%s5041_s17 + $0x6c8] sm:$0xff]  ;;  %v4243_v27 = vld [vmem:[%s5041_s17 + $0x6d8] sm:$0xff] }
 0x1fa   : > { %3481 = vmatpush1.bf16.msra.mxu0 %v3480_v42  ;;  %v3492_v42 = vpack.c.bf16 %v1709_v2, %v1705_v62  ;;  %v3494_v43 = vpack.c.bf16 %v1718_v55, %v1714_v12  ;;  %v3750_v1 = vpack.c.bf16 %v1720_v56, %v1716_v58  ;;  %v1723_v15 = vand.u32 2147483647, %v4239_v48  ;;  %v4240_v0 = vld [vmem:[%s5041_s17 + $0x6b0] sm:$0xff]  ;;  %v4244_v21 = vld [vmem:[%s5041_s17 + $0x6f8] sm:$0xff]  ;;  %v4245_v33 = vld [vmem:[%s5041_s17 + $0x6c0] sm:$0xff] }
 0x1fb   : > { %3737 = vmatpush1.bf16.msra.mxu1 %v3736_v52  ;;  %3483 = vmatprep.subr.bf16.mxu0 %v3482_v17  ;;  %v4231_v52 = vld [vmem:[%s5041_s17 + $0x650] sm:$0xff]  ;;  %v1722_v17 = vand.u32 2147483647, %v4233_v34  ;;  %v1727_v16 = vand.u32 2147483647, %v4240_v0  ;;  %v4246_v44 = vld [vmem:[%s5041_s17 + $0x6e0] sm:$0xff] }
 0x1fc   : > { %3739 = vmatprep.subr.bf16.mxu1 %v3738_v8  ;;  %v1715_v38 = vand.u32 2147483647, %v4231_v52  ;;  %v1728_v8 = vand.u32 2147483647, %v4236_v57  ;;  %v1730_v19 = vand.u32 2147483647, %v4241_v26 }
 0x1fd   : > { %v1732_v7 = vand.u32 2147483647, %v4243_v27  ;;  %v1729_v37 = vand.u32 2147483647, %v4245_v33  ;;  %v1733_v53 = vand.u32 2147483647, %v4246_v44  ;;  %v3756_v2 = vpack.c.bf16 %v1727_v16, %v1723_v15 }
 0x1fe   : > { %3485 = vmatpush1.bf16.msra.mxu0 %v3484_v46  ;;  %v3752_v51 = vpack.c.bf16 %v1719_v45, %v1715_v38  ;;  %v3498_v46 = vpack.c.bf16 %v1726_v63, %v1722_v17  ;;  %v3754_v14 = vpack.c.bf16 %v1728_v8, %v1724_v25  ;;  %v4248_v62 = vld [vmem:[%s5041_s17 + $0x6f0] sm:$0xff]  ;;  %v4249_v61 = vld [vmem:[%s5041_s17 + $0x708] sm:$0xff]  ;;  %v4251_v12 = vld [vmem:[%s5041_s17 + $0x718] sm:$0xff] }
 0x1ff   : > { %3741 = vmatpush1.bf16.msra.mxu1 %v3740_v24  ;;  %3487 = vmatprep.subr.bf16.mxu0 %v3486_v18  ;;  %v4242_v24 = vld [vmem:[%s5041_s17 + $0x6e8] sm:$0xff]  ;;  %v1735_v5 = vand.u32 2147483647, %v4248_v62  ;;  %v1740_v22 = vand.u32 2147483647, %v4251_v12  ;;  %v4252_v55 = vld [vmem:[%s5041_s17 + $0x738] sm:$0xff]  ;;  %v3504_v41 = vpack.c.bf16 %v1733_v53, %v1729_v37 }
 0x200   : > { %3743 = vmatprep.subr.bf16.mxu1 %v3742_v36  ;;  %v1734_v18 = vand.u32 2147483647, %v4242_v24  ;;  %v1736_v36 = vand.u32 2147483647, %v4244_v21  ;;  %v4250_v4 = vld [vmem:[%s5041_s17 + $0x728] sm:$0xff]  ;;  %v4253_v54 = vld [vmem:[%s5041_s17 + $0x700] sm:$0xff] }
 0x201   : > { %v1742_v29 = vand.u32 2147483647, %v4250_v4  ;;  %v1737_v56 = vand.u32 2147483647, %v4253_v54  ;;  %v4254_v20 = vld [vmem:[%s5041_s17 + $0x720] sm:$0xff]  ;;  %v4255_v31 = vld [vmem:[%s5041_s17 + $0x710] sm:$0xff] }
 0x202   : > { %3489 = vmatpush1.bf16.msra.mxu0 %v3488_v32  ;;  %v3500_v32 = vpack.c.bf16 %v1725_v23, %v1721_v9  ;;  %v3502_v10 = vpack.c.bf16 %v1734_v18, %v1730_v19  ;;  %v3758_v30 = vpack.c.bf16 %v1736_v36, %v1732_v7  ;;  %v1741_v28 = vand.u32 2147483647, %v4254_v20  ;;  %v4256_v52 = vld [vmem:[%s5041_s17 + $0x730] sm:$0xff]  ;;  %v4257_v39 = vld [vmem:[%s5041_s17 + $0x748] sm:$0xff]  ;;  %v4259_v17 = vld [vmem:[%s5041_s17 + $0x758] sm:$0xff] }
 0x203   : > { %3745 = vmatpush1.bf16.msra.mxu1 %v3744_v50  ;;  %3491 = vmatprep.subr.bf16.mxu0 %v3490_v60  ;;  %v4247_v50 = vld [vmem:[%s5041_s17 + $0x6d0] sm:$0xff]  ;;  %v1738_v60 = vand.u32 2147483647, %v4249_v61  ;;  %v1739_v40 = vand.u32 2147483647, %v4255_v31  ;;  %v4260_v63 = vld [vmem:[%s5041_s17 + $0x778] sm:$0xff] }
 0x204   : > { %3747 = vmatprep.subr.bf16.mxu1 %v3746_v59  ;;  %v1731_v49 = vand.u32 2147483647, %v4247_v50  ;;  %v1744_v59 = vand.u32 2147483647, %v4252_v55  ;;  %v1743_v38 = vand.u32 2147483647, %v4256_v52 }
 0x205   : > { %v1746_v45 = vand.u32 2147483647, %v4257_v39  ;;  %v1748_v35 = vand.u32 2147483647, %v4259_v17  ;;  %v4261_v13 = vld [vmem:[%s5041_s17 + $0x740] sm:$0xff]  ;;  %v4264_v9 = vld [vmem:[%s5041_s17 + $0x770] sm:$0xff] }
 0x206   : > { %3493 = vmatpush1.bf16.msra.mxu0 %v3492_v42  ;;  %v3760_v58 = vpack.c.bf16 %v1735_v5, %v1731_v49  ;;  %v3506_v42 = vpack.c.bf16 %v1742_v29, %v1738_v60  ;;  %v3762_v34 = vpack.c.bf16 %v1744_v59, %v1740_v22  ;;  %v1745_v25 = vand.u32 2147483647, %v4261_v13  ;;  %v4262_v57 = vld [vmem:[%s5041_s17 + $0x760] sm:$0xff]  ;;  %v4265_v15 = vld [vmem:[%s5041_s17 + $0x788] sm:$0xff]  ;;  %v4267_v19 = vld [vmem:[%s5041_s17 + $0x798] sm:$0xff] }
 0x207   : > { %3749 = vmatpush1.bf16.msra.mxu1 %v3748_v6  ;;  %3495 = vmatprep.subr.bf16.mxu0 %v3494_v43  ;;  %v4258_v6 = vld [vmem:[%s5041_s17 + $0x768] sm:$0xff]  ;;  %v1749_v8 = vand.u32 2147483647, %v4262_v57  ;;  %v1751_v47 = vand.u32 2147483647, %v4264_v9  ;;  %v3764_v23 = vpack.c.bf16 %v1743_v38, %v1739_v40  ;;  %v4268_v18 = vld [vmem:[%s5041_s17 + $0x7b8] sm:$0xff] }
 0x208   : > { %3751 = vmatprep.subr.bf16.mxu1 %v3750_v1  ;;  %v1750_v43 = vand.u32 2147483647, %v4258_v6  ;;  %v1752_v1 = vand.u32 2147483647, %v4260_v63  ;;  %v4266_v0 = vld [vmem:[%s5041_s17 + $0x7a8] sm:$0xff]  ;;  %v4269_v21 = vld [vmem:[%s5041_s17 + $0x780] sm:$0xff] }
 0x209   : > { %v1758_v16 = vand.u32 2147483647, %v4266_v0  ;;  %v1756_v24 = vand.u32 2147483647, %v4267_v19  ;;  %v3512_v27 = vpack.c.bf16 %v1749_v8, %v1745_v25  ;;  %v1753_v36 = vand.u32 2147483647, %v4269_v21 }
 0x20a   : > { %3497 = vmatpush1.bf16.msra.mxu0 %v3496_v11  ;;  %v3508_v11 = vpack.c.bf16 %v1741_v28, %v1737_v56  ;;  %v3510_v48 = vpack.c.bf16 %v1750_v43, %v1746_v45  ;;  %v3766_v26 = vpack.c.bf16 %v1752_v1, %v1748_v35  ;;  %v4270_v33 = vld [vmem:[%s5041_s17 + $0x7a0] sm:$0xff]  ;;  %v4271_v44 = vld [vmem:[%s5041_s17 + $0x790] sm:$0xff]  ;;  %v4273_v62 = vld [vmem:[%s5041_s17 + $0x7c8] sm:$0xff] }
 0x20b   : > { %3753 = vmatpush1.bf16.msra.mxu1 %v3752_v51  ;;  %3499 = vmatprep.subr.bf16.mxu0 %v3498_v46  ;;  %v4263_v51 = vld [vmem:[%s5041_s17 + $0x750] sm:$0xff]  ;;  %v1754_v46 = vand.u32 2147483647, %v4265_v15  ;;  %v1757_v37 = vand.u32 2147483647, %v4270_v33  ;;  %v4275_v60 = vld [vmem:[%s5041_s17 + $0x7d8] sm:$0xff] }
 0x20c   : > { %3755 = vmatprep.subr.bf16.mxu1 %v3754_v14  ;;  %v1747_v3 = vand.u32 2147483647, %v4263_v51  ;;  %v1760_v14 = vand.u32 2147483647, %v4268_v18  ;;  %v1755_v53 = vand.u32 2147483647, %v4271_v44 }
 0x20d   : > { %v4272_v50 = vld [vmem:[%s5041_s17 + $0x7b0] sm:$0xff]  ;;  %v1762_v5 = vand.u32 2147483647, %v4273_v62  ;;  %v1764_v4 = vand.u32 2147483647, %v4275_v60  ;;  %v4276_v29 = vld [vmem:[%s5041_s17 + $0x7f8] sm:$0xff] }
 0x20e   : > { %3501 = vmatpush1.bf16.msra.mxu0 %v3500_v32  ;;  %v3768_v7 = vpack.c.bf16 %v1751_v47, %v1747_v3  ;;  %v3514_v32 = vpack.c.bf16 %v1758_v16, %v1754_v46  ;;  %v1759_v49 = vand.u32 2147483647, %v4272_v50  ;;  %v3770_v61 = vpack.c.bf16 %v1760_v14, %v1756_v24  ;;  %v4277_v12 = vld [vmem:[%s5041_s17 + $0x7c0] sm:$0xff]  ;;  %v4280_v56 = vld [vmem:[%s5041_s17 + $0x7f0] sm:$0xff]  ;;  %v4281_v40 = vld [vmem:[%s5041_s17 + $0x808] sm:$0xff] }
 0x20f   : > { %3757 = vmatpush1.bf16.msra.mxu1 %v3756_v2  ;;  %3503 = vmatprep.subr.bf16.mxu0 %v3502_v10  ;;  %v4274_v2 = vld [vmem:[%s5041_s17 + $0x7e8] sm:$0xff]  ;;  %v1761_v22 = vand.u32 2147483647, %v4277_v12  ;;  %v4278_v55 = vld [vmem:[%s5041_s17 + $0x7e0] sm:$0xff]  ;;  %v1767_v20 = vand.u32 2147483647, %v4280_v56 }
 0x210   : > { %3759 = vmatprep.subr.bf16.mxu1 %v3758_v30  ;;  %v1766_v10 = vand.u32 2147483647, %v4274_v2  ;;  %v1768_v30 = vand.u32 2147483647, %v4276_v29  ;;  %v1765_v59 = vand.u32 2147483647, %v4278_v55  ;;  %v3772_v28 = vpack.c.bf16 %v1759_v49, %v1755_v53 }
 0x211   : > { %v4282_v52 = vld [vmem:[%s5041_s17 + $0x828] sm:$0xff]  ;;  %v4283_v45 = vld [vmem:[%s5041_s17 + $0x818] sm:$0xff]  ;;  %v4285_v35 = vld [vmem:[#allocation5 + $0x10] sm:$0xff] }
 0x212   : > { %3505 = vmatpush1.bf16.msra.mxu0 %v3504_v41  ;;  %v3516_v41 = vpack.c.bf16 %v1757_v37, %v1753_v36  ;;  %v3518_v31 = vpack.c.bf16 %v1766_v10, %v1762_v5  ;;  %v1774_v38 = vand.u32 2147483647, %v4282_v52  ;;  %v3774_v39 = vpack.c.bf16 %v1768_v30, %v1764_v4  ;;  %v4284_v43 = vld [vmem:[%s5041_s17 + $0x838] sm:$0xff]  ;;  %v4286_v63 = vld [vmem:[#allocation7 + $0x10] sm:$0xff]  ;;  %v4287_v25 = vld [vmem:[%s5041_s17 + $0x800] sm:$0xff] }
 0x213   : > { %3761 = vmatpush1.bf16.msra.mxu1 %v3760_v58  ;;  %3507 = vmatprep.subr.bf16.mxu0 %v3506_v42  ;;  %v4279_v58 = vld [vmem:[%s5041_s17 + $0x7d0] sm:$0xff]  ;;  %v1770_v42 = vand.u32 2147483647, %v4281_v40  ;;  %v1772_v6 = vand.u32 2147483647, %v4283_v45  ;;  %v3520_v17 = vpack.c.bf16 %v1765_v59, %v1761_v22  ;;  %v915_v1 = vsub.f32 %v4286_v63, %v4285_v35  ;;  %v4288_v8 = vld [vmem:[%s5041_s17 + $0x820] sm:$0xff] }
 0x214   : > { %3763 = vmatprep.subr.bf16.mxu1 %v3762_v34  ;;  %v1763_v54 = vand.u32 2147483647, %v4279_v58  ;;  %v1776_v34 = vand.u32 2147483647, %v4284_v43  ;;  %v1769_v57 = vand.u32 2147483647, %v4287_v25 }
 0x215   : > { %v4289_v51 = vld [vmem:[%s5041_s17 + $0x810] sm:$0xff]  ;;  %v3522_v9 = vpack.c.bf16 %v1774_v38, %v1770_v42  ;;  %v4292_v46 = vld [vmem:[%s5041_s17 + $0x868] sm:$0xff]  ;;  %v4294_v24 = vld [vmem:[%s5041_s17 + $0x878] sm:$0xff]  ;;  %v923_v21 = vmul.f32 0.5, %v915_v1 }
 0x216   : > { %3509 = vmatpush1.bf16.msra.mxu0 %v3508_v11  ;;  %v3776_v13 = vpack.c.bf16 %v1767_v20, %v1763_v54  ;;  %v1773_v11 = vand.u32 2147483647, %v4288_v8  ;;  %v1771_v3 = vand.u32 2147483647, %v4289_v51  ;;  %v4290_v47 = vld [vmem:[%s5041_s17 + $0x830] sm:$0xff]  ;;  %v3778_v16 = vpack.c.bf16 %v1776_v34, %v1772_v6  ;;  %v4295_v14 = vld [vmem:[#allocation5 + $0x28] sm:$0xff] }
 0x217   : > { %3765 = vmatpush1.bf16.msra.mxu1 %v3764_v23  ;;  %3511 = vmatprep.subr.bf16.mxu0 %v3510_v48  ;;  %v1775_v23 = vand.u32 2147483647, %v4290_v47  ;;  %v4291_v48 = vld [vmem:[%s5041_s17 + $0x848] sm:$0xff]  ;;  %v1782_v0 = vand.u32 2147483647, %v4292_v46  ;;  %v4297_v36 = vld [vmem:[%s5041_s17 + $0x840] sm:$0xff] }
 0x218   : > { %3767 = vmatprep.subr.bf16.mxu1 %v3766_v26  ;;  %v1778_v15 = vand.u32 2147483647, %v4291_v48  ;;  %v4293_v26 = vld [vmem:[%s5041_s17 + $0x858] sm:$0xff]  ;;  %v1784_v18 = vand.u32 2147483647, %v4294_v24  ;;  %v4298_v37 = vld [vmem:[%s5041_s17 + $0x860] sm:$0xff]  ;;  %v3524_v53 = vpack.c.bf16 %v1773_v11, %v1769_v57 }
 0x219   : > { %v1780_v19 = vand.u32 2147483647, %v4293_v26  ;;  %v1777_v33 = vand.u32 2147483647, %v4297_v36  ;;  %v1781_v44 = vand.u32 2147483647, %v4298_v37  ;;  %v3780_v5 = vpack.c.bf16 %v1775_v23, %v1771_v3 }
 0x21a   : > { %3513 = vmatpush1.bf16.msra.mxu0 %v3512_v27  ;;  %v4296_v27 = vld [vmem:[#allocation7 + $0x28] sm:$0xff]  ;;  %v4300_v49 = vld [vmem:[%s5041_s17 + $0x870] sm:$0xff]  ;;  %v3526_v2 = vpack.c.bf16 %v1782_v0, %v1778_v15  ;;  %v4303_v30 = vld [vmem:[%s5041_s17 + $0x898] sm:$0xff] }
 0x21b   : > { %3769 = vmatpush1.bf16.msra.mxu1 %v3768_v7  ;;  %3515 = vmatprep.subr.bf16.mxu0 %v3514_v32  ;;  %v918_v7 = vsub.f32 %v4296_v27, %v4295_v14  ;;  %v4299_v32 = vld [vmem:[%s5041_s17 + $0x850] sm:$0xff]  ;;  %v1783_v62 = vand.u32 2147483647, %v4300_v49  ;;  %v4301_v10 = vld [vmem:[%s5041_s17 + $0x888] sm:$0xff]  ;;  %v3782_v29 = vpack.c.bf16 %v1784_v18, %v1780_v19  ;;  %v1788_v12 = vand.u32 2147483647, %v4303_v30 }
 0x21c   : > { %3771 = vmatprep.subr.bf16.mxu1 %v3770_v61  ;;  %v1779_v50 = vand.u32 2147483647, %v4299_v32  ;;  %v1786_v61 = vand.u32 2147483647, %v4301_v10  ;;  %v4302_v60 = vld [vmem:[%s5041_s17 + $0x8a8] sm:$0xff]  ;;  %v4304_v22 = vld [vmem:[%s5041_s17 + $0x8b8] sm:$0xff] }
 0x21d   : > { %v1790_v4 = vand.u32 2147483647, %v4302_v60  ;;  %v1792_v55 = vand.u32 2147483647, %v4304_v22  ;;  %v926_v59 = vmul.f32 0.5, %v918_v7  ;;  %v4305_v54 = vld [vmem:[%s5041_s17 + $0x880] sm:$0xff] }
 0x21e   : > { %3517 = vmatpush1.bf16.msra.mxu0 %v3516_v41  ;;  %v3528_v41 = vpack.c.bf16 %v1781_v44, %v1777_v33  ;;  %v3784_v58 = vpack.c.bf16 %v1783_v62, %v1779_v50  ;;  %v1785_v56 = vand.u32 2147483647, %v4305_v54  ;;  %v4306_v20 = vld [vmem:[%s5041_s17 + $0x8a0] sm:$0xff]  ;;  %v4308_v52 = vld [vmem:[%s5041_s17 + $0x8b0] sm:$0xff]  ;;  %v4310_v6 = vld [vmem:[%s5041_s17 + $0x8e8] sm:$0xff] }
 0x21f   : > { %3773 = vmatpush1.bf16.msra.mxu1 %v3772_v28  ;;  %3519 = vmatprep.subr.bf16.mxu0 %v3518_v31  ;;  %v1789_v28 = vand.u32 2147483647, %v4306_v20  ;;  %v4307_v31 = vld [vmem:[%s5041_s17 + $0x890] sm:$0xff]  ;;  %v3530_v42 = vpack.c.bf16 %v1790_v4, %v1786_v61  ;;  %v1791_v38 = vand.u32 2147483647, %v4308_v52  ;;  %v3786_v34 = vpack.c.bf16 %v1792_v55, %v1788_v12  ;;  %v4312_v63 = vld [vmem:[%s5041_s17 + $0x8f8] sm:$0xff] }
 0x220   : > { %3775 = vmatprep.subr.bf16.mxu1 %v3774_v39  ;;  %v1787_v40 = vand.u32 2147483647, %v4307_v31  ;;  %v4309_v39 = vld [vmem:[%s5041_s17 + $0x8c8] sm:$0xff]  ;;  %v1798_v43 = vand.u32 2147483647, %v4310_v6  ;;  %v4314_v57 = vld [vmem:[%s5041_s17 + $0x8e0] sm:$0xff] }
 0x221   : > { %v1794_v45 = vand.u32 2147483647, %v4309_v39  ;;  %v1800_v1 = vand.u32 2147483647, %v4312_v63  ;;  %v1797_v8 = vand.u32 2147483647, %v4314_v57  ;;  %v3532_v11 = vpack.c.bf16 %v1789_v28, %v1785_v56 }
 0x222   : > { %3521 = vmatpush1.bf16.msra.mxu0 %v3520_v17  ;;  %v4311_v17 = vld [vmem:[%s5041_s17 + $0x8d8] sm:$0xff]  ;;  %v4315_v51 = vld [vmem:[%s5041_s17 + $0x8d0] sm:$0xff]  ;;  %v3788_v23 = vpack.c.bf16 %v1791_v38, %v1787_v40  ;;  %v4317_v15 = vld [vmem:[%s5041_s17 + $0x908] sm:$0xff] }
 0x223   : > { %3777 = vmatpush1.bf16.msra.mxu1 %v3776_v13  ;;  %3523 = vmatprep.subr.bf16.mxu0 %v3522_v9  ;;  %v1796_v35 = vand.u32 2147483647, %v4311_v17  ;;  %v4313_v13 = vld [vmem:[%s5041_s17 + $0x8c0] sm:$0xff]  ;;  %v1795_v3 = vand.u32 2147483647, %v4315_v51  ;;  %v4316_v9 = vld [vmem:[%s5041_s17 + $0x8f0] sm:$0xff]  ;;  %v3534_v48 = vpack.c.bf16 %v1798_v43, %v1794_v45 }
 0x224   : > { %3779 = vmatprep.subr.bf16.mxu1 %v3778_v16  ;;  %v1793_v25 = vand.u32 2147483647, %v4313_v13  ;;  %v1799_v47 = vand.u32 2147483647, %v4316_v9  ;;  %v1802_v46 = vand.u32 2147483647, %v4317_v15 }
 0x225   : > { %2161 = vmatmul.mubr.f32.vlgmr.msra.gmra.mrb[2].mxu0 %v923_v21  ;;  %v4318_v0 = vld [vmem:[%s5041_s17 + $0x928] sm:$0xff]  ;;  %v3790_v26 = vpack.c.bf16 %v1800_v1, %v1796_v35  ;;  %v4319_v19 = vld [vmem:[%s5041_s17 + $0x918] sm:$0xff]  ;;  %v4322_v33 = vld [vmem:[%s5041_s17 + $0x920] sm:$0xff] }
 0x226   : > { %3525 = vmatpush1.bf16.msra.mxu0 %v3524_v53  ;;  %2445 = vmatmul.mubr.f32.vlgmr.msra.gmra.mrb[2].mxu1 %v923_v21  ;;  %v1806_v16 = vand.u32 2147483647, %v4318_v0  ;;  %v1804_v24 = vand.u32 2147483647, %v4319_v19  ;;  %v4320_v18 = vld [vmem:[%s5041_s17 + $0x938] sm:$0xff]  ;;  %v3536_v27 = vpack.c.bf16 %v1797_v8, %v1793_v25  ;;  %v3792_v7 = vpack.c.bf16 %v1799_v47, %v1795_v3  ;;  %v4321_v21 = vld [vmem:[%s5041_s17 + $0x900] sm:$0xff] }
 0x227   : > { %3781 = vmatpush1.bf16.msra.mxu1 %v3780_v5  ;;  %3527 = vmatprep.subr.bf16.mxu0 %v3526_v2  ;;  %v1808_v14 = vand.u32 2147483647, %v4320_v18  ;;  %v1801_v36 = vand.u32 2147483647, %v4321_v21  ;;  %v1805_v37 = vand.u32 2147483647, %v4322_v33 }
 0x228   : > { %3783 = vmatprep.subr.bf16.mxu1 %v3782_v29  ;;  %2231 = vmatprep.mubr.f32.mxu0 %v926_v59  ;;  %v4323_v44 = vld [vmem:[%s5041_s17 + $0x910] sm:$0xff]  ;;  %v3538_v32 = vpack.c.bf16 %v1806_v16, %v1802_v46  ;;  %v4325_v62 = vld [vmem:[%s5041_s17 + $0x948] sm:$0xff]  ;;  %v4327_v60 = vld [vmem:[%s5041_s17 + $0x958] sm:$0xff] }
 0x229   : > { %2515 = vmatprep.mubr.f32.mxu1 %v926_v59  ;;  %v1803_v53 = vand.u32 2147483647, %v4323_v44  ;;  %v4324_v50 = vld [vmem:[%s5041_s17 + $0x930] sm:$0xff]  ;;  %v1810_v5 = vand.u32 2147483647, %v4325_v62  ;;  %v4326_v2 = vld [vmem:[%s5041_s17 + $0x968] sm:$0xff]  ;;  %v3794_v61 = vpack.c.bf16 %v1808_v14, %v1804_v24 }
 0x22a   : > { %3529 = vmatpush1.bf16.msra.mxu0 %v3528_v41  ;;  %v1807_v49 = vand.u32 2147483647, %v4324_v50  ;;  %v1814_v10 = vand.u32 2147483647, %v4326_v2  ;;  %v1812_v4 = vand.u32 2147483647, %v4327_v60  ;;  %v3540_v41 = vpack.c.bf16 %v1805_v37, %v1801_v36 }
 0x22b   : > { %3785 = vmatpush1.bf16.msra.mxu1 %v3784_v58  ;;  %3531 = vmatprep.subr.bf16.mxu0 %v3530_v42  ;;  %v4328_v29 = vld [vmem:[%s5041_s17 + $0x978] sm:$0xff]  ;;  %v4329_v12 = vld [vmem:[%s5041_s17 + $0x940] sm:$0xff]  ;;  %v4331_v58 = vld [vmem:[%s5041_s17 + $0x950] sm:$0xff] }
 0x22c   : > { %3787 = vmatprep.subr.bf16.mxu1 %v3786_v34  ;;  %v1816_v30 = vand.u32 2147483647, %v4328_v29  ;;  %v1809_v22 = vand.u32 2147483647, %v4329_v12  ;;  %v4330_v55 = vld [vmem:[%s5041_s17 + $0x960] sm:$0xff]  ;;  %v4332_v56 = vld [vmem:[%s5041_s17 + $0x970] sm:$0xff]  ;;  %v3796_v28 = vpack.c.bf16 %v1807_v49, %v1803_v53  ;;  %v3542_v31 = vpack.c.bf16 %v1814_v10, %v1810_v5 }
 0x22d   : > { %v1813_v59 = vand.u32 2147483647, %v4330_v55  ;;  %v1811_v54 = vand.u32 2147483647, %v4331_v58  ;;  %v1815_v20 = vand.u32 2147483647, %v4332_v56 }
 0x22e   : > { %3533 = vmatpush1.bf16.msra.mxu0 %v3532_v11  ;;  %v4333_v40 = vld [vmem:[%s5041_s17 + $0x988] sm:$0xff]  ;;  %v3798_v39 = vpack.c.bf16 %v1816_v30, %v1812_v4  ;;  %v4335_v45 = vld [vmem:[%s5041_s17 + $0x998] sm:$0xff]  ;;  %v4337_v63 = vld [vmem:[%s5041_s17 + $0x980] sm:$0xff] }
 0x22f   : > { %3789 = vmatpush1.bf16.msra.mxu1 %v3788_v23  ;;  %3535 = vmatprep.subr.bf16.mxu0 %v3534_v48  ;;  %v1818_v42 = vand.u32 2147483647, %v4333_v40  ;;  %v4334_v52 = vld [vmem:[%s5041_s17 + $0x9a8] sm:$0xff]  ;;  %v1820_v6 = vand.u32 2147483647, %v4335_v45  ;;  %v4336_v43 = vld [vmem:[%s5041_s17 + $0x9b8] sm:$0xff]  ;;  %v3544_v17 = vpack.c.bf16 %v1813_v59, %v1809_v22  ;;  %v3800_v35 = vpack.c.bf16 %v1815_v20, %v1811_v54 }
 0x230   : > { %3791 = vmatprep.subr.bf16.mxu1 %v3790_v26  ;;  %v1822_v38 = vand.u32 2147483647, %v4334_v52  ;;  %v1824_v34 = vand.u32 2147483647, %v4336_v43  ;;  %v1817_v1 = vand.u32 2147483647, %v4337_v63 }
 0x231   : > { %v4338_v13 = vld [vmem:[%s5041_s17 + $0x9a0] sm:$0xff]  ;;  %v4339_v57 = vld [vmem:[%s5041_s17 + $0x990] sm:$0xff]  ;;  %v4341_v9 = vld [vmem:[%s5041_s17 + $0x9c8] sm:$0xff] }
 0x232   : > { %3537 = vmatpush1.bf16.msra.mxu0 %v3536_v27  ;;  %v1821_v25 = vand.u32 2147483647, %v4338_v13  ;;  %v1819_v8 = vand.u32 2147483647, %v4339_v57  ;;  %v3546_v11 = vpack.c.bf16 %v1822_v38, %v1818_v42  ;;  %v4340_v51 = vld [vmem:[%s5041_s17 + $0x9b0] sm:$0xff]  ;;  %v4342_v23 = vld [vmem:[%s5041_s17 + $0x9e8] sm:$0xff]  ;;  %v3802_v15 = vpack.c.bf16 %v1824_v34, %v1820_v6 }
 0x233   : > { %3793 = vmatpush1.bf16.msra.mxu1 %v3792_v7  ;;  %3539 = vmatprep.subr.bf16.mxu0 %v3538_v32  ;;  %v1823_v3 = vand.u32 2147483647, %v4340_v51  ;;  %v1826_v47 = vand.u32 2147483647, %v4341_v9  ;;  %v1830_v48 = vand.u32 2147483647, %v4342_v23 }
 0x234   : > { %3795 = vmatprep.subr.bf16.mxu1 %v3794_v61  ;;  %v4343_v46 = vld [vmem:[%s5041_s17 + $0x9d8] sm:$0xff]  ;;  %v4345_v19 = vld [vmem:[%s5041_s17 + $0x9c0] sm:$0xff]  ;;  %v3548_v27 = vpack.c.bf16 %v1821_v25, %v1817_v1  ;;  %v4347_v7 = vld [vmem:[%s5041_s17 + $0x9d0] sm:$0xff] }
 0x235   : > { %v1828_v0 = vand.u32 2147483647, %v4343_v46  ;;  %v4344_v16 = vld [vmem:[%s5041_s17 + $0x9f8] sm:$0xff]  ;;  %v1825_v24 = vand.u32 2147483647, %v4345_v19  ;;  %v4346_v18 = vld [vmem:[%s5041_s17 + $0x9e0] sm:$0xff]  ;;  %v3804_v37 = vpack.c.bf16 %v1823_v3, %v1819_v8  ;;  %v3550_v44 = vpack.c.bf16 %v1830_v48, %v1826_v47 }
 0x236   : > { %3541 = vmatpush1.bf16.msra.mxu0 %v3540_v41  ;;  %v1832_v26 = vand.u32 2147483647, %v4344_v16  ;;  %v1829_v14 = vand.u32 2147483647, %v4346_v18  ;;  %v1827_v21 = vand.u32 2147483647, %v4347_v7 }
 0x237   : > { %3797 = vmatpush1.bf16.msra.mxu1 %v3796_v28  ;;  %3543 = vmatprep.subr.bf16.mxu0 %v3542_v31  ;;  %v4348_v36 = vld [vmem:[%s5041_s17 + $0x9f0] sm:$0xff]  ;;  %v4349_v53 = vld [vmem:[%s5041_s17 + $0xa08] sm:$0xff]  ;;  %v4351_v5 = vld [vmem:[%s5041_s17 + $0xa18] sm:$0xff] }
 0x238   : > { %3799 = vmatprep.subr.bf16.mxu1 %v3798_v39  ;;  %v1831_v33 = vand.u32 2147483647, %v4348_v36  ;;  %v1834_v32 = vand.u32 2147483647, %v4349_v53  ;;  %v4350_v50 = vld [vmem:[%s5041_s17 + $0xa28] sm:$0xff]  ;;  %v3806_v62 = vpack.c.bf16 %v1832_v26, %v1828_v0  ;;  %v4352_v10 = vld [vmem:[%s5041_s17 + $0xa38] sm:$0xff]  ;;  %v3552_v60 = vpack.c.bf16 %v1829_v14, %v1825_v24 }
 0x239   : > { %v1838_v49 = vand.u32 2147483647, %v4350_v50  ;;  %v1836_v2 = vand.u32 2147483647, %v4351_v5  ;;  %v1840_v61 = vand.u32 2147483647, %v4352_v10 }
 0x23a   : > { %3545 = vmatpush1.bf16.msra.mxu0 %v3544_v17  ;;  %v3808_v4 = vpack.c.bf16 %v1831_v33, %v1827_v21  ;;  %v4353_v29 = vld [vmem:[%s5041_s17 + $0xa00] sm:$0xff]  ;;  %v4355_v55 = vld [vmem:[%s5041_s17 + $0xa10] sm:$0xff]  ;;  %v4357_v56 = vld [vmem:[%s5041_s17 + $0xa48] sm:$0xff] }
 0x23b   : > { %3801 = vmatpush1.bf16.msra.mxu1 %v3800_v35  ;;  %3547 = vmatprep.subr.bf16.mxu0 %v3546_v11  ;;  %v1833_v30 = vand.u32 2147483647, %v4353_v29  ;;  %v4354_v12 = vld [vmem:[%s5041_s17 + $0xa20] sm:$0xff]  ;;  %v1835_v59 = vand.u32 2147483647, %v4355_v55  ;;  %v3554_v41 = vpack.c.bf16 %v1838_v49, %v1834_v32  ;;  %v4356_v58 = vld [vmem:[%s5041_s17 + $0xa30] sm:$0xff]  ;;  %v3810_v40 = vpack.c.bf16 %v1840_v61, %v1836_v2 }
 0x23c   : > { %3803 = vmatprep.subr.bf16.mxu1 %v3802_v15  ;;  %v1837_v22 = vand.u32 2147483647, %v4354_v12  ;;  %v1839_v54 = vand.u32 2147483647, %v4356_v58  ;;  %v1842_v20 = vand.u32 2147483647, %v4357_v56 }
 0x23d   : > { %v4358_v28 = vld [vmem:[%s5041_s17 + $0xa68] sm:$0xff]  ;;  %v4359_v42 = vld [vmem:[%s5041_s17 + $0xa58] sm:$0xff]  ;;  %v4361_v45 = vld [vmem:[%s5041_s17 + $0xa40] sm:$0xff] }
 0x23e   : > { %3549 = vmatpush1.bf16.msra.mxu0 %v3548_v27  ;;  %v1846_v31 = vand.u32 2147483647, %v4358_v28  ;;  %v1844_v52 = vand.u32 2147483647, %v4359_v42  ;;  %v4360_v38 = vld [vmem:[%s5041_s17 + $0xa78] sm:$0xff]  ;;  %v4362_v43 = vld [vmem:[%s5041_s17 + $0xa60] sm:$0xff]  ;;  %v3556_v17 = vpack.c.bf16 %v1837_v22, %v1833_v30  ;;  %v3812_v25 = vpack.c.bf16 %v1839_v54, %v1835_v59 }
 0x23f   : > { %3805 = vmatpush1.bf16.msra.mxu1 %v3804_v37  ;;  %3551 = vmatprep.subr.bf16.mxu0 %v3550_v44  ;;  %v1848_v39 = vand.u32 2147483647, %v4360_v38  ;;  %v1841_v6 = vand.u32 2147483647, %v4361_v45  ;;  %v1845_v34 = vand.u32 2147483647, %v4362_v43 }
 0x240   : > { %3807 = vmatprep.subr.bf16.mxu1 %v3806_v62  ;;  %v4363_v35 = vld [vmem:[%s5041_s17 + $0xa50] sm:$0xff]  ;;  %v3558_v57 = vpack.c.bf16 %v1846_v31, %v1842_v20  ;;  %v4365_v8 = vld [vmem:[%s5041_s17 + $0xa88] sm:$0xff]  ;;  %v4367_v47 = vld [vmem:[%s5041_s17 + $0xa98] sm:$0xff] }
 0x241   : > { %v1843_v63 = vand.u32 2147483647, %v4363_v35  ;;  %v4364_v1 = vld [vmem:[%s5041_s17 + $0xa70] sm:$0xff]  ;;  %v1850_v11 = vand.u32 2147483647, %v4365_v8  ;;  %v4366_v51 = vld [vmem:[%s5041_s17 + $0xaa8] sm:$0xff]  ;;  %v3814_v9 = vpack.c.bf16 %v1848_v39, %v1844_v52  ;;  %v3560_v46 = vpack.c.bf16 %v1845_v34, %v1841_v6 }
 0x242   : > { %3553 = vmatpush1.bf16.msra.mxu0 %v3552_v60  ;;  %v1847_v13 = vand.u32 2147483647, %v4364_v1  ;;  %v1854_v3 = vand.u32 2147483647, %v4366_v51  ;;  %v1852_v23 = vand.u32 2147483647, %v4367_v47 }
 0x243   : > { %3809 = vmatpush1.bf16.msra.mxu1 %v3808_v4  ;;  %3555 = vmatprep.subr.bf16.mxu0 %v3554_v41  ;;  %v4368_v48 = vld [vmem:[%s5041_s17 + $0xab8] sm:$0xff]  ;;  %v4369_v16 = vld [vmem:[%s5041_s17 + $0xa80] sm:$0xff]  ;;  %v4371_v18 = vld [vmem:[%s5041_s17 + $0xa90] sm:$0xff] }
 0x244   : > { %3811 = vmatprep.subr.bf16.mxu1 %v3810_v40  ;;  %v1856_v15 = vand.u32 2147483647, %v4368_v48  ;;  %v3816_v0 = vpack.c.bf16 %v1847_v13, %v1843_v63  ;;  %v1849_v26 = vand.u32 2147483647, %v4369_v16  ;;  %v4370_v19 = vld [vmem:[%s5041_s17 + $0xaa0] sm:$0xff]  ;;  %v3562_v27 = vpack.c.bf16 %v1854_v3, %v1850_v11  ;;  %v4372_v7 = vld [vmem:[%s5041_s17 + $0xab0] sm:$0xff] }
 0x245   : > { %v1853_v24 = vand.u32 2147483647, %v4370_v19  ;;  %v1851_v14 = vand.u32 2147483647, %v4371_v18  ;;  %v1855_v21 = vand.u32 2147483647, %v4372_v7 }
 0x246   : > { %3557 = vmatpush1.bf16.msra.mxu0 %v3556_v17  ;;  %v4373_v36 = vld [vmem:[%s5041_s17 + $0xac8] sm:$0xff]  ;;  %v3818_v53 = vpack.c.bf16 %v1856_v15, %v1852_v23  ;;  %v4375_v32 = vld [vmem:[%s5041_s17 + $0xad8] sm:$0xff]  ;;  %v4377_v5 = vld [vmem:[%s5041_s17 + $0xac0] sm:$0xff] }
 0x247   : > { %3813 = vmatpush1.bf16.msra.mxu1 %v3812_v25  ;;  %3559 = vmatprep.subr.bf16.mxu0 %v3558_v57  ;;  %v1858_v33 = vand.u32 2147483647, %v4373_v36  ;;  %v4374_v37 = vld [vmem:[%s5041_s17 + $0xae8] sm:$0xff]  ;;  %v1860_v50 = vand.u32 2147483647, %v4375_v32  ;;  %v4376_v49 = vld [vmem:[%s5041_s17 + $0xaf8] sm:$0xff]  ;;  %v3564_v60 = vpack.c.bf16 %v1853_v24, %v1849_v26  ;;  %v3820_v22 = vpack.c.bf16 %v1855_v21, %v1851_v14 }
 0x248   : > { %v1862_v44 = vand.u32 2147483647, %v4374_v37  ;;  %3815 = vmatprep.subr.bf16.mxu1 %v3814_v9  ;;  %v1864_v62 = vand.u32 2147483647, %v4376_v49  ;;  %v1857_v2 = vand.u32 2147483647, %v4377_v5 }
 0x249   : > { %v4378_v10 = vld [vmem:[%s5041_s17 + $0xae0] sm:$0xff]  ;;  %v4379_v4 = vld [vmem:[%s5041_s17 + $0xad0] sm:$0xff]  ;;  %v4381_v59 = vld [vmem:[%s5041_s17 + $0xb08] sm:$0xff] }
 0x24a   : > { %v1861_v61 = vand.u32 2147483647, %v4378_v10  ;;  %3561 = vmatpush1.bf16.msra.mxu0 %v3560_v46  ;;  %v1859_v29 = vand.u32 2147483647, %v4379_v4  ;;  %v4380_v30 = vld [vmem:[%s5041_s17 + $0xaf0] sm:$0xff]  ;;  %v3566_v55 = vpack.c.bf16 %v1862_v44, %v1858_v33  ;;  %v4382_v58 = vld [vmem:[%s5041_s17 + $0xb28] sm:$0xff]  ;;  %v3822_v56 = vpack.c.bf16 %v1864_v62, %v1860_v50 }
 0x24b   : > { %v1863_v12 = vand.u32 2147483647, %v4380_v30  ;;  %3817 = vmatpush1.bf16.msra.mxu1 %v3816_v0  ;;  %3563 = vmatprep.subr.bf16.mxu0 %v3562_v27  ;;  %v1866_v41 = vand.u32 2147483647, %v4381_v59  ;;  %v1870_v54 = vand.u32 2147483647, %v4382_v58 }
 0x24c   : > { %3819 = vmatprep.subr.bf16.mxu1 %v3818_v53  ;;  %v4383_v20 = vld [vmem:[%s5041_s17 + $0xb18] sm:$0xff]  ;;  %v3568_v42 = vpack.c.bf16 %v1861_v61, %v1857_v2  ;;  %v4385_v38 = vld [vmem:[%s5041_s17 + $0xb00] sm:$0xff]  ;;  %v4387_v43 = vld [vmem:[%s5041_s17 + $0xb10] sm:$0xff] }
 0x24d   : > { %v1868_v28 = vand.u32 2147483647, %v4383_v20  ;;  %v4384_v31 = vld [vmem:[%s5041_s17 + $0xb38] sm:$0xff]  ;;  %v3824_v52 = vpack.c.bf16 %v1863_v12, %v1859_v29  ;;  %v1865_v39 = vand.u32 2147483647, %v4385_v38  ;;  %v4386_v45 = vld [vmem:[%s5041_s17 + $0xb20] sm:$0xff]  ;;  %v3570_v17 = vpack.c.bf16 %v1870_v54, %v1866_v41 }
 0x24e   : > { %v1872_v40 = vand.u32 2147483647, %v4384_v31  ;;  %3565 = vmatpush1.bf16.msra.mxu0 %v3564_v60  ;;  %v1869_v6 = vand.u32 2147483647, %v4386_v45  ;;  %v1867_v34 = vand.u32 2147483647, %v4387_v43 }
 0x24f   : > { %3821 = vmatpush1.bf16.msra.mxu1 %v3820_v22  ;;  %3567 = vmatprep.subr.bf16.mxu0 %v3566_v55  ;;  %v4388_v35 = vld [vmem:[%s5041_s17 + $0xb30] sm:$0xff]  ;;  %v4389_v1 = vld [vmem:[%s5041_s17 + $0xb48] sm:$0xff]  ;;  %v4391_v11 = vld [vmem:[%s5041_s17 + $0xb58] sm:$0xff] }
 0x250   : > { %v1871_v63 = vand.u32 2147483647, %v4388_v35  ;;  %v1874_v13 = vand.u32 2147483647, %v4389_v1  ;;  %v4390_v25 = vld [vmem:[%s5041_s17 + $0xb68] sm:$0xff]  ;;  %3823 = vmatprep.subr.bf16.mxu1 %v3822_v56  ;;  %v3826_v8 = vpack.c.bf16 %v1872_v40, %v1868_v28  ;;  %v4392_v3 = vld [vmem:[%s5041_s17 + $0xb78] sm:$0xff]  ;;  %v3572_v46 = vpack.c.bf16 %v1869_v6, %v1865_v39 }
 0x251   : > { %v1878_v57 = vand.u32 2147483647, %v4390_v25  ;;  %v1876_v51 = vand.u32 2147483647, %v4391_v11  ;;  %v1880_v9 = vand.u32 2147483647, %v4392_v3 }
 0x252   : > { %v4393_v47 = vld [vmem:[%s5041_s17 + $0xb40] sm:$0xff]  ;;  %3569 = vmatpush1.bf16.msra.mxu0 %v3568_v42  ;;  %v4395_v0 = vld [vmem:[%s5041_s17 + $0xb50] sm:$0xff]  ;;  %v3828_v24 = vpack.c.bf16 %v1871_v63, %v1867_v34  ;;  %v4397_v14 = vld [vmem:[%s5041_s17 + $0xb88] sm:$0xff] }
 0x253   : > { %v1873_v23 = vand.u32 2147483647, %v4393_v47  ;;  %v4394_v48 = vld [vmem:[%s5041_s17 + $0xb60] sm:$0xff]  ;;  %v1875_v16 = vand.u32 2147483647, %v4395_v0  ;;  %v4396_v26 = vld [vmem:[%s5041_s17 + $0xb70] sm:$0xff]  ;;  %3825 = vmatpush1.bf16.msra.mxu1 %v3824_v52  ;;  %3571 = vmatprep.subr.bf16.mxu0 %v3570_v17  ;;  %v3574_v18 = vpack.c.bf16 %v1878_v57, %v1874_v13  ;;  %v3830_v36 = vpack.c.bf16 %v1880_v9, %v1876_v51 }
 0x254   : > { %v1877_v15 = vand.u32 2147483647, %v4394_v48  ;;  %v1879_v19 = vand.u32 2147483647, %v4396_v26  ;;  %v1882_v27 = vand.u32 2147483647, %v4397_v14  ;;  %3827 = vmatprep.subr.bf16.mxu1 %v3826_v8 }
 0x255   : > { %v4398_v7 = vld [vmem:[%s5041_s17 + $0xba8] sm:$0xff]  ;;  %v4399_v33 = vld [vmem:[%s5041_s17 + $0xb98] sm:$0xff]  ;;  %v4401_v49 = vld [vmem:[%s5041_s17 + $0xb80] sm:$0xff] }
 0x256   : > { %v1886_v21 = vand.u32 2147483647, %v4398_v7  ;;  %v1884_v37 = vand.u32 2147483647, %v4399_v33  ;;  %v4400_v44 = vld [vmem:[%s5041_s17 + $0xbb8] sm:$0xff]  ;;  %v3576_v32 = vpack.c.bf16 %v1877_v15, %v1873_v23  ;;  %3573 = vmatpush1.bf16.msra.mxu0 %v3572_v46  ;;  %v3832_v50 = vpack.c.bf16 %v1879_v19, %v1875_v16  ;;  %v4402_v5 = vld [vmem:[%s5041_s17 + $0xba0] sm:$0xff] }
 0x257   : > { %v1888_v53 = vand.u32 2147483647, %v4400_v44  ;;  %v1881_v62 = vand.u32 2147483647, %v4401_v49  ;;  %v1885_v2 = vand.u32 2147483647, %v4402_v5  ;;  %3829 = vmatpush1.bf16.msra.mxu1 %v3828_v24  ;;  %3575 = vmatprep.subr.bf16.mxu0 %v3574_v18 }
 0x258   : > { %v4403_v10 = vld [vmem:[%s5041_s17 + $0xb90] sm:$0xff]  ;;  %v3578_v60 = vpack.c.bf16 %v1886_v21, %v1882_v27  ;;  %v4405_v30 = vld [vmem:[%s5041_s17 + $0xbc8] sm:$0xff]  ;;  %3831 = vmatprep.subr.bf16.mxu1 %v3830_v36  ;;  %v4407_v41 = vld [vmem:[%s5041_s17 + $0xbd8] sm:$0xff] }
 0x259   : > { %v1883_v61 = vand.u32 2147483647, %v4403_v10  ;;  %v4404_v4 = vld [vmem:[%s5041_s17 + $0xbb0] sm:$0xff]  ;;  %v1890_v12 = vand.u32 2147483647, %v4405_v30  ;;  %v4406_v22 = vld [vmem:[%s5041_s17 + $0xbe8] sm:$0xff]  ;;  %v3834_v59 = vpack.c.bf16 %v1888_v53, %v1884_v37  ;;  %v3580_v42 = vpack.c.bf16 %v1885_v2, %v1881_v62 }
 0x25a   : > { %v1887_v29 = vand.u32 2147483647, %v4404_v4  ;;  %v1894_v55 = vand.u32 2147483647, %v4406_v22  ;;  %v1892_v58 = vand.u32 2147483647, %v4407_v41  ;;  %3577 = vmatpush1.bf16.msra.mxu0 %v3576_v32 }
 0x25b   : > { %v4408_v54 = vld [vmem:[%s5041_s17 + $0xbf8] sm:$0xff]  ;;  %v4409_v20 = vld [vmem:[%s5041_s17 + $0xbc0] sm:$0xff]  ;;  %v4411_v52 = vld [vmem:[%s5041_s17 + $0xbd0] sm:$0xff]  ;;  %3833 = vmatpush1.bf16.msra.mxu1 %v3832_v50  ;;  %3579 = vmatprep.subr.bf16.mxu0 %v3578_v60 }
 0x25c   : > { %v1896_v56 = vand.u32 2147483647, %v4408_v54  ;;  %v1889_v28 = vand.u32 2147483647, %v4409_v20  ;;  %v4410_v31 = vld [vmem:[%s5041_s17 + $0xbe0] sm:$0xff]  ;;  %v4412_v39 = vld [vmem:[%s5041_s17 + $0xbf0] sm:$0xff]  ;;  %v3836_v6 = vpack.c.bf16 %v1887_v29, %v1883_v61  ;;  %v3582_v43 = vpack.c.bf16 %v1894_v55, %v1890_v12  ;;  %3835 = vmatprep.subr.bf16.mxu1 %v3834_v59 }
 0x25d   : > { %v1893_v40 = vand.u32 2147483647, %v4410_v31  ;;  %v1891_v38 = vand.u32 2147483647, %v4411_v52  ;;  %v1895_v45 = vand.u32 2147483647, %v4412_v39 }
 0x25e   : > { %v4413_v34 = vld [vmem:[%s5041_s17 + $0xc08] sm:$0xff]  ;;  %v3838_v1 = vpack.c.bf16 %v1896_v56, %v1892_v58  ;;  %v4415_v13 = vld [vmem:[%s5041_s17 + $0xc18] sm:$0xff]  ;;  %v4417_v51 = vld [vmem:[#allocation5 + $0x20] sm:$0xff]  ;;  %3581 = vmatpush1.bf16.msra.mxu0 %v3580_v42 }
 0x25f   : > { %v1898_v17 = vand.u32 2147483647, %v4413_v34  ;;  %v4414_v35 = vld [vmem:[%s5041_s17 + $0xc28] sm:$0xff]  ;;  %v1900_v25 = vand.u32 2147483647, %v4415_v13  ;;  %v4416_v57 = vld [vmem:[%s5041_s17 + $0xc38] sm:$0xff]  ;;  %v3584_v11 = vpack.c.bf16 %v1893_v40, %v1889_v28  ;;  %v3840_v47 = vpack.c.bf16 %v1895_v45, %v1891_v38  ;;  %3837 = vmatpush1.bf16.msra.mxu1 %v3836_v6  ;;  %3583 = vmatprep.subr.bf16.mxu0 %v3582_v43 }
 0x260   : > { %v1902_v63 = vand.u32 2147483647, %v4414_v35  ;;  %v1904_v8 = vand.u32 2147483647, %v4416_v57  ;;  %v4418_v3 = vld [vmem:[#allocation7 + $0x20] sm:$0xff]  ;;  %v4421_v0 = vld [vmem:[%s5041_s17 + $0xc10] sm:$0xff]  ;;  %3839 = vmatprep.subr.bf16.mxu1 %v3838_v1 }
 0x261   : > { %v917_v9 = vsub.f32 %v4418_v3, %v4417_v51  ;;  %v4419_v23 = vld [vmem:[%s5041_s17 + $0xc00] sm:$0xff]  ;;  %v1899_v16 = vand.u32 2147483647, %v4421_v0  ;;  %v4422_v19 = vld [vmem:[%s5041_s17 + $0xc30] sm:$0xff]  ;;  %v4423_v18 = vld [vmem:[%s5041_s17 + $0xc48] sm:$0xff] }
 0x262   : > { %v1897_v48 = vand.u32 2147483647, %v4419_v23  ;;  %v4420_v15 = vld [vmem:[%s5041_s17 + $0xc20] sm:$0xff]  ;;  %v3586_v26 = vpack.c.bf16 %v1902_v63, %v1898_v17  ;;  %v1903_v24 = vand.u32 2147483647, %v4422_v19  ;;  %v4424_v27 = vld [vmem:[%s5041_s17 + $0xc68] sm:$0xff]  ;;  %v3842_v21 = vpack.c.bf16 %v1904_v8, %v1900_v25  ;;  %3585 = vmatpush1.bf16.msra.mxu0 %v3584_v11 }
 0x263   : > { %v1901_v46 = vand.u32 2147483647, %v4420_v15  ;;  %v1906_v14 = vand.u32 2147483647, %v4423_v18  ;;  %v1910_v7 = vand.u32 2147483647, %v4424_v27  ;;  %3841 = vmatpush1.bf16.msra.mxu1 %v3840_v47 }
 0x264   : > { %v4425_v36 = vld [vmem:[%s5041_s17 + $0xc58] sm:$0xff]  ;;  %v925_v49 = vmul.f32 0.5, %v917_v9  ;;  %v4429_v62 = vld [vmem:[%s5041_s17 + $0xc40] sm:$0xff]  ;;  %v4431_v60 = vld [vmem:[%s5041_s17 + $0xc50] sm:$0xff]  ;;  %3587 = vmatprep.subr.bf16.mxu0 %v3586_v26  ;;  %v3844_v12 = vpack.c.bf16 %v1903_v24, %v1899_v16  ;;  %3843 = vmatprep.subr.bf16.mxu1 %v3842_v21 }
 0x265   : > { %v1908_v33 = vand.u32 2147483647, %v4425_v36  ;;  %v4426_v37 = vld [vmem:[%s5041_s17 + $0xc78] sm:$0xff]  ;;  %v1905_v5 = vand.u32 2147483647, %v4429_v62  ;;  %v4430_v2 = vld [vmem:[%s5041_s17 + $0xc60] sm:$0xff]  ;;  %v3588_v61 = vpack.c.bf16 %v1901_v46, %v1897_v48  ;;  %v3590_v22 = vpack.c.bf16 %v1910_v7, %v1906_v14 }
 0x266   : > { %v1912_v44 = vand.u32 2147483647, %v4426_v37  ;;  %v4427_v53 = vld [vmem:[#allocation5 + $0x38] sm:$0xff]  ;;  %v1909_v10 = vand.u32 2147483647, %v4430_v2  ;;  %v4432_v29 = vld [vmem:[%s5041_s17 + $0xc70] sm:$0xff]  ;;  %2232 = vmatmul.mubr.f32.vlgmr.msra.gmra.mrb[2].mxu0 %v925_v49  ;;  %2516 = vmatmul.mubr.f32.vlgmr.msra.gmra.mrb[2].mxu1 %v925_v49 }
 0x267   : > { %v4428_v32 = vld [vmem:[#allocation7 + $0x38] sm:$0xff]  ;;  %v1907_v4 = vand.u32 2147483647, %v4431_v60  ;;  %v1911_v30 = vand.u32 2147483647, %v4432_v29  ;;  %v4433_v55 = vld [vmem:[%s5041_s17 + $0xc88] sm:$0xff]  ;;  %3589 = vmatpush1.bf16.msra.mxu0 %v3588_v61  ;;  %3845 = vmatpush1.bf16.msra.mxu1 %v3844_v12 }
 0x268   : > { %v920_v50 = vsub.f32 %v4428_v32, %v4427_v53  ;;  %v1914_v59 = vand.u32 2147483647, %v4433_v55  ;;  %v4434_v41 = vld [vmem:[%s5041_s17 + $0xca8] sm:$0xff]  ;;  %v3846_v54 = vpack.c.bf16 %v1912_v44, %v1908_v33  ;;  %v4435_v56 = vld [vmem:[%s5041_s17 + $0xc98] sm:$0xff]  ;;  %v3592_v42 = vpack.c.bf16 %v1909_v10, %v1905_v5  ;;  %v4437_v38 = vld [vmem:[%s5041_s17 + $0xc80] sm:$0xff]  ;;  %3591 = vmatprep.subr.bf16.mxu0 %v3590_v22 }
 0x269   : > { %v1918_v58 = vand.u32 2147483647, %v4434_v41  ;;  %v1916_v20 = vand.u32 2147483647, %v4435_v56  ;;  %v4436_v28 = vld [vmem:[%s5041_s17 + $0xcb8] sm:$0xff]  ;;  %v3848_v52 = vpack.c.bf16 %v1911_v30, %v1907_v4  ;;  %v4438_v45 = vld [vmem:[%s5041_s17 + $0xca0] sm:$0xff] }
 0x26a   : > { %v1920_v31 = vand.u32 2147483647, %v4436_v28  ;;  %v928_v40 = vmul.f32 0.5, %v920_v50  ;;  %v1913_v39 = vand.u32 2147483647, %v4437_v38  ;;  %v4439_v43 = vld [vmem:[%s5041_s17 + $0xc90] sm:$0xff]  ;;  %3847 = vmatprep.subr.bf16.mxu1 %v3846_v54 }
 0x26b   : > { %v1917_v6 = vand.u32 2147483647, %v4438_v45  ;;  %v1915_v34 = vand.u32 2147483647, %v4439_v43  ;;  %v3594_v17 = vpack.c.bf16 %v1918_v58, %v1914_v59  ;;  %v4440_v35 = vld [vmem:[%s5041_s17 + $0xcb0] sm:$0xff]  ;;  %v4441_v1 = vld [vmem:[%s5041_s17 + $0xcc8] sm:$0xff]  ;;  %3593 = vmatpush1.bf16.msra.mxu0 %v3592_v42  ;;  %3849 = vmatpush1.bf16.msra.mxu1 %v3848_v52 }
 0x26c   : > { %v1919_v63 = vand.u32 2147483647, %v4440_v35  ;;  %v1922_v13 = vand.u32 2147483647, %v4441_v1  ;;  %v4442_v25 = vld [vmem:[%s5041_s17 + $0xce8] sm:$0xff]  ;;  %v3850_v8 = vpack.c.bf16 %v1920_v31, %v1916_v20  ;;  %v4443_v11 = vld [vmem:[%s5041_s17 + $0xcd8] sm:$0xff]  ;;  %2302 = vmatprep.mubr.f32.mxu0 %v928_v40  ;;  %2586 = vmatprep.mubr.f32.mxu1 %v928_v40 }
 0x26d   : > { %v1926_v57 = vand.u32 2147483647, %v4442_v25  ;;  %v1924_v51 = vand.u32 2147483647, %v4443_v11  ;;  %v4444_v3 = vld [vmem:[%s5041_s17 + $0xcf8] sm:$0xff]  ;;  %v4445_v47 = vld [vmem:[%s5041_s17 + $0xcc0] sm:$0xff]  ;;  %v3596_v46 = vpack.c.bf16 %v1917_v6, %v1913_v39  ;;  %3595 = vmatprep.subr.bf16.mxu0 %v3594_v17 }
 0x26e   : > { %v1928_v9 = vand.u32 2147483647, %v4444_v3  ;;  %v1921_v23 = vand.u32 2147483647, %v4445_v47  ;;  %v4446_v48 = vld [vmem:[%s5041_s17 + $0xce0] sm:$0xff]  ;;  %v4447_v0 = vld [vmem:[%s5041_s17 + $0xcd0] sm:$0xff]  ;;  %v3852_v24 = vpack.c.bf16 %v1919_v63, %v1915_v34  ;;  %3851 = vmatprep.subr.bf16.mxu1 %v3850_v8 }
 0x26f   : > { %v1925_v15 = vand.u32 2147483647, %v4446_v48  ;;  %v1923_v16 = vand.u32 2147483647, %v4447_v0  ;;  %v4448_v26 = vld [vmem:[%s5041_s17 + $0xcf0] sm:$0xff]  ;;  %v3598_v18 = vpack.c.bf16 %v1926_v57, %v1922_v13  ;;  %v4449_v14 = vld [vmem:[%s5041_s17 + $0xd08] sm:$0xff]  ;;  %3597 = vmatpush1.bf16.msra.mxu0 %v3596_v46 }
 0x270   : > { %v1927_v19 = vand.u32 2147483647, %v4448_v26  ;;  %v1930_v27 = vand.u32 2147483647, %v4449_v14  ;;  %v4450_v7 = vld [vmem:[%s5041_s17 + $0xd28] sm:$0xff]  ;;  %v3854_v36 = vpack.c.bf16 %v1928_v9, %v1924_v51  ;;  %v4451_v33 = vld [vmem:[%s5041_s17 + $0xd18] sm:$0xff]  ;;  %3853 = vmatpush1.bf16.msra.mxu1 %v3852_v24 }
 0x271   : > { %v1934_v21 = vand.u32 2147483647, %v4450_v7  ;;  %v1932_v37 = vand.u32 2147483647, %v4451_v33  ;;  %v4452_v44 = vld [vmem:[%s5041_s17 + $0xd38] sm:$0xff]  ;;  %v3600_v32 = vpack.c.bf16 %v1925_v15, %v1921_v23  ;;  %v4453_v49 = vld [vmem:[%s5041_s17 + $0xd00] sm:$0xff]  ;;  %3599 = vmatprep.subr.bf16.mxu0 %v3598_v18 }
 0x272   : > { %v1936_v53 = vand.u32 2147483647, %v4452_v44  ;;  %v3856_v50 = vpack.c.bf16 %v1927_v19, %v1923_v16  ;;  %v1929_v62 = vand.u32 2147483647, %v4453_v49  ;;  %v4454_v5 = vld [vmem:[%s5041_s17 + $0xd20] sm:$0xff]  ;;  %v4455_v10 = vld [vmem:[%s5041_s17 + $0xd10] sm:$0xff]  ;;  %3855 = vmatprep.subr.bf16.mxu1 %v3854_v36 }
 0x273   : > { %v1933_v2 = vand.u32 2147483647, %v4454_v5  ;;  %v1931_v61 = vand.u32 2147483647, %v4455_v10  ;;  %v3602_v60 = vpack.c.bf16 %v1934_v21, %v1930_v27  ;;  %v4456_v4 = vld [vmem:[%s5041_s17 + $0xd30] sm:$0xff]  ;;  %v4457_v30 = vld [vmem:[%s5041_s17 + $0xd48] sm:$0xff]  ;;  %3601 = vmatpush1.bf16.msra.mxu0 %v3600_v32 }
 0x274   : > { %v1935_v29 = vand.u32 2147483647, %v4456_v4  ;;  %v1938_v12 = vand.u32 2147483647, %v4457_v30  ;;  %v4458_v22 = vld [vmem:[%s5041_s17 + $0xd68] sm:$0xff]  ;;  %v3858_v59 = vpack.c.bf16 %v1936_v53, %v1932_v37  ;;  %v4459_v41 = vld [vmem:[%s5041_s17 + $0xd58] sm:$0xff]  ;;  %3857 = vmatpush1.bf16.msra.mxu1 %v3856_v50 }
 0x275   : > { %v1942_v55 = vand.u32 2147483647, %v4458_v22  ;;  %v1940_v58 = vand.u32 2147483647, %v4459_v41  ;;  %v4460_v54 = vld [vmem:[%s5041_s17 + $0xd78] sm:$0xff]  ;;  %v4461_v20 = vld [vmem:[%s5041_s17 + $0xd40] sm:$0xff]  ;;  %v3604_v42 = vpack.c.bf16 %v1933_v2, %v1929_v62  ;;  %3603 = vmatprep.subr.bf16.mxu0 %v3602_v60 }
 0x276   : > { %v1944_v56 = vand.u32 2147483647, %v4460_v54  ;;  %v1937_v28 = vand.u32 2147483647, %v4461_v20  ;;  %v4462_v31 = vld [vmem:[%s5041_s17 + $0xd60] sm:$0xff]  ;;  %v4463_v52 = vld [vmem:[%s5041_s17 + $0xd50] sm:$0xff]  ;;  %v3860_v6 = vpack.c.bf16 %v1935_v29, %v1931_v61  ;;  %3859 = vmatprep.subr.bf16.mxu1 %v3858_v59 }
 0x277   : > { %v1941_v40 = vand.u32 2147483647, %v4462_v31  ;;  %v1939_v38 = vand.u32 2147483647, %v4463_v52  ;;  %v4464_v39 = vld [vmem:[%s5041_s17 + $0xd70] sm:$0xff]  ;;  %v3606_v43 = vpack.c.bf16 %v1942_v55, %v1938_v12  ;;  %v4465_v34 = vld [vmem:[%s5041_s17 + $0xd88] sm:$0xff]  ;;  %3605 = vmatpush1.bf16.msra.mxu0 %v3604_v42 }
 0x278   : > { %v1943_v45 = vand.u32 2147483647, %v4464_v39  ;;  %v1946_v17 = vand.u32 2147483647, %v4465_v34  ;;  %v4466_v35 = vld [vmem:[%s5041_s17 + $0xda8] sm:$0xff]  ;;  %v3862_v1 = vpack.c.bf16 %v1944_v56, %v1940_v58  ;;  %v4467_v13 = vld [vmem:[%s5041_s17 + $0xd98] sm:$0xff]  ;;  %3861 = vmatpush1.bf16.msra.mxu1 %v3860_v6 }
 0x279   : > { %v1950_v63 = vand.u32 2147483647, %v4466_v35  ;;  %v1948_v25 = vand.u32 2147483647, %v4467_v13  ;;  %v4468_v57 = vld [vmem:[%s5041_s17 + $0xdb8] sm:$0xff]  ;;  %v3608_v11 = vpack.c.bf16 %v1941_v40, %v1937_v28  ;;  %v4469_v3 = vld [vmem:[%s5041_s17 + $0xd80] sm:$0xff]  ;;  %3607 = vmatprep.subr.bf16.mxu0 %v3606_v43 }
 0x27a   : > { %v1952_v8 = vand.u32 2147483647, %v4468_v57  ;;  %v3864_v51 = vpack.c.bf16 %v1943_v45, %v1939_v38  ;;  %v1945_v9 = vand.u32 2147483647, %v4469_v3  ;;  %v4470_v47 = vld [vmem:[%s5041_s17 + $0xda0] sm:$0xff]  ;;  %v4471_v48 = vld [vmem:[%s5041_s17 + $0xd90] sm:$0xff]  ;;  %3863 = vmatprep.subr.bf16.mxu1 %v3862_v1 }
 0x27b   : > { %v1949_v23 = vand.u32 2147483647, %v4470_v47  ;;  %v1947_v15 = vand.u32 2147483647, %v4471_v48  ;;  %v3610_v46 = vpack.c.bf16 %v1950_v63, %v1946_v17  ;;  %v4472_v0 = vld [vmem:[%s5041_s17 + $0xdb0] sm:$0xff]  ;;  %v4473_v26 = vld [vmem:[%s5041_s17 + $0xdc8] sm:$0xff]  ;;  %3609 = vmatpush1.bf16.msra.mxu0 %v3608_v11 }
 0x27c   : > { %v1951_v16 = vand.u32 2147483647, %v4472_v0  ;;  %v1954_v19 = vand.u32 2147483647, %v4473_v26  ;;  %v4474_v24 = vld [vmem:[%s5041_s17 + $0xde8] sm:$0xff]  ;;  %v6133_v14 = vpop.f32.mrb[0].mxu0  ;;  %v3866_v27 = vpack.c.bf16 %v1952_v8, %v1948_v25  ;;  %3865 = vmatpush1.bf16.msra.mxu1 %v3864_v51 }
 0x27d   : > { %v1958_v18 = vand.u32 2147483647, %v4474_v24  ;;  %v4475_v7 = vld [vmem:[%s5041_s17 + $0xdd8] sm:$0xff]  ;;  %v6137_v37 = vpop.f32.mrb[0].mxu1  ;;  %v6139_v44 = vpop.f32.mrb[1].mxu0  ;;  %v4477_v53 = vld [vmem:[%s5041_s17 + $0xdc0] sm:$0xff]  ;;  %v3612_v5 = vpack.c.bf16 %v1949_v23, %v1945_v9  ;;  %3611 = vmatprep.subr.bf16.mxu0 %v3610_v46 }
 0x27e   : > { %v1956_v21 = vand.u32 2147483647, %v4475_v7  ;;  %v4476_v36 = vld [vmem:[%s5041_s17 + $0xdf8] sm:$0xff]  ;;  %v1953_v32 = vand.u32 2147483647, %v4477_v53  ;;  %v4478_v50 = vld [vmem:[%s5041_s17 + $0xde0] sm:$0xff]  ;;  %v3868_v4 = vpack.c.bf16 %v1951_v16, %v1947_v15  ;;  %3867 = vmatprep.subr.bf16.mxu1 %v3866_v27 }
 0x27f   : > { %v1960_v33 = vand.u32 2147483647, %v4476_v36  ;;  %v1957_v49 = vand.u32 2147483647, %v4478_v50  ;;  %v6143_v62 = vpop.f32.mrb[1].mxu1  ;;  %v4479_v2 = vld [vmem:[%s5041_s17 + $0xdd0] sm:$0xff]  ;;  %v3614_v29 = vpack.c.bf16 %v1958_v18, %v1954_v19  ;;  %3613 = vmatpush1.bf16.msra.mxu0 %v3612_v5 }
 0x280   : > { %v1955_v10 = vand.u32 2147483647, %v4479_v2  ;;  %v4480_v61 = vld [vmem:[%s5041_s17 + $0xdf0] sm:$0xff]  ;;  %v4481_v30 = vld [vmem:[%s5041_s17 + $0xe08] sm:$0xff]  ;;  %v4483_v41 = vld [vmem:[%s5041_s17 + $0xe18] sm:$0xff]  ;;  %3869 = vmatpush1.bf16.msra.mxu1 %v3868_v4 }
 0x281   : > { %v1959_v60 = vand.u32 2147483647, %v4480_v61  ;;  %v1962_v12 = vand.u32 2147483647, %v4481_v30  ;;  %v4482_v22 = vld [vmem:[%s5041_s17 + $0xe28] sm:$0xff]  ;;  %v3870_v59 = vpack.c.bf16 %v1960_v33, %v1956_v21  ;;  %v4484_v54 = vld [vmem:[%s5041_s17 + $0xe38] sm:$0xff]  ;;  %v3616_v20 = vpack.c.bf16 %v1957_v49, %v1953_v32  ;;  %3615 = vmatprep.subr.bf16.mxu0 %v3614_v29 }
 0x282   : > { %v1966_v55 = vand.u32 2147483647, %v4482_v22  ;;  %v1964_v58 = vand.u32 2147483647, %v4483_v41  ;;  %v1968_v56 = vand.u32 2147483647, %v4484_v54 }
 0x283   : > { %v3872_v28 = vpack.c.bf16 %v1959_v60, %v1955_v10  ;;  %v4485_v31 = vld [vmem:[%s5041_s17 + $0xe00] sm:$0xff]  ;;  %v4487_v38 = vld [vmem:[%s5041_s17 + $0xe10] sm:$0xff]  ;;  %v4489_v34 = vld [vmem:[%s5041_s17 + $0xe48] sm:$0xff]  ;;  %3871 = vmatprep.subr.bf16.mxu1 %v3870_v59  ;;  %3617 = vmatpush1.bf16.msra.mxu0 %v3616_v20 }
 0x284   : > { %v1961_v40 = vand.u32 2147483647, %v4485_v31  ;;  %v4486_v42 = vld [vmem:[%s5041_s17 + $0xe20] sm:$0xff]  ;;  %v1963_v39 = vand.u32 2147483647, %v4487_v38  ;;  %v3618_v45 = vpack.c.bf16 %v1966_v55, %v1962_v12  ;;  %v4488_v6 = vld [vmem:[%s5041_s17 + $0xe30] sm:$0xff]  ;;  %v3874_v1 = vpack.c.bf16 %v1968_v56, %v1964_v58 }
 0x285   : > { %v1965_v52 = vand.u32 2147483647, %v4486_v42  ;;  %v1967_v43 = vand.u32 2147483647, %v4488_v6  ;;  %v1970_v17 = vand.u32 2147483647, %v4489_v34  ;;  %3873 = vmatpush1.bf16.msra.mxu1 %v3872_v28 }
 0x286   : > { %v4490_v35 = vld [vmem:[%s5041_s17 + $0xe68] sm:$0xff]  ;;  %v4491_v13 = vld [vmem:[%s5041_s17 + $0xe58] sm:$0xff]  ;;  %v4493_v11 = vld [vmem:[%s5041_s17 + $0xe40] sm:$0xff]  ;;  %3619 = vmatprep.subr.bf16.mxu0 %v3618_v45  ;;  %3875 = vmatprep.subr.bf16.mxu1 %v3874_v1 }
 0x287   : > { %v1974_v63 = vand.u32 2147483647, %v4490_v35  ;;  %v1972_v25 = vand.u32 2147483647, %v4491_v13  ;;  %v4492_v57 = vld [vmem:[%s5041_s17 + $0xe78] sm:$0xff]  ;;  %v4494_v3 = vld [vmem:[%s5041_s17 + $0xe60] sm:$0xff]  ;;  %v3620_v47 = vpack.c.bf16 %v1965_v52, %v1961_v40  ;;  %v3876_v0 = vpack.c.bf16 %v1967_v43, %v1963_v39 }
 0x288   : > { %v1976_v8 = vand.u32 2147483647, %v4492_v57  ;;  %v1969_v51 = vand.u32 2147483647, %v4493_v11  ;;  %v1973_v9 = vand.u32 2147483647, %v4494_v3 }
 0x289   : > { %v4495_v23 = vld [vmem:[%s5041_s17 + $0xe50] sm:$0xff]  ;;  %v3622_v16 = vpack.c.bf16 %v1974_v63, %v1970_v17  ;;  %v4497_v26 = vld [vmem:[%s5041_s17 + $0xe88] sm:$0xff]  ;;  %v4499_v7 = vld [vmem:[%s5041_s17 + $0xe98] sm:$0xff]  ;;  %3621 = vmatpush1.bf16.msra.mxu0 %v3620_v47  ;;  %3877 = vmatpush1.bf16.msra.mxu1 %v3876_v0 }
 0x28a   : > { %v1971_v48 = vand.u32 2147483647, %v4495_v23  ;;  %v4496_v15 = vld [vmem:[%s5041_s17 + $0xe70] sm:$0xff]  ;;  %v1978_v19 = vand.u32 2147483647, %v4497_v26  ;;  %v4498_v24 = vld [vmem:[%s5041_s17 + $0xea8] sm:$0xff]  ;;  %v3878_v27 = vpack.c.bf16 %v1976_v8, %v1972_v25  ;;  %v3624_v53 = vpack.c.bf16 %v1973_v9, %v1969_v51 }
 0x28b   : > { %v1975_v46 = vand.u32 2147483647, %v4496_v15  ;;  %v1982_v18 = vand.u32 2147483647, %v4498_v24  ;;  %v1980_v21 = vand.u32 2147483647, %v4499_v7  ;;  %3623 = vmatprep.subr.bf16.mxu0 %v3622_v16 }
 0x28c   : > { %v4500_v36 = vld [vmem:[%s5041_s17 + $0xeb8] sm:$0xff]  ;;  %v4501_v50 = vld [vmem:[%s5041_s17 + $0xe80] sm:$0xff]  ;;  %v4503_v10 = vld [vmem:[%s5041_s17 + $0xe90] sm:$0xff]  ;;  %3879 = vmatprep.subr.bf16.mxu1 %v3878_v27 }
 0x28d   : > { %v1984_v33 = vand.u32 2147483647, %v4500_v36  ;;  %v3880_v32 = vpack.c.bf16 %v1975_v46, %v1971_v48  ;;  %v1977_v49 = vand.u32 2147483647, %v4501_v50  ;;  %v4502_v5 = vld [vmem:[%s5041_s17 + $0xea0] sm:$0xff]  ;;  %v3626_v60 = vpack.c.bf16 %v1982_v18, %v1978_v19  ;;  %v4504_v4 = vld [vmem:[%s5041_s17 + $0xeb0] sm:$0xff]  ;;  %3625 = vmatpush1.bf16.msra.mxu0 %v3624_v53 }
 0x28e   : > { %v1981_v2 = vand.u32 2147483647, %v4502_v5  ;;  %v1979_v61 = vand.u32 2147483647, %v4503_v10  ;;  %v1983_v29 = vand.u32 2147483647, %v4504_v4 }
 0x28f   : > { %v4505_v30 = vld [vmem:[%s5041_s17 + $0xec8] sm:$0xff]  ;;  %v3882_v59 = vpack.c.bf16 %v1984_v33, %v1980_v21  ;;  %v4507_v41 = vld [vmem:[%s5041_s17 + $0xed8] sm:$0xff]  ;;  %v4509_v20 = vld [vmem:[%s5041_s17 + $0xec0] sm:$0xff]  ;;  %3881 = vmatpush1.bf16.msra.mxu1 %v3880_v32  ;;  %3627 = vmatprep.subr.bf16.mxu0 %v3626_v60 }
 0x290   : > { %v1986_v12 = vand.u32 2147483647, %v4505_v30  ;;  %v4506_v22 = vld [vmem:[%s5041_s17 + $0xee8] sm:$0xff]  ;;  %v1988_v58 = vand.u32 2147483647, %v4507_v41  ;;  %v4508_v54 = vld [vmem:[%s5041_s17 + $0xef8] sm:$0xff]  ;;  %v3628_v42 = vpack.c.bf16 %v1981_v2, %v1977_v49  ;;  %v3884_v6 = vpack.c.bf16 %v1983_v29, %v1979_v61 }
 0x291   : > { %v1990_v55 = vand.u32 2147483647, %v4506_v22  ;;  %v1992_v56 = vand.u32 2147483647, %v4508_v54  ;;  %v1985_v28 = vand.u32 2147483647, %v4509_v20  ;;  %3883 = vmatprep.subr.bf16.mxu1 %v3882_v59 }
 0x292   : > { %v4510_v31 = vld [vmem:[%s5041_s17 + $0xee0] sm:$0xff]  ;;  %v4511_v52 = vld [vmem:[%s5041_s17 + $0xed0] sm:$0xff]  ;;  %v4513_v34 = vld [vmem:[%s5041_s17 + $0xf08] sm:$0xff]  ;;  %3629 = vmatpush1.bf16.msra.mxu0 %v3628_v42 }
 0x293   : > { %v1989_v40 = vand.u32 2147483647, %v4510_v31  ;;  %v1987_v38 = vand.u32 2147483647, %v4511_v52  ;;  %v4512_v39 = vld [vmem:[%s5041_s17 + $0xef0] sm:$0xff]  ;;  %v3630_v43 = vpack.c.bf16 %v1990_v55, %v1986_v12  ;;  %v4514_v35 = vld [vmem:[%s5041_s17 + $0xf28] sm:$0xff]  ;;  %v3886_v1 = vpack.c.bf16 %v1992_v56, %v1988_v58  ;;  %3885 = vmatpush1.bf16.msra.mxu1 %v3884_v6 }
 0x294   : > { %v1991_v45 = vand.u32 2147483647, %v4512_v39  ;;  %v1994_v17 = vand.u32 2147483647, %v4513_v34  ;;  %v1998_v63 = vand.u32 2147483647, %v4514_v35 }
 0x295   : > { %v4515_v13 = vld [vmem:[%s5041_s17 + $0xf18] sm:$0xff]  ;;  %v3632_v11 = vpack.c.bf16 %v1989_v40, %v1985_v28  ;;  %v4517_v3 = vld [vmem:[%s5041_s17 + $0xf00] sm:$0xff]  ;;  %v4519_v48 = vld [vmem:[%s5041_s17 + $0xf10] sm:$0xff]  ;;  %3631 = vmatprep.subr.bf16.mxu0 %v3630_v43  ;;  %3887 = vmatprep.subr.bf16.mxu1 %v3886_v1 }
 0x296   : > { %v1996_v25 = vand.u32 2147483647, %v4515_v13  ;;  %v4516_v57 = vld [vmem:[%s5041_s17 + $0xf38] sm:$0xff]  ;;  %v3888_v51 = vpack.c.bf16 %v1991_v45, %v1987_v38  ;;  %v1993_v9 = vand.u32 2147483647, %v4517_v3  ;;  %v4518_v47 = vld [vmem:[%s5041_s17 + $0xf20] sm:$0xff]  ;;  %v3634_v46 = vpack.c.bf16 %v1998_v63, %v1994_v17 }
 0x297   : > { %v2000_v8 = vand.u32 2147483647, %v4516_v57  ;;  %v1997_v23 = vand.u32 2147483647, %v4518_v47  ;;  %v1995_v15 = vand.u32 2147483647, %v4519_v48  ;;  %3633 = vmatpush1.bf16.msra.mxu0 %v3632_v11 }
 0x298   : > { %v4520_v0 = vld [vmem:[%s5041_s17 + $0xf30] sm:$0xff]  ;;  %v4521_v26 = vld [vmem:[%s5041_s17 + $0xf48] sm:$0xff]  ;;  %v4523_v7 = vld [vmem:[%s5041_s17 + $0xf58] sm:$0xff]  ;;  %3889 = vmatpush1.bf16.msra.mxu1 %v3888_v51  ;;  %3635 = vmatprep.subr.bf16.mxu0 %v3634_v46 }
 0x299   : > { %v1999_v16 = vand.u32 2147483647, %v4520_v0  ;;  %v2002_v19 = vand.u32 2147483647, %v4521_v26  ;;  %v4522_v24 = vld [vmem:[%s5041_s17 + $0xf68] sm:$0xff]  ;;  %v3890_v27 = vpack.c.bf16 %v2000_v8, %v1996_v25  ;;  %v4524_v36 = vld [vmem:[%s5041_s17 + $0xf78] sm:$0xff]  ;;  %v3636_v5 = vpack.c.bf16 %v1997_v23, %v1993_v9 }
 0x29a   : > { %v2006_v18 = vand.u32 2147483647, %v4522_v24  ;;  %v2004_v21 = vand.u32 2147483647, %v4523_v7  ;;  %v2008_v33 = vand.u32 2147483647, %v4524_v36  ;;  %v2618_v36 = vlaneseq }
 0x29b   : > { %v4525_v53 = vld [vmem:[%s5041_s17 + $0xf40] sm:$0xff]  ;;  %v4527_v2 = vld [vmem:[%s5041_s17 + $0xf50] sm:$0xff]  ;;  %v3892_v4 = vpack.c.bf16 %v1999_v16, %v1995_v15  ;;  %v4529_v30 = vld [vmem:[%s5041_s17 + $0xf88] sm:$0xff]  ;;  %3891 = vmatprep.subr.bf16.mxu1 %v3890_v27  ;;  %3637 = vmatpush1.bf16.msra.mxu0 %v3636_v5 }
 0x29c   : > { %v2001_v32 = vand.u32 2147483647, %v4525_v53  ;;  %v4526_v50 = vld [vmem:[%s5041_s17 + $0xf60] sm:$0xff]  ;;  %v2003_v10 = vand.u32 2147483647, %v4527_v2  ;;  %v4528_v61 = vld [vmem:[%s5041_s17 + $0xf70] sm:$0xff]  ;;  %v3638_v29 = vpack.c.bf16 %v2006_v18, %v2002_v19  ;;  %v3894_v59 = vpack.c.bf16 %v2008_v33, %v2004_v21 }
 0x29d   : > { %v2005_v49 = vand.u32 2147483647, %v4526_v50  ;;  %v2007_v60 = vand.u32 2147483647, %v4528_v61  ;;  %v2010_v12 = vand.u32 2147483647, %v4529_v30  ;;  %3893 = vmatpush1.bf16.msra.mxu1 %v3892_v4 }
 0x29e   : > { %v4530_v22 = vld [vmem:[%s5041_s17 + $0xfa8] sm:$0xff]  ;;  %v4531_v41 = vld [vmem:[%s5041_s17 + $0xf98] sm:$0xff]  ;;  %v4533_v31 = vld [vmem:[%s5041_s17 + $0xf80] sm:$0xff]  ;;  %3639 = vmatprep.subr.bf16.mxu0 %v3638_v29  ;;  %3895 = vmatprep.subr.bf16.mxu1 %v3894_v59  ;;  %v2619_v33 = vshrl.u32 %v2618_v36, 7 }
 0x29f   : > { %v2014_v55 = vand.u32 2147483647, %v4530_v22  ;;  %v2012_v58 = vand.u32 2147483647, %v4531_v41  ;;  %v4532_v54 = vld [vmem:[%s5041_s17 + $0xfb8] sm:$0xff]  ;;  %v3640_v20 = vpack.c.bf16 %v2005_v49, %v2001_v32  ;;  %v3896_v28 = vpack.c.bf16 %v2007_v60, %v2003_v10  ;;  %v4534_v42 = vld [vmem:[%s5041_s17 + $0xfa0] sm:$0xff] }
 0x2a0   : > { %v2016_v56 = vand.u32 2147483647, %v4532_v54  ;;  %v2009_v40 = vand.u32 2147483647, %v4533_v31  ;;  %v2013_v52 = vand.u32 2147483647, %v4534_v42 }
 0x2a1   : > { %v4535_v38 = vld [vmem:[%s5041_s17 + $0xf90] sm:$0xff]  ;;  %v3642_v45 = vpack.c.bf16 %v2014_v55, %v2010_v12  ;;  %v4537_v34 = vld [vmem:[%s5041_s17 + $0xfc8] sm:$0xff]  ;;  %v4539_v13 = vld [vmem:[%s5041_s17 + $0xfd8] sm:$0xff]  ;;  %3641 = vmatpush1.bf16.msra.mxu0 %v3640_v20  ;;  %3897 = vmatpush1.bf16.msra.mxu1 %v3896_v28  ;;  %v2620_v53 = vsub.s32 0, %v2619_v33  ;;  %v2628_v50 = vsub.s32 2, %v2619_v33  ;;  %v2624_v49 = vsub.s32 1, %v2619_v33 }
 0x2a2   : > { %v2011_v39 = vand.u32 2147483647, %v4535_v38  ;;  %v4536_v6 = vld [vmem:[%s5041_s17 + $0xfb0] sm:$0xff]  ;;  %v2018_v17 = vand.u32 2147483647, %v4537_v34  ;;  %v4538_v35 = vld [vmem:[%s5041_s17 + $0xfe8] sm:$0xff]  ;;  %v3898_v1 = vpack.c.bf16 %v2016_v56, %v2012_v58  ;;  %v3644_v11 = vpack.c.bf16 %v2013_v52, %v2009_v40 }
 0x2a3   : > { %v2015_v43 = vand.u32 2147483647, %v4536_v6  ;;  %v2022_v63 = vand.u32 2147483647, %v4538_v35  ;;  %v2020_v25 = vand.u32 2147483647, %v4539_v13  ;;  %3643 = vmatprep.subr.bf16.mxu0 %v3642_v45 }
 0x2a4   : > { %v4540_v57 = vld [vmem:[%s5041_s17 + $0xff8] sm:$0xff]  ;;  %v4541_v51 = vld [vmem:[%s5041_s17 + $0xfc0] sm:$0xff]  ;;  %v4543_v15 = vld [vmem:[%s5041_s17 + $0xfd0] sm:$0xff]  ;;  %3899 = vmatprep.subr.bf16.mxu1 %v3898_v1  ;;  %v2632_v5 = vsub.s32 3, %v2619_v33 }
 0x2a5   : > { %v2024_v8 = vand.u32 2147483647, %v4540_v57  ;;  %v2017_v3 = vand.u32 2147483647, %v4541_v51  ;;  %v4542_v9 = vld [vmem:[%s5041_s17 + $0xfe0] sm:$0xff]  ;;  %v3900_v23 = vpack.c.bf16 %v2015_v43, %v2011_v39  ;;  %v3646_v48 = vpack.c.bf16 %v2022_v63, %v2018_v17  ;;  %v4544_v0 = vld [vmem:[%s5041_s17 + $0xff0] sm:$0xff]  ;;  %3645 = vmatpush1.bf16.msra.mxu0 %v3644_v11 }
 0x2a6   : > { %v2021_v47 = vand.u32 2147483647, %v4542_v9  ;;  %v2019_v46 = vand.u32 2147483647, %v4543_v15  ;;  %v2023_v16 = vand.u32 2147483647, %v4544_v0 }
 0x2a7   : > { %v3902_v26 = vpack.c.bf16 %v2024_v8, %v2020_v25  ;;  %v4545_v19 = vld [vmem:[#allocation5 + $0x30] sm:$0xff]  ;;  %3901 = vmatpush1.bf16.msra.mxu1 %v3900_v23  ;;  %3647 = vmatprep.subr.bf16.mxu0 %v3646_v48  ;;  %v2604_v32 = vld [vmem:[%s5053_s10] sm:$0xf]  ;;  %s4669_s17 = scalar_lea.vmem %s4668_s26, 1024 }
 0x2a8   : > { %v4546_v24 = vld [vmem:[#allocation7 + $0x30] sm:$0xff]  ;;  %v3648_v27 = vpack.c.bf16 %v2021_v47, %v2017_v3  ;;  %v3904_v7 = vpack.c.bf16 %v2023_v16, %v2019_v46  ;;  %v2621_v10 = vrot.slane %v2604_v32, %v2620_v53  ;;  %v2629_v4 = vrot.slane %v2604_v32, %v2628_v50  ;;  %p4671_p13 = scmp.lt.s32.totalorder %s4669_s17, %s4663_s12 }
 0x2a9   : > { %v919_v18 = vsub.f32 %v4546_v24, %v4545_v19  ;;  %3903 = vmatprep.subr.bf16.mxu1 %v3902_v26  ;;  %v2625_v29 = vrot.slane %v2604_v32, %v2624_v49  ;;  %v2633_v55 = vrot.slane %v2604_v32, %v2632_v5 }
 0x2aa   : > { %3649 = vmatpush1.bf16.msra.mxu0 %v3648_v27  ;;  %p4672_p4 = por %p4671_p13, %p4670_p8 }
 0x2ab   : > { %v927_v21 = vmul.f32 0.5, %v919_v18  ;;  %3905 = vmatpush1.bf16.msra.mxu1 %v3904_v7 }
 0x2ac   : > { %p4673_p12 = pnand %p4672_p4, %p4666_p9 }
 0x2ad   : > { %2303 = vmatmul.mubr.f32.vlgmr.msra.gmra.mrb[2].mxu0 %v927_v21 }
 0x2ae   : > { %2587 = vmatmul.mubr.f32.vlgmr.msra.gmra.mrb[2].mxu1 %v927_v21 }
 0x380   : > { %v2304_v2 = vpop.f32.mrb[2].mxu0 }
 0x381   : > { %v2588_v61 = vpop.f32.mrb[2].mxu1  ;;  %v2306_v60 = vpop.f32.mrb[3].mxu0  ;;  %v2613_v12 = vsub.f32 %v6133_v14, %v2304_v2  ;;  %v2646_v22 = vadd.f32 %v2304_v2, %v6133_v14 }
 0x382   : > { %v2590_v30 = vpop.f32.mrb[3].mxu1  ;;  %v2615_v59 = vsub.f32 %v6137_v37, %v2588_v61  ;;  %v2648_v41 = vadd.f32 %v2588_v61, %v6137_v37  ;;  %v2614_v58 = vsub.f32 %v6139_v44, %v2306_v60  ;;  %v2647_v54 = vadd.f32 %v2306_v60, %v6139_v44 }
 0x383   : > { %v2638_v56 = vadd.f32 %v2621_v10, %v2613_v12  ;;  %v2650_v20 = vadd.f32 %v2646_v22, %v2621_v10  ;;  %v2616_v28 = vsub.f32 %v6143_v62, %v2590_v30  ;;  %v2649_v31 = vadd.f32 %v2590_v30, %v6143_v62 }
 0x384   : > { %v2640_v14 = vadd.f32 %v2629_v4, %v2615_v59  ;;  %v2652_v40 = vadd.f32 %v2648_v41, %v2629_v4  ;;  %v2639_v42 = vadd.f32 %v2625_v29, %v2614_v58  ;;  %v2651_v52 = vadd.f32 %v2647_v54, %v2625_v29 }
 0x385   : > { %2654 = vst [vmem:[%s349_s28] sm:$0xff] %v2650_v20  ;;  %2642 = vst [vmem:[%s342_s15] sm:$0xff] %v2638_v56  ;;  %v2641_v37 = vadd.f32 %v2633_v55, %v2616_v28  ;;  %v2653_v44 = vadd.f32 %v2649_v31, %v2633_v55 }
 0x386   : > { %2656 = vst [vmem:[%s349_s28 + $0x10] sm:$0xff] %v2652_v40  ;;  %2644 = vst [vmem:[%s342_s15 + $0x10] sm:$0xff] %v2640_v14 }
 0x387   : > { %2655 = vst [vmem:[%s349_s28 + $0x8] sm:$0xff] %v2651_v52  ;;  %2643 = vst [vmem:[%s342_s15 + $0x8] sm:$0xff] %v2639_v42 }
 0x388   : > { %2657 = vst [vmem:[%s349_s28 + $0x18] sm:$0xff] %v2653_v44  ;;  %2645 = vst [vmem:[%s342_s15 + $0x18] sm:$0xff] %v2641_v37 }
 0x389   : > { %4676 = shalt.err (!%p4673_p12)
}
 0x38a   : > { %s4677_s2 = scalar_lea.hbm %s6225_s1, 512  ;;  %s4681_s27 = scalar_lea.hbm %s6307_s4, 1024 }
 0x38b   : > { %p4678_p5 = scmp.ne.s32.totalorder %s6225_s1, %s4677_s2  ;;  %p4682_p10 = scmp.lt.u32.totalorder %s6225_s1, %s6307_s4 }
 0x38c   : > { %p4683_p7 = scmp.lt.u32.totalorder %s4681_s27, %s4677_s2  ;;  %p4685_p0 = scmp.lt.u32.totalorder %s4677_s2, %s6225_s1 }
 0x38d   : > { %p4679_p1 = pnand %p4678_p5, %p6344_p6 }
 0x38e   : > { %p4684_p3 = por %p4683_p7, %p4682_p10 }
 0x38f   : > { %p4680_p11 = pneg %p4679_p1 }
 0x390   : > { %p4686_p2 = por %p4685_p0, %p4684_p3 }
 0x392   : > { %p4687_p9 = pnand %p4686_p2, %p4680_p11 }
 0x394   : > { %4690 = shalt.err (!%p4687_p9)
}
 0x395   : > { %3942 = dma.vmem_to_hbm [thread:$0]  (%p6344_p6), %s6227_s24, 512, %s6225_s1, %s2659_s25  }
 0x396   : > { %s2664_s28 = scalar_lea.sflag [#allocation12], %s5037_s11  ;;  %s4691_s21 = scalar_lea.vmem %s6234_s9, 512 }
 0x397   : > { %p4692_p8 = scmp.ne.s32.totalorder %s6234_s9, %s4691_s21  ;;  %s4795_s14 = smov [#allocation11]  }
 0x398   : > { %s4695_s13 = sshll.u32 %s4795_s14, 4  ;;  %s4696_s13 = int_to_ptr.vmem [resolvable:$false] %s4695_s13 }
 0x399   : > { %p4693_p13 = pnand %p4692_p8, %p6344_p6  ;;  %s4697_s0 = scalar_lea.vmem %s4696_s13, 1024 }
 0x39a   : > { %p4698_p12 = scmp.lt.s32.totalorder %s6234_s9, %s4696_s13  ;;  %p4699_p5 = scmp.lt.s32.totalorder %s4697_s0, %s4691_s21 }
 0x39b   : > { %p4694_p4 = pneg %p4693_p13 }
 0x39c   : > { %p4700_p1 = por %p4699_p5, %p4698_p12 }
 0x39e   : > { %p4701_p11 = pnand %p4700_p1, %p4694_p4 }
 0x3a0   : > { %4704 = shalt.err (!%p4701_p11)
}
 0x3a1   : > { %s4705_s11 = scalar_lea.hbm %s6232_s16, 512  ;;  %s4709_s25 = scalar_lea.hbm %s6308_s5, 1024 }
 0x3a2   : > { %p4706_p10 = scmp.ne.s32.totalorder %s6232_s16, %s4705_s11  ;;  %p4710_p0 = scmp.lt.u32.totalorder %s6232_s16, %s6308_s5 }
 0x3a3   : > { %p4711_p2 = scmp.lt.u32.totalorder %s4709_s25, %s4705_s11  ;;  %p4713_p8 = scmp.lt.u32.totalorder %s4705_s11, %s6232_s16 }
 0x3a4   : > { %p4707_p7 = pnand %p4706_p10, %p6344_p6 }
 0x3a5   : > { %p4712_p9 = por %p4711_p2, %p4710_p0 }
 0x3a6   : > { %p4708_p3 = pneg %p4707_p7 }
 0x3a7   : > { %p4714_p13 = por %p4713_p8, %p4712_p9 }
 0x3a9   : > { %p4715_p4 = pnand %p4714_p13, %p4708_p3 }
 0x3ab   : > { %4718 = shalt.err (!%p4715_p4)
}
 0x3ac   : > { %3943 = dma.vmem_to_hbm [thread:$0]  (%p6344_p6), %s6234_s9, 512, %s6232_s16, %s2664_s28  }
 0x3ad PF: > { %s2704_s26 = sand.u32 1, %s4765_s18   ;;  %p6345_p12 = scmp.ne.s32.totalorder %s6325_s6, 0 }
 0x3ae   : > { %p6346_p5 = scmp.ge.s32.totalorder %s4785_s23, 2  ;;  %s2705_s17 = scalar_lea.sflag [#allocation4], %s2704_s26 }
 0x3b0   : > { %p3961_p1 = pnand %p6346_p5, %p6345_p12 }
 0x3b2   : > { %4756 = dma.done.wait (!%p3961_p1), %s2705_s17, 512  }
 0x3b3   : > { %4758 = vsyncadd (!%p3961_p1), %s2705_s17, 4294966784  ;;  %s2714_s2 = scalar_lea.sflag [#allocation12], %s2704_s26 }
 0x3b4   : > { %4760 = dma.done.wait (!%p3961_p1), %s2714_s2, 512  }
 0x3b5   : > { %4762 = vsyncadd (!%p3961_p1), %s2714_s2, 4294966784  ;;  %s29_s23 = sadd.s32 1, %s4785_s23   ;;  %s6347_s30 = sld [smem:[#allocation19_spill]] }
 0x3b6   : > { %p26_p11 = scmp.ge.s32.totalorder %s29_s23, 4   ;;  %s6348_s9 = sld [smem:[#allocation18_spill]] }
 0x3b7   : > { %s6349_s18 = smov %s4769_s19  ;;  %s6350_s19 = smov %s4773_s20 }
 0x3b8   : > { %s6352_s21 = smov %s4781_s22  ;;  %28 = sbr.rel (!%p26_p11) target bundleno = 15 (0xf), region = 129 }
 0x3bb   : > { %s6351_s20 = smov %s6347_s30 }
 0x3bc   : > { %s6353_s22 = smov %s6348_s9 }
 0x3bf   :  { %2719 = vsyncpa [#allocation3], 1 }
 0x3c0   :  { %2721 = vsyncpa [#allocation3 + $0x1], 1 }
 0x3c1   :  { %2722 = vsyncpa [#allocation6], 1 }
 0x3c2   :  { %2723 = vsyncpa [#allocation9], 1 }
 0x3c3   :  { %2725 = vsyncpa [#allocation9 + $0x1], 1 }
 0x3c4   :  { %2726 = vsyncpa [#allocation4], 1 }
 0x3c5   :  { %2728 = vsyncpa [#allocation4 + $0x1], 1 }
 0x3c6   :  { %2729 = vsyncpa [#allocation12], 1 }
 0x3c7   :  { %2731 = vsyncpa [#allocation12 + $0x1], 1 }

</bundles_post_ra>
